<compile_context>
chip_gen: v5e
topology: v5e:2x2
jax: 0.10.0
libtpu: 0.0.40
codegen_flags: <defaults>
</compile_context>

<pallas_src>
import functools

import jax
import jax.numpy as jnp
from jax.experimental import pallas as pl
from jax.experimental.pallas import tpu as pltpu

BN_EPS = 1e-5


def _round_up(x, m):
    return ((x + m - 1) // m) * m


# ----------------------------------------------------------------------------
# Kernel: spatial mean (sublane reduce, f32 acc) + single folded Linear (MXU).
# ----------------------------------------------------------------------------
def _ft_net_ir_head_kernel(feat_ref, w_ref, b_ref, out_ref, *, inv_hw):
    # feat: (TB, HW, C) with C on lanes. Sum over the spatial (sublane) axis
    # with f32 accumulation; no full-tile f32 upcast is materialized.
    pooled = jnp.sum(feat_ref[...], axis=1, dtype=jnp.float32) * inv_hw  # (TB, C)

    # ClassBlock (Linear -> BN(eval) -> Dropout(eval) -> Linear), pre-folded in
    # the wrapper into a single affine map:  logits = pooled @ W + b.
    logits = jnp.dot(pooled.astype(w_ref.dtype), w_ref[...],
                     preferred_element_type=jnp.float32) + b_ref[...]
    out_ref[...] = logits.astype(out_ref.dtype)


# ----------------------------------------------------------------------------
# Parameter folding (done once in the wrapper, constant-foldable under jit).
# ----------------------------------------------------------------------------
def fold_head_params(p, weight_dtype=jnp.float32):
    """Fold Linear1 + BatchNorm1d(eval) + Linear2 into one (C, class_num) affine.

    w1' = w1 * (gamma * rsqrt(var + eps))
    b1' = (b1 - mean) * gamma * rsqrt(var + eps) + beta
    W   = w1' @ w2            b = b1' @ w2 + b2
    """
    scale = p["gamma"] * jax.lax.rsqrt(p["var"] + BN_EPS)        # (1, Nb)
    w1f = p["w1"] * scale                                        # (C, Nb)
    b1f = (p["b1"] - p["mean"]) * scale + p["beta"]              # (1, Nb)
    W = (w1f @ p["w2"]).astype(weight_dtype)                     # (C, class_num)
    b = (b1f @ p["w2"] + p["b2"]).astype(jnp.float32)            # (1, class_num)
    return W, b


# ----------------------------------------------------------------------------
# Wrapper
# ----------------------------------------------------------------------------
def ft_net_ir_head(feat_nchw, W, b, *, feat_dtype=jnp.bfloat16, batch_tile=16):
    """feat_nchw: (B, C, H, W) backbone features. Returns logits (B, class_num).

    feat_dtype=None keeps the input dtype (e.g. f32 for an exact-math check);
    the default bf16 halves the dominant HBM traffic (f32 accumulation inside).
    """
    B, C, H, Wd = feat_nchw.shape
    HW = H * Wd
    K = W.shape[1]
    Kpad = _round_up(max(K, 1), 128)

    # Channels-last layout (layout plumbing done once in XLA outside the
    # kernel; a JAX backbone would emit NHWC natively).
    feat = jnp.transpose(feat_nchw, (0, 2, 3, 1)).reshape(B, HW, C)
    if feat_dtype is not None:
        feat = feat.astype(feat_dtype)

    # Batch tile: multiple of 8 sublanes, padded batch.
    assert batch_tile % 8 == 0
    tb = min(batch_tile, _round_up(B, 8))
    Bp = _round_up(B, tb)
    if Bp != B:
        feat = jnp.pad(feat, ((0, Bp - B), (0, 0), (0, 0)))

    # Lane-dense (padded) folded weight / bias so the output store is unmasked.
    Wp = jnp.zeros((C, Kpad), W.dtype).at[:, :K].set(W)
    bp = jnp.zeros((1, Kpad), jnp.float32).at[:, :K].set(
        b.reshape(1, K).astype(jnp.float32))

    grid = (Bp // tb,)

    # Explicit VMEM budget: double-buffered feat/out tiles + resident weights,
    # sized to fit v7x's 64 MiB physical VMEM with headroom.
    feat_tile_bytes = tb * HW * C * feat.dtype.itemsize
    out_tile_bytes = tb * Kpad * 4
    resident_bytes = Wp.size * Wp.dtype.itemsize + bp.size * bp.dtype.itemsize
    needed = 2 * (feat_tile_bytes + out_tile_bytes + resident_bytes)
    vmem_limit = int(min(max(2 * needed, 16 * 1024 * 1024), 48 * 1024 * 1024))

    flops = 2 * Bp * C * Kpad + Bp * HW * C
    bytes_accessed = (feat.size * feat.dtype.itemsize
                      + Wp.size * Wp.dtype.itemsize
                      + bp.size * bp.dtype.itemsize
                      + Bp * Kpad * 4)

    out = pl.pallas_call(
        functools.partial(_ft_net_ir_head_kernel, inv_hw=1.0 / HW),
        out_shape=jax.ShapeDtypeStruct((Bp, Kpad), jnp.float32),
        grid_spec=pltpu.PrefetchScalarGridSpec(
            num_scalar_prefetch=0,
            grid=grid,
            in_specs=[
                pl.BlockSpec((tb, HW, C), lambda i: (i, 0, 0)),  # batch tiles
                pl.BlockSpec((C, Kpad), lambda i: (0, 0)),       # resident W
                pl.BlockSpec((1, Kpad), lambda i: (0, 0)),       # resident b
            ],
            out_specs=pl.BlockSpec((tb, Kpad), lambda i: (i, 0)),
        ),
        compiler_params=pltpu.CompilerParams(
            dimension_semantics=("parallel",),
            vmem_limit_bytes=vmem_limit),
        cost_estimate=pl.CostEstimate(
            flops=flops, transcendentals=0, bytes_accessed=bytes_accessed),
    )(feat, Wp, bp)

    return out[:B, :K]


# ----------------------------------------------------------------------------
# Parameter init matching weights_init_kaiming / weights_init_classifier.
# ----------------------------------------------------------------------------
def init_params(key, in_dim=1536, bottleneck=512, class_num=32):
    k1, k2, k3 = jax.random.split(key, 3)
    # Linear(in_dim, bottleneck): kaiming_normal_(a=0, mode='fan_out'), bias=0.
    w1 = jax.random.normal(k1, (in_dim, bottleneck), jnp.float32) * jnp.sqrt(
        2.0 / bottleneck)
    b1 = jnp.zeros((1, bottleneck), jnp.float32)
    # BatchNorm1d(bottleneck): weight ~ N(1.0, 0.02), bias = 0, running stats.
    gamma = 1.0 + 0.02 * jax.random.normal(k2, (1, bottleneck), jnp.float32)
    beta = jnp.zeros((1, bottleneck), jnp.float32)
    mean = jnp.zeros((1, bottleneck), jnp.float32)
    var = jnp.ones((1, bottleneck), jnp.float32)
    # classifier Linear(bottleneck, class_num): weight ~ N(0, 0.001), bias = 0.
    w2 = 0.001 * jax.random.normal(k3, (bottleneck, class_num), jnp.float32)
    b2 = jnp.zeros((1, class_num), jnp.float32)
    return dict(w1=w1, b1=b1, gamma=gamma, beta=beta, mean=mean, var=var,
                w2=w2, b2=b2)


def reference_head(feat_nchw, p):
    """Plain-JAX reference of the un-folded PyTorch head (eval mode)."""
    pooled = jnp.mean(feat_nchw, axis=(2, 3))                 # avgpool + view
    h = pooled @ p["w1"] + p["b1"]
    h = (h - p["mean"]) * jax.lax.rsqrt(p["var"] + BN_EPS) * p["gamma"] + p["beta"]
    return h @ p["w2"] + p["b2"]                               # dropout = id (eval)


if __name__ == "__main__":
    key = jax.random.PRNGKey(0)
    k_feat, k_param = jax.random.split(key)

    B, C, H, W = 2, 1536, 8, 8          # backbone output feature map (NCHW)
    class_num = 32

    # Synthetic backbone features standing in for model_ft(x) output.
    feat_nchw = jax.random.normal(k_feat, (B, C, H, W), jnp.float32)

    params = init_params(k_param, in_dim=C, bottleneck=512, class_num=class_num)
    ref = reference_head(feat_nchw, params)

    # f32 folded weights + f32 features — exact-math check.
    W32, b32 = fold_head_params(params, jnp.float32)
    logits = jax.block_until_ready(
        ft_net_ir_head(feat_nchw, W32, b32, feat_dtype=jnp.float32))
    assert logits.shape == (B, class_num)
    assert jnp.allclose(logits, ref, atol=1e-5, rtol=1e-3)

    # Production path: bf16 features + bf16 folded weight, f32 accumulation.
    Wbf, bbf = fold_head_params(params, jnp.bfloat16)
    logits_bf = jax.block_until_ready(
        ft_net_ir_head(feat_nchw, Wbf, bbf, feat_dtype=jnp.bfloat16))
    assert logits_bf.shape == (B, class_num)
    assert jnp.allclose(logits_bf, ref, atol=1e-3, rtol=5e-2)

    print("KERNEL_OK")
</pallas_src>

<mosaic_0001>
module attributes {stable_mosaic.version = 11 : i64} {
  func.func @_ft_net_ir_head_kernel(%arg0: i32, %arg1: memref<8x64x1536xf32, #tpu.memory_space<vmem>>, %arg2: memref<1536x128xf32, #tpu.memory_space<vmem>>, %arg3: memref<1x128xf32, #tpu.memory_space<vmem>>, %arg4: memref<8x128xf32, #tpu.memory_space<vmem>>) attributes {dimension_semantics = [#tpu.dimension_semantics<parallel>], iteration_bounds = array<i64: 1>, scalar_prefetch = 0 : i64, scratch_operands = 0 : i64, tpu.core_type = #tpu.core_type<tc>, window_params = [{transform_indices = @transform_0, window_bounds = array<i64: 8, 64, 1536>}, {pipeline_mode = #tpu.pipeline_mode<synchronous>, transform_indices = @transform_1, window_bounds = array<i64: 1536, 128>}, {pipeline_mode = #tpu.pipeline_mode<synchronous>, transform_indices = @transform_2, window_bounds = array<i64: 1, 128>}, {transform_indices = @transform_3, window_bounds = array<i64: 8, 128>}]} {
    %c0 = arith.constant 0 : index
    %c0_0 = arith.constant 0 : index
    %c0_1 = arith.constant 0 : index
    %0 = vector.load %arg1[%c0, %c0_0, %c0_1] : memref<8x64x1536xf32, #tpu.memory_space<vmem>>, vector<8x64x1536xf32>
    %cst = arith.constant dense<0.000000e+00> : vector<8x1536xf32>
    %1 = vector.multi_reduction <add>, %0, %cst [1] : vector<8x64x1536xf32> to vector<8x1536xf32>
    %cst_2 = arith.constant 1.562500e-02 : f32
    %2 = vector.broadcast %cst_2 : f32 to vector<8x1536xf32>
    %3 = arith.mulf %1, %2 : vector<8x1536xf32>
    %c0_3 = arith.constant 0 : index
    %c0_4 = arith.constant 0 : index
    %4 = vector.load %arg2[%c0_3, %c0_4] : memref<1536x128xf32, #tpu.memory_space<vmem>>, vector<1536x128xf32>
    %cst_5 = arith.constant dense<0.000000e+00> : vector<8x128xf32>
    %5 = tpu.matmul %3, %4, %cst_5 {dimension_numbers = #tpu.dot_dimension_numbers<[1], [0], [0], [1], [0, 0, 1, 1], [], []>} : vector<8x1536xf32>, vector<1536x128xf32>, vector<8x128xf32> -> vector<8x128xf32>
    %c0_6 = arith.constant 0 : index
    %c0_7 = arith.constant 0 : index
    %6 = vector.load %arg3[%c0_6, %c0_7] : memref<1x128xf32, #tpu.memory_space<vmem>>, vector<1x128xf32>
    %7 = vector.broadcast %6 : vector<1x128xf32> to vector<8x128xf32>
    %8 = arith.addf %5, %7 : vector<8x128xf32>
    %c0_8 = arith.constant 0 : index
    %c0_9 = arith.constant 0 : index
    %9 = vector.load %arg4[%c0_8, %c0_9] : memref<8x128xf32, #tpu.memory_space<vmem>>, vector<8x128xf32>
    tpu.vector_store %arg4[%c0_8, %c0_9], %8 {strides = array<i32>} : memref<8x128xf32, #tpu.memory_space<vmem>>, vector<8x128xf32>,
    return
  }
  func.func @transform_0(%arg0: i32) -> (i32, i32, i32) {
    %c0_i32 = arith.constant 0 : i32
    %c0_i32_0 = arith.constant 0 : i32
    %c0_i32_1 = arith.constant 0 : i32
    return %arg0, %c0_i32, %c0_i32_0 : i32, i32, i32
  }
  func.func @transform_1(%arg0: i32) -> (i32, i32) {
    %c0_i32 = arith.constant 0 : i32
    %c0_i32_0 = arith.constant 0 : i32
    %c0_i32_1 = arith.constant 0 : i32
    return %c0_i32, %c0_i32_0 : i32, i32
  }
  func.func @transform_2(%arg0: i32) -> (i32, i32) {
    %c0_i32 = arith.constant 0 : i32
    %c0_i32_0 = arith.constant 0 : i32
    %c0_i32_1 = arith.constant 0 : i32
    return %c0_i32, %c0_i32_0 : i32, i32
  }
  func.func @transform_3(%arg0: i32) -> (i32, i32) {
    %c0_i32 = arith.constant 0 : i32
    %c0_i32_0 = arith.constant 0 : i32
    return %arg0, %c0_i32 : i32, i32
  }
}

</mosaic_0001>

<bundles_post_ra>
// kernel: tpu_custom_call.1
= control target key start
LH: loop header
LB: loop body
LE: loop exit
PB: predicated region body
PF: predicated region fallthrough
CT: control target
= control target key end

     0   :  { %8 = vsyncpa [#allocation3], 0  ;;  %s3079_s0 = inlined_call_operand.hbm [shape: f32[8,64,1536], index: 0, kind: input, shape index: {}]   ;;  %s3080_s1 = inlined_call_operand.hbm [shape: f32[1536,128], index: 1, kind: input, shape index: {}]   ;;  %s3081_s2 = inlined_call_operand.hbm [shape: f32[1,128], index: 2, kind: input, shape index: {}]   ;;  %s3082_s3 = inlined_call_operand.hbm [shape: f32[8,128], index: 3, kind: output, shape index: {}]  }
   0x1   :  { %9 = vsyncpa [#allocation6], 0  ;;  %s28_s14 = sshll.u32 %s3080_s1, 4  ;;  %s29_s14 = int_to_ptr.hbm [resolvable:$true] %s28_s14 }
   0x2   :  { %10 = vsyncpa [#allocation4], 0  ;;  %s2937_s15 = smov [#allocation5]   ;;  %s15_s19 = sshll.u32 %s3079_s0, 4  ;;  %s16_s19 = int_to_ptr.hbm [resolvable:$true] %s15_s19 }
   0x3   :  { %s30_s16 = sshll.u32 %s2937_s15, 4  ;;  %s2938_s20 = smov 128   ;;  %s31_s16 = int_to_ptr.vmem [resolvable:$true] %s30_s16 }
   0x4   :  { %s2939_s21 = smov 8   ;;  %s2940_s22 = smov [#allocation2]  }
   0x5   :  { %36 = dma.hbm_to_vmem [thread:$0]  %s29_s14, 24576, %s31_s16, [#allocation6], %s2938_s20, %s2938_s20, %s2939_s21  }
   0x6   :  { %s17_s23 = sshll.u32 %s2940_s22, 4  ;;  %s2941_s24 = smov 1536   ;;  %s18_s23 = int_to_ptr.vmem [resolvable:$true] %s17_s23 }
   0x7   :  { %s2942_s25 = smov 96   ;;  %s42_s27 = sshll.u32 %s3081_s2, 4  ;;  %s43_s27 = int_to_ptr.hbm [resolvable:$true] %s42_s27 }
   0x8   :  { %23 = dma.hbm_to_vmem [thread:$0]  %s16_s19, 98304, %s18_s23, [#allocation3], %s2941_s24, %s2941_s24, %s2942_s25  }
   0x9   :  { %s2943_s28 = smov [#allocation7]  }
   0xa   :  { %s44_s29 = sshll.u32 %s2943_s28, 4  ;;  %s45_s29 = int_to_ptr.vmem [resolvable:$true] %s44_s29 }
   0xb   :  { %47 = dma.hbm_to_vmem [thread:$0]  %s43_s27, 16, %s45_s29, [#allocation6]  }
   0xc   :  { %2931 = dma.done.wait [#allocation3], 98304  }
   0xd   :  { %2932 = vsyncadd [#allocation3], 4294868992 }
   0xe   :  { %2933 = dma.done.wait [#allocation6], 24592  }
   0xf   :  { %2934 = vsyncadd [#allocation6], 4294942704  ;;  %v2187_v0 = vld [vmem:[#allocation5 + $0x78] sm:$0xff]  ;;  %v2186_v2 = vld [vmem:[#allocation5 + $0x70] sm:$0xff]  ;;  %vm2464_vm0 = vcmask 1041409   ;;  %vm2466_vm1 = vcmask 1042434  }
  0x10   :  { %v2219_v1 = vld [vmem:[#allocation5 + $0x178] sm:$0xff]  ;;  %2567 = vmatpush.msra.mxu0 %v2187_v0  ;;  %v2218_v4 = vld [vmem:[#allocation5 + $0x170] sm:$0xff]  ;;  %v2185_v6 = vld [vmem:[#allocation5 + $0x68] sm:$0xff]  ;;  %vm2468_vm2 = vcmask 1043459   ;;  %vm2470_vm3 = vcmask 1044484   ;;  %vm2472_vm4 = vcmask 1045509  }
  0x11   :  { %2607 = vmatpush.msra.mxu2 %v2219_v1  ;;  %v2203_v3 = vld [vmem:[#allocation5 + $0xf8] sm:$0xff]  ;;  %v2202_v7 = vld [vmem:[#allocation5 + $0xf0] sm:$0xff]  ;;  %v2217_v8 = vld [vmem:[#allocation5 + $0x168] sm:$0xff]  ;;  %vm2474_vm5 = vcmask 1046534   ;;  %vm2476_vm6 = vcmask 1047559   ;;  %s2944_s0 = smov [#allocation8]  }
  0x12   :  { %v2235_v5 = vld [vmem:[#allocation5 + $0x1f8] sm:$0xff]  ;;  %2587 = vmatpush.msra.mxu1 %v2203_v3  ;;  %2568 = vmatpush.msra.mxu0 %v2186_v2  ;;  %v2234_v9 = vld [vmem:[#allocation5 + $0x1f0] sm:$0xff]  ;;  %v2201_v10 = vld [vmem:[#allocation5 + $0xe8] sm:$0xff]  ;;  %s2813_s2 = sshll.u32 %s2944_s0, 4  ;;  %s2815_s5 = sshll.u32 %s3082_s3, 4  ;;  %s2814_s2 = int_to_ptr.vmem [resolvable:$true] %s2813_s2  ;;  %s2816_s5 = int_to_ptr.hbm [resolvable:$true] %s2815_s5 }
  0x13   :  { %2627 = vmatpush.msra.mxu3 %v2235_v5  ;;  %2608 = vmatpush.msra.mxu2 %v2218_v4  ;;  %v2184_v11 = vld [vmem:[#allocation5 + $0x60] sm:$0xff]  ;;  %v2233_v13 = vld [vmem:[#allocation5 + $0x1e8] sm:$0xff]  ;;  %v2183_v16 = vld [vmem:[#allocation5 + $0x58] sm:$0xff] }
  0x14   :  { %2588 = vmatpush.msra.mxu1 %v2202_v7  ;;  %v2216_v12 = vld [vmem:[#allocation5 + $0x160] sm:$0xff]  ;;  %2569 = vmatpush.msra.mxu0 %v2185_v6  ;;  %v2215_v17 = vld [vmem:[#allocation5 + $0x158] sm:$0xff]  ;;  %v2182_v20 = vld [vmem:[#allocation5 + $0x50] sm:$0xff] }
  0x15   :  { %2628 = vmatpush.msra.mxu3 %v2234_v9  ;;  %2609 = vmatpush.msra.mxu2 %v2217_v8  ;;  %v2200_v14 = vld [vmem:[#allocation5 + $0xe0] sm:$0xff]  ;;  %v2199_v18 = vld [vmem:[#allocation5 + $0xd8] sm:$0xff]  ;;  %v2214_v21 = vld [vmem:[#allocation5 + $0x150] sm:$0xff] }
  0x16   :  { %v2232_v15 = vld [vmem:[#allocation5 + $0x1e0] sm:$0xff]  ;;  %2589 = vmatpush.msra.mxu1 %v2201_v10  ;;  %2570 = vmatpush.msra.mxu0 %v2184_v11  ;;  %v2231_v19 = vld [vmem:[#allocation5 + $0x1d8] sm:$0xff]  ;;  %v2198_v22 = vld [vmem:[#allocation5 + $0xd0] sm:$0xff] }
  0x17   :  { %2629 = vmatpush.msra.mxu3 %v2233_v13  ;;  %2610 = vmatpush.msra.mxu2 %v2216_v12  ;;  %v2230_v23 = vld [vmem:[#allocation5 + $0x1d0] sm:$0xff]  ;;  %v2181_v24 = vld [vmem:[#allocation5 + $0x48] sm:$0xff]  ;;  %v2180_v28 = vld [vmem:[#allocation5 + $0x40] sm:$0xff] }
  0x18   :  { %2590 = vmatpush.msra.mxu1 %v2200_v14  ;;  %2571 = vmatpush.msra.mxu0 %v2183_v16  ;;  %v2213_v25 = vld [vmem:[#allocation5 + $0x148] sm:$0xff]  ;;  %v2212_v29 = vld [vmem:[#allocation5 + $0x140] sm:$0xff]  ;;  %v2179_v32 = vld [vmem:[#allocation5 + $0x38] sm:$0xff] }
  0x19   :  { %2630 = vmatpush.msra.mxu3 %v2232_v15  ;;  %2611 = vmatpush.msra.mxu2 %v2215_v17  ;;  %v2197_v26 = vld [vmem:[#allocation5 + $0xc8] sm:$0xff]  ;;  %v2196_v30 = vld [vmem:[#allocation5 + $0xc0] sm:$0xff]  ;;  %v2211_v33 = vld [vmem:[#allocation5 + $0x138] sm:$0xff] }
  0x1a   :  { %2591 = vmatpush.msra.mxu1 %v2199_v18  ;;  %2572 = vmatpush.msra.mxu0 %v2182_v20  ;;  %v2229_v27 = vld [vmem:[#allocation5 + $0x1c8] sm:$0xff]  ;;  %v2228_v31 = vld [vmem:[#allocation5 + $0x1c0] sm:$0xff]  ;;  %v2195_v34 = vld [vmem:[#allocation5 + $0xb8] sm:$0xff] }
  0x1b   :  { %2631 = vmatpush.msra.mxu3 %v2231_v19  ;;  %2612 = vmatpush.msra.mxu2 %v2214_v21  ;;  %v2227_v35 = vld [vmem:[#allocation5 + $0x1b8] sm:$0xff]  ;;  %v2178_v36 = vld [vmem:[#allocation5 + $0x30] sm:$0xff]  ;;  %v2177_v40 = vld [vmem:[#allocation5 + $0x28] sm:$0xff] }
  0x1c   :  { %2592 = vmatpush.msra.mxu1 %v2198_v22  ;;  %2573 = vmatpush.msra.mxu0 %v2181_v24  ;;  %v2210_v37 = vld [vmem:[#allocation5 + $0x130] sm:$0xff]  ;;  %v2209_v41 = vld [vmem:[#allocation5 + $0x128] sm:$0xff]  ;;  %v2176_v44 = vld [vmem:[#allocation5 + $0x20] sm:$0xff] }
  0x1d   :  { %2632 = vmatpush.msra.mxu3 %v2230_v23  ;;  %2613 = vmatpush.msra.mxu2 %v2213_v25  ;;  %v2194_v38 = vld [vmem:[#allocation5 + $0xb0] sm:$0xff]  ;;  %v2193_v42 = vld [vmem:[#allocation5 + $0xa8] sm:$0xff]  ;;  %v2208_v45 = vld [vmem:[#allocation5 + $0x120] sm:$0xff] }
  0x1e   :  { %2593 = vmatpush.msra.mxu1 %v2197_v26  ;;  %2574 = vmatpush.msra.mxu0 %v2180_v28  ;;  %v2226_v39 = vld [vmem:[#allocation5 + $0x1b0] sm:$0xff]  ;;  %v2225_v43 = vld [vmem:[#allocation5 + $0x1a8] sm:$0xff]  ;;  %v2192_v46 = vld [vmem:[#allocation5 + $0xa0] sm:$0xff] }
  0x1f   :  { %2633 = vmatpush.msra.mxu3 %v2229_v27  ;;  %2614 = vmatpush.msra.mxu2 %v2212_v29  ;;  %v2224_v47 = vld [vmem:[#allocation5 + $0x1a0] sm:$0xff]  ;;  %v2175_v48 = vld [vmem:[#allocation5 + $0x18] sm:$0xff]  ;;  %v2174_v52 = vld [vmem:[#allocation5 + $0x10] sm:$0xff] }
  0x20   :  { %2594 = vmatpush.msra.mxu1 %v2196_v30  ;;  %2575 = vmatpush.msra.mxu0 %v2179_v32  ;;  %v2207_v49 = vld [vmem:[#allocation5 + $0x118] sm:$0xff]  ;;  %v2206_v53 = vld [vmem:[#allocation5 + $0x110] sm:$0xff]  ;;  %v2173_v56 = vld [vmem:[#allocation5 + $0x8] sm:$0xff] }
  0x21   :  { %2634 = vmatpush.msra.mxu3 %v2228_v31  ;;  %2615 = vmatpush.msra.mxu2 %v2211_v33  ;;  %v2191_v50 = vld [vmem:[#allocation5 + $0x98] sm:$0xff]  ;;  %v2190_v54 = vld [vmem:[#allocation5 + $0x90] sm:$0xff]  ;;  %v2205_v57 = vld [vmem:[#allocation5 + $0x108] sm:$0xff] }
  0x22   :  { %2595 = vmatpush.msra.mxu1 %v2195_v34  ;;  %2576 = vmatpush.msra.mxu0 %v2178_v36  ;;  %v2223_v51 = vld [vmem:[#allocation5 + $0x198] sm:$0xff]  ;;  %v2222_v55 = vld [vmem:[#allocation5 + $0x190] sm:$0xff]  ;;  %v2189_v58 = vld [vmem:[#allocation5 + $0x88] sm:$0xff] }
  0x23   :  { %2635 = vmatpush.msra.mxu3 %v2227_v35  ;;  %2616 = vmatpush.msra.mxu2 %v2210_v37  ;;  %v2221_v59 = vld [vmem:[#allocation5 + $0x188] sm:$0xff]  ;;  %v2172_v60 = vld [vmem:[#allocation5] sm:$0xff]  ;;  %v2251_v62 = vld [vmem:[#allocation5 + $0x278] sm:$0xff] }
  0x24   :  { %2596 = vmatpush.msra.mxu1 %v2194_v38  ;;  %2577 = vmatpush.msra.mxu0 %v2177_v40  ;;  %v2204_v61 = vld [vmem:[#allocation5 + $0x100] sm:$0xff]  ;;  %v2283_v63 = vld [vmem:[#allocation5 + $0x378] sm:$0xff]  ;;  %v2250_v2 = vld [vmem:[#allocation5 + $0x270] sm:$0xff] }
  0x25   :  { %2636 = vmatpush.msra.mxu3 %v2226_v39  ;;  %2617 = vmatpush.msra.mxu2 %v2209_v41  ;;  %v2188_v0 = vld [vmem:[#allocation5 + $0x80] sm:$0xff]  ;;  %v2267_v3 = vld [vmem:[#allocation5 + $0x2f8] sm:$0xff]  ;;  %v2282_v4 = vld [vmem:[#allocation5 + $0x370] sm:$0xff] }
  0x26   :  { %2597 = vmatpush.msra.mxu1 %v2193_v42  ;;  %2578 = vmatpush.msra.mxu0 %v2176_v44  ;;  %v2220_v1 = vld [vmem:[#allocation5 + $0x180] sm:$0xff]  ;;  %v2299_v5 = vld [vmem:[#allocation5 + $0x3f8] sm:$0xff]  ;;  %v2249_v6 = vld [vmem:[#allocation5 + $0x268] sm:$0xff] }
  0x27   :  { %2637 = vmatpush.msra.mxu3 %v2225_v43  ;;  %2618 = vmatpush.msra.mxu2 %v2208_v45  ;;  %v2266_v7 = vld [vmem:[#allocation5 + $0x2f0] sm:$0xff]  ;;  %v2281_v8 = vld [vmem:[#allocation5 + $0x368] sm:$0xff]  ;;  %v2248_v10 = vld [vmem:[#allocation5 + $0x260] sm:$0xff] }
  0x28   :  { %2598 = vmatpush.msra.mxu1 %v2192_v46  ;;  %2579 = vmatpush.msra.mxu0 %v2175_v48  ;;  %v2298_v9 = vld [vmem:[#allocation5 + $0x3f0] sm:$0xff]  ;;  %v2265_v11 = vld [vmem:[#allocation5 + $0x2e8] sm:$0xff]  ;;  %v2280_v12 = vld [vmem:[#allocation5 + $0x360] sm:$0xff] }
  0x29   :  { %2638 = vmatpush.msra.mxu3 %v2224_v47  ;;  %2619 = vmatpush.msra.mxu2 %v2207_v49  ;;  %v2297_v13 = vld [vmem:[#allocation5 + $0x3e8] sm:$0xff]  ;;  %v2247_v14 = vld [vmem:[#allocation5 + $0x258] sm:$0xff]  ;;  %v2264_v15 = vld [vmem:[#allocation5 + $0x2e0] sm:$0xff] }
  0x2a   :  { %2599 = vmatpush.msra.mxu1 %v2191_v50  ;;  %2580 = vmatpush.msra.mxu0 %v2174_v52  ;;  %v2279_v16 = vld [vmem:[#allocation5 + $0x358] sm:$0xff]  ;;  %v2296_v17 = vld [vmem:[#allocation5 + $0x3e0] sm:$0xff]  ;;  %v2246_v18 = vld [vmem:[#allocation5 + $0x250] sm:$0xff] }
  0x2b   :  { %2639 = vmatpush.msra.mxu3 %v2223_v51  ;;  %2620 = vmatpush.msra.mxu2 %v2206_v53  ;;  %v2263_v19 = vld [vmem:[#allocation5 + $0x2d8] sm:$0xff]  ;;  %v2278_v20 = vld [vmem:[#allocation5 + $0x350] sm:$0xff]  ;;  %v2245_v22 = vld [vmem:[#allocation5 + $0x248] sm:$0xff] }
  0x2c   :  { %2600 = vmatpush.msra.mxu1 %v2190_v54  ;;  %2581 = vmatpush.msra.mxu0 %v2173_v56  ;;  %v2295_v21 = vld [vmem:[#allocation5 + $0x3d8] sm:$0xff]  ;;  %v2262_v23 = vld [vmem:[#allocation5 + $0x2d0] sm:$0xff]  ;;  %v2277_v24 = vld [vmem:[#allocation5 + $0x348] sm:$0xff] }
  0x2d   :  { %2640 = vmatpush.msra.mxu3 %v2222_v55  ;;  %2621 = vmatpush.msra.mxu2 %v2205_v57  ;;  %v2294_v25 = vld [vmem:[#allocation5 + $0x3d0] sm:$0xff]  ;;  %v2244_v26 = vld [vmem:[#allocation5 + $0x240] sm:$0xff]  ;;  %v2261_v27 = vld [vmem:[#allocation5 + $0x2c8] sm:$0xff] }
  0x2e   :  { %2601 = vmatpush.msra.mxu1 %v2189_v58  ;;  %2582 = vmatpush.msra.mxu0 %v2172_v60  ;;  %v2276_v28 = vld [vmem:[#allocation5 + $0x340] sm:$0xff]  ;;  %v2293_v32 = vld [vmem:[#allocation5 + $0x3c8] sm:$0xff]  ;;  %v2243_v33 = vld [vmem:[#allocation5 + $0x238] sm:$0xff] }
  0x2f   :  { %2641 = vmatpush.msra.mxu3 %v2221_v59  ;;  %2622 = vmatpush.msra.mxu2 %v2204_v61  ;;  %v60_v29 = vld [vmem:[#allocation2] sm:$0xff]  ;;  %v2275_v36 = vld [vmem:[#allocation5 + $0x338] sm:$0xff]  ;;  %v2242_v40 = vld [vmem:[#allocation5 + $0x230] sm:$0xff] }
  0x30   :  { %2647 = vmatpush.msrb.mxu0 %v2251_v62  ;;  %2602 = vmatpush.msra.mxu1 %v2188_v0  ;;  %v72_v30 = vld [vmem:[#allocation2 + $0x60] sm:$0xff]  ;;  %v2259_v41 = vld [vmem:[#allocation5 + $0x2b8] sm:$0xff]  ;;  %v2274_v45 = vld [vmem:[#allocation5 + $0x330] sm:$0xff] }
  0x31   :  { %2687 = vmatpush.msrb.mxu2 %v2283_v63  ;;  %2642 = vmatpush.msra.mxu3 %v2220_v1  ;;  %v84_v31 = vld [vmem:[#allocation2 + $0xc0] sm:$0xff]  ;;  %v828_v35 = vadd.f32 %v72_v30, %v60_v29  ;;  %v2291_v46 = vld [vmem:[#allocation5 + $0x3b8] sm:$0xff]  ;;  %v2241_v49 = vld [vmem:[#allocation5 + $0x228] sm:$0xff] }
  0x32   :  { %2648 = vmatpush.msrb.mxu0 %v2250_v2  ;;  %2667 = vmatpush.msrb.mxu1 %v2267_v3  ;;  %v2260_v34 = vld [vmem:[#allocation5 + $0x2c0] sm:$0xff]  ;;  %v2258_v50 = vld [vmem:[#allocation5 + $0x2b0] sm:$0xff]  ;;  %v2273_v55 = vld [vmem:[#allocation5 + $0x328] sm:$0xff] }
  0x33   :  { %2688 = vmatpush.msrb.mxu2 %v2282_v4  ;;  %2707 = vmatpush.msrb.mxu3 %v2299_v5  ;;  %v2292_v37 = vld [vmem:[#allocation5 + $0x3c0] sm:$0xff]  ;;  %v829_v44 = vadd.f32 %v828_v35, %v84_v31  ;;  %v2290_v56 = vld [vmem:[#allocation5 + $0x3b0] sm:$0xff]  ;;  %v2257_v62 = vld [vmem:[#allocation5 + $0x2a8] sm:$0xff] }
  0x34   :  { %2649 = vmatpush.msrb.mxu0 %v2249_v6  ;;  %2668 = vmatpush.msrb.mxu1 %v2266_v7  ;;  %v96_v38 = vld [vmem:[#allocation2 + $0x120] sm:$0xff]  ;;  %v2289_v4 = vld [vmem:[#allocation5 + $0x3a8] sm:$0xff]  ;;  %v2270_v31 = vld [vmem:[#allocation5 + $0x310] sm:$0xff] }
  0x35   :  { %2689 = vmatpush.msrb.mxu2 %v2281_v8  ;;  %2708 = vmatpush.msrb.mxu3 %v2298_v9  ;;  %v156_v39 = vld [vmem:[#allocation2 + $0x300] sm:$0xff]  ;;  %v830_v54 = vadd.f32 %v829_v44, %v96_v38 }
  0x36   :  { %2650 = vmatpush.msrb.mxu0 %v2248_v10  ;;  %2669 = vmatpush.msrb.mxu1 %v2265_v11  ;;  %v168_v42 = vld [vmem:[#allocation2 + $0x360] sm:$0xff]  ;;  %v2239_v10 = vld [vmem:[#allocation5 + $0x218] sm:$0xff] }
  0x37   :  { %2690 = vmatpush.msrb.mxu2 %v2280_v12  ;;  %2709 = vmatpush.msrb.mxu3 %v2297_v13  ;;  %v180_v43 = vld [vmem:[#allocation2 + $0x3c0] sm:$0xff]  ;;  %v984_v48 = vadd.f32 %v168_v42, %v156_v39  ;;  %v2237_v39 = vld [vmem:[#allocation5 + $0x208] sm:$0xff] }
  0x38   :  { %2651 = vmatpush.msrb.mxu0 %v2247_v14  ;;  %2670 = vmatpush.msrb.mxu1 %v2264_v15  ;;  %v108_v47 = vld [vmem:[#allocation2 + $0x180] sm:$0xff] }
  0x39   :  { %2691 = vmatpush.msrb.mxu2 %v2279_v16  ;;  %2710 = vmatpush.msrb.mxu3 %v2296_v17  ;;  %v192_v51 = vld [vmem:[#allocation2 + $0x420] sm:$0xff]  ;;  %v985_v59 = vadd.f32 %v984_v48, %v180_v43  ;;  %v831_v2 = vadd.f32 %v830_v54, %v108_v47  ;;  %v2271_v17 = vld [vmem:[#allocation5 + $0x318] sm:$0xff]  ;;  %v2286_v47 = vld [vmem:[#allocation5 + $0x390] sm:$0xff] }
  0x3a   :  { %2652 = vmatpush.msrb.mxu0 %v2246_v18  ;;  %2671 = vmatpush.msrb.mxu1 %v2263_v19  ;;  %v252_v52 = vld [vmem:[#allocation2 + $0x600] sm:$0xff]  ;;  %v2253_v54 = vld [vmem:[#allocation5 + $0x288] sm:$0xff] }
  0x3b   :  { %2692 = vmatpush.msrb.mxu2 %v2278_v20  ;;  %2711 = vmatpush.msrb.mxu3 %v2295_v21  ;;  %v264_v53 = vld [vmem:[#allocation2 + $0x660] sm:$0xff]  ;;  %v986_v8 = vadd.f32 %v985_v59, %v192_v51 }
  0x3c   :  { %2653 = vmatpush.msrb.mxu0 %v2245_v22  ;;  %2672 = vmatpush.msrb.mxu1 %v2262_v23  ;;  %v120_v57 = vld [vmem:[#allocation2 + $0x1e0] sm:$0xff]  ;;  %v1140_v60 = vadd.f32 %v264_v53, %v252_v52 }
  0x3d   :  { %2693 = vmatpush.msrb.mxu2 %v2277_v24  ;;  %2712 = vmatpush.msrb.mxu3 %v2294_v25  ;;  %v276_v58 = vld [vmem:[#allocation2 + $0x6c0] sm:$0xff]  ;;  %v832_v15 = vadd.f32 %v831_v2, %v120_v57  ;;  %v2238_v24 = vld [vmem:[#allocation5 + $0x210] sm:$0xff]  ;;  %v2255_v25 = vld [vmem:[#allocation5 + $0x298] sm:$0xff] }
  0x3e   :  { %2654 = vmatpush.msrb.mxu0 %v2244_v26  ;;  %2673 = vmatpush.msrb.mxu1 %v2261_v27  ;;  %v2240_v61 = vld [vmem:[#allocation5 + $0x220] sm:$0xff]  ;;  %v1141_v9 = vadd.f32 %v1140_v60, %v276_v58 }
  0x3f   :  { %2694 = vmatpush.msrb.mxu2 %v2276_v28  ;;  %2713 = vmatpush.msrb.mxu3 %v2293_v32  ;;  %v132_v63 = vld [vmem:[#allocation2 + $0x240] sm:$0xff]  ;;  %v2287_v32 = vld [vmem:[#allocation5 + $0x398] sm:$0xff] }
  0x40   :  { %2655 = vmatpush.msrb.mxu0 %v2243_v33  ;;  %2674 = vmatpush.msrb.mxu1 %v2260_v34  ;;  %v204_v0 = vld [vmem:[#allocation2 + $0x480] sm:$0xff]  ;;  %v833_v29 = vadd.f32 %v832_v15, %v132_v63 }
  0x41   :  { %2695 = vmatpush.msrb.mxu2 %v2275_v36  ;;  %2714 = vmatpush.msrb.mxu3 %v2292_v37  ;;  %v288_v1 = vld [vmem:[#allocation2 + $0x720] sm:$0xff]  ;;  %v987_v22 = vadd.f32 %v986_v8, %v204_v0 }
  0x42   :  { %2656 = vmatpush.msrb.mxu0 %v2242_v40  ;;  %2675 = vmatpush.msrb.mxu1 %v2259_v41  ;;  %v2272_v3 = vld [vmem:[#allocation5 + $0x320] sm:$0xff]  ;;  %v1142_v23 = vadd.f32 %v1141_v9, %v288_v1  ;;  %v2254_v40 = vld [vmem:[#allocation5 + $0x290] sm:$0xff]  ;;  %v2285_v9 = vld [vmem:[#allocation5 + $0x388] sm:$0xff] }
  0x43   :  { %v348_v5 = vld [vmem:[#allocation2 + $0x900] sm:$0xff]  ;;  %2696 = vmatpush.msrb.mxu2 %v2274_v45  ;;  %2715 = vmatpush.msrb.mxu3 %v2291_v46  ;;  %v2269_v46 = vld [vmem:[#allocation5 + $0x308] sm:$0xff] }
  0x44   :  { %v360_v6 = vld [vmem:[#allocation2 + $0x960] sm:$0xff]  ;;  %2657 = vmatpush.msrb.mxu0 %v2241_v49  ;;  %2676 = vmatpush.msrb.mxu1 %v2258_v50 }
  0x45   :  { %v372_v7 = vld [vmem:[#allocation2 + $0x9c0] sm:$0xff]  ;;  %v1296_v16 = vadd.f32 %v360_v6, %v348_v5  ;;  %2697 = vmatpush.msrb.mxu2 %v2273_v55  ;;  %2716 = vmatpush.msrb.mxu3 %v2290_v56 }
  0x46   :  { %v2256_v11 = vld [vmem:[#allocation5 + $0x2a0] sm:$0xff]  ;;  %2658 = vmatpush.msrb.mxu0 %v2240_v61  ;;  %2677 = vmatpush.msrb.mxu1 %v2257_v62 }
  0x47   :  { %v144_v12 = vld [vmem:[#allocation2 + $0x2a0] sm:$0xff]  ;;  %v1297_v30 = vadd.f32 %v1296_v16, %v372_v7  ;;  %2698 = vmatpush.msrb.mxu2 %v2272_v3  ;;  %2717 = vmatpush.msrb.mxu3 %v2289_v4 }
  0x48   :  { %v216_v13 = vld [vmem:[#allocation2 + $0x4e0] sm:$0xff]  ;;  %v834_v44 = vadd.f32 %v833_v29, %v144_v12  ;;  %2659 = vmatpush.msrb.mxu0 %v2239_v10  ;;  %2678 = vmatpush.msrb.mxu1 %v2256_v11 }
  0x49   :  { %v300_v14 = vld [vmem:[#allocation2 + $0x780] sm:$0xff]  ;;  %v988_v36 = vadd.f32 %v987_v22, %v216_v13  ;;  %2699 = vmatpush.msrb.mxu2 %v2271_v17 }
  0x4a   :  { %v2288_v18 = vld [vmem:[#allocation5 + $0x3a0] sm:$0xff]  ;;  %v1143_v37 = vadd.f32 %v1142_v23, %v300_v14  ;;  %v835_v58 = vrot.slane %v834_v44, 4  ;;  %2660 = vmatpush.msrb.mxu0 %v2238_v24  ;;  %2679 = vmatpush.msrb.mxu1 %v2255_v25 }
  0x4b   :  { %v228_v19 = vld [vmem:[#allocation2 + $0x540] sm:$0xff]  ;;  %2718 = vmatpush.msrb.mxu3 %v2288_v18  ;;  %2700 = vmatpush.msrb.mxu2 %v2270_v31 }
  0x4c   :  { %v384_v20 = vld [vmem:[#allocation2 + $0xa20] sm:$0xff]  ;;  %v989_v50 = vadd.f32 %v988_v36, %v228_v19  ;;  %v836_v6 = vadd.f32 %v835_v58, %v834_v44  ;;  %2661 = vmatpush.msrb.mxu0 %v2237_v39  ;;  %2680 = vmatpush.msrb.mxu1 %v2254_v40 }
  0x4d   :  { %v444_v21 = vld [vmem:[#allocation2 + $0xc00] sm:$0xff]  ;;  %v1298_v45 = vadd.f32 %v1297_v30, %v384_v20  ;;  %2719 = vmatpush.msrb.mxu3 %v2287_v32  ;;  %2701 = vmatpush.msrb.mxu2 %v2269_v46 }
  0x4e   :  { %v312_v26 = vld [vmem:[#allocation2 + $0x7e0] sm:$0xff]  ;;  %v837_v18 = vrot.slane %v836_v6, 2  ;;  %2681 = vmatpush.msrb.mxu1 %v2253_v54 }
  0x4f   :  { %v456_v27 = vld [vmem:[#allocation2 + $0xc60] sm:$0xff]  ;;  %v1144_v51 = vadd.f32 %v1143_v37, %v312_v26  ;;  %2720 = vmatpush.msrb.mxu3 %v2286_v47 }
  0x50   :  { %v468_v28 = vld [vmem:[#allocation2 + $0xcc0] sm:$0xff]  ;;  %v1452_v38 = vadd.f32 %v456_v27, %v444_v21  ;;  %v838_v30 = vadd.f32 %v837_v18, %v836_v6  ;;  %v98_v18 = vld [vmem:[#allocation2 + $0x130] sm:$0xff] }
  0x51   :  { %v240_v33 = vld [vmem:[#allocation2 + $0x5a0] sm:$0xff]  ;;  %2721 = vmatpush.msrb.mxu3 %v2285_v9 }
  0x52   :  { %v324_v34 = vld [vmem:[#allocation2 + $0x840] sm:$0xff]  ;;  %v1453_v52 = vadd.f32 %v1452_v38, %v468_v28  ;;  %v990_v0 = vadd.f32 %v989_v50, %v240_v33  ;;  %v839_v40 = vrot.slane %v838_v30, 1 }
  0x53   :  { %v396_v35 = vld [vmem:[#allocation2 + $0xa80] sm:$0xff]  ;;  %v1145_v1 = vadd.f32 %v1144_v51, %v324_v34 }
  0x54   :  { %v480_v41 = vld [vmem:[#allocation2 + $0xd20] sm:$0xff]  ;;  %v1299_v59 = vadd.f32 %v1298_v45, %v396_v35  ;;  %v991_v12 = vrot.slane %v990_v0, 4  ;;  %v840_v51 = vadd.f32 %v839_v40, %v838_v30  ;;  %v110_v30 = vld [vmem:[#allocation2 + $0x190] sm:$0xff] }
  0x55   :  { %v540_v42 = vld [vmem:[#allocation2 + $0xf00] sm:$0xff]  ;;  %v1454_v2 = vadd.f32 %v1453_v52, %v480_v41 }
  0x56   :  { %v552_v43 = vld [vmem:[#allocation2 + $0xf60] sm:$0xff]  ;;  %v992_v24 = vadd.f32 %v991_v12, %v990_v0 }
  0x57   :  { %v408_v48 = vld [vmem:[#allocation2 + $0xae0] sm:$0xff]  ;;  %v1608_v60 = vadd.f32 %v552_v43, %v540_v42 }
  0x58   :  { %v564_v49 = vld [vmem:[#allocation2 + $0xfc0] sm:$0xff]  ;;  %v1300_v7 = vadd.f32 %v1299_v59, %v408_v48  ;;  %v993_v35 = vrot.slane %v992_v24, 2 }
  0x59   :  { %v2236_v53 = vld [vmem:[#allocation5 + $0x200] sm:$0xff]  ;;  %v1609_v8 = vadd.f32 %v1608_v60, %v564_v49  ;;  %v62_v60 = vld [vmem:[#allocation2 + $0x10] sm:$0xff] }
  0x5a   :  { %v336_v55 = vld [vmem:[#allocation2 + $0x8a0] sm:$0xff]  ;;  %2662 = vmatpush.msrb.mxu0 %v2236_v53  ;;  %v994_v46 = vadd.f32 %v993_v35, %v992_v24  ;;  %v254_v35 = vld [vmem:[#allocation2 + $0x610] sm:$0xff] }
  0x5b   :  { %v420_v56 = vld [vmem:[#allocation2 + $0xb40] sm:$0xff]  ;;  %v1146_v13 = vadd.f32 %v1145_v1, %v336_v55 }
  0x5c   :  { %v492_v57 = vld [vmem:[#allocation2 + $0xd80] sm:$0xff]  ;;  %v1301_v19 = vadd.f32 %v1300_v7, %v420_v56  ;;  %v995_v56 = vrot.slane %v994_v46, 1 }
  0x5d   :  { %v576_v61 = vld [vmem:[#allocation2 + $0x1020] sm:$0xff]  ;;  %v1455_v14 = vadd.f32 %v1454_v2, %v492_v57  ;;  %v1147_v25 = vrot.slane %v1146_v13, 4  ;;  %v2076_v2 = vmul.f32 0.015625, %v840_v51  ;;  %v134_v51 = vld [vmem:[#allocation2 + $0x250] sm:$0xff] }
  0x5e   :  { %v636_v62 = vld [vmem:[#allocation2 + $0x1200] sm:$0xff]  ;;  %v1610_v20 = vadd.f32 %v1609_v8, %v576_v61  ;;  %v74_v61 = vld [vmem:[#allocation2 + $0x70] sm:$0xff] }
  0x5f   :  { %v648_v63 = vld [vmem:[#allocation2 + $0x1260] sm:$0xff]  ;;  %v1148_v36 = vadd.f32 %v1147_v25, %v1146_v13  ;;  %v86_v8 = vld [vmem:[#allocation2 + $0xd0] sm:$0xff]  ;;  %v854_v12 = vadd.f32 %v74_v61, %v62_v60 }
  0x60   :  { %v2268_v3 = vld [vmem:[#allocation5 + $0x300] sm:$0xff]  ;;  %v1764_v15 = vadd.f32 %v648_v63, %v636_v62  ;;  %v290_v60 = vld [vmem:[#allocation2 + $0x730] sm:$0xff] }
  0x61   :  { %v504_v4 = vld [vmem:[#allocation2 + $0xde0] sm:$0xff]  ;;  %2702 = vmatpush.msrb.mxu2 %v2268_v3  ;;  %v1149_v47 = vrot.slane %v1148_v36, 2  ;;  %v855_v24 = vadd.f32 %v854_v12, %v86_v8  ;;  %v446_v8 = vld [vmem:[#allocation2 + $0xc10] sm:$0xff] }
  0x62   :  { %v660_v5 = vld [vmem:[#allocation2 + $0x12c0] sm:$0xff]  ;;  %v1456_v26 = vadd.f32 %v1455_v14, %v504_v4  ;;  %v996_v4 = vadd.f32 %v995_v56, %v994_v46  ;;  %v194_v46 = vld [vmem:[#allocation2 + $0x430] sm:$0xff] }
  0x63   :  { %v432_v10 = vld [vmem:[#allocation2 + $0xba0] sm:$0xff]  ;;  %v1765_v27 = vadd.f32 %v1764_v15, %v660_v5  ;;  %v1150_v57 = vadd.f32 %v1149_v47, %v1148_v36  ;;  %v266_v36 = vld [vmem:[#allocation2 + $0x670] sm:$0xff] }
  0x64   :  { %v588_v11 = vld [vmem:[#allocation2 + $0x1080] sm:$0xff]  ;;  %v1302_v31 = vadd.f32 %v1301_v19, %v432_v10  ;;  %v278_v47 = vld [vmem:[#allocation2 + $0x6d0] sm:$0xff] }
  0x65   :  { %v516_v16 = vld [vmem:[#allocation2 + $0xe40] sm:$0xff]  ;;  %v1611_v32 = vadd.f32 %v1610_v20, %v588_v11  ;;  %v1151_v5 = vrot.slane %v1150_v57, 1 }
  0x66   :  { %v672_v17 = vld [vmem:[#allocation2 + $0x1320] sm:$0xff]  ;;  %v1457_v37 = vadd.f32 %v1456_v26, %v516_v16  ;;  %v1303_v41 = vrot.slane %v1302_v31, 4 }
  0x67   :  { %v600_v21 = vld [vmem:[#allocation2 + $0x10e0] sm:$0xff]  ;;  %v1766_v38 = vadd.f32 %v1765_v27, %v672_v17  ;;  %v1152_v14 = vadd.f32 %v1151_v5, %v1150_v57  ;;  %v2088_v17 = vmul.f32 0.015625, %v996_v4 }
  0x68   :  { %v732_v22 = vld [vmem:[#allocation2 + $0x1500] sm:$0xff]  ;;  %v1612_v42 = vadd.f32 %v1611_v32, %v600_v21  ;;  %v1304_v52 = vadd.f32 %v1303_v41, %v1302_v31  ;;  %v122_v41 = vld [vmem:[#allocation2 + $0x1f0] sm:$0xff] }
  0x69   :  { %v744_v23 = vld [vmem:[#allocation2 + $0x1560] sm:$0xff] }
  0x6a   :  { %v528_v28 = vld [vmem:[#allocation2 + $0xea0] sm:$0xff]  ;;  %v1920_v43 = vadd.f32 %v744_v23, %v732_v22  ;;  %v1305_v63 = vrot.slane %v1304_v52, 2  ;;  %v158_v22 = vld [vmem:[#allocation2 + $0x310] sm:$0xff] }
  0x6b   :  { %v684_v29 = vld [vmem:[#allocation2 + $0x1380] sm:$0xff]  ;;  %v1458_v48 = vadd.f32 %v1457_v37, %v528_v28  ;;  %v170_v23 = vld [vmem:[#allocation2 + $0x370] sm:$0xff]  ;;  %v2100_v28 = vmul.f32 0.015625, %v1152_v14  ;;  %v856_v37 = vadd.f32 %v855_v24, %v98_v18 }
  0x6c   :  { %v612_v33 = vld [vmem:[#allocation2 + $0x1140] sm:$0xff]  ;;  %v1767_v49 = vadd.f32 %v1766_v38, %v684_v29  ;;  %v1306_v9 = vadd.f32 %v1305_v63, %v1304_v52  ;;  %v2465_v29 = vsel %vm2464_vm0, %v2088_v17, %v2076_v2  ;;  %v350_v52 = vld [vmem:[#allocation2 + $0x910] sm:$0xff] }
  0x6d   :  { %v756_v34 = vld [vmem:[#allocation2 + $0x15c0] sm:$0xff]  ;;  %v1613_v53 = vadd.f32 %v1612_v42, %v612_v33  ;;  %v1459_v58 = vrot.slane %v1458_v48, 4  ;;  %v2467_v40 = vsel %vm2466_vm1, %v2100_v28, %v2465_v29  ;;  %v1010_v42 = vadd.f32 %v170_v23, %v158_v22  ;;  %v374_v2 = vld [vmem:[#allocation2 + $0x9d0] sm:$0xff] }
  0x6e   :  { %v696_v39 = vld [vmem:[#allocation2 + $0x13e0] sm:$0xff]  ;;  %v1921_v54 = vadd.f32 %v1920_v43, %v756_v34  ;;  %v1307_v19 = vrot.slane %v1306_v9, 1  ;;  %v182_v34 = vld [vmem:[#allocation2 + $0x3d0] sm:$0xff] }
  0x6f   :  { %v624_v44 = vld [vmem:[#allocation2 + $0x11a0] sm:$0xff]  ;;  %v1768_v59 = vadd.f32 %v1767_v49, %v696_v39  ;;  %v1460_v6 = vadd.f32 %v1459_v58, %v1458_v48  ;;  %v857_v48 = vadd.f32 %v856_v37, %v110_v30  ;;  %v386_v14 = vld [vmem:[#allocation2 + $0xa30] sm:$0xff] }
  0x70   :  { %v768_v45 = vld [vmem:[#allocation2 + $0x1620] sm:$0xff]  ;;  %v1614_v0 = vadd.f32 %v1613_v53, %v624_v44  ;;  %v1308_v31 = vadd.f32 %v1307_v19, %v1306_v9  ;;  %v362_v53 = vld [vmem:[#allocation2 + $0x970] sm:$0xff] }
  0x71   :  { %v708_v50 = vld [vmem:[#allocation2 + $0x1440] sm:$0xff]  ;;  %v1922_v1 = vadd.f32 %v1921_v54, %v768_v45  ;;  %v1461_v15 = vrot.slane %v1460_v6, 2  ;;  %v1011_v54 = vadd.f32 %v1010_v42, %v182_v34  ;;  %v858_v61 = vadd.f32 %v857_v48, %v122_v41  ;;  %v458_v9 = vld [vmem:[#allocation2 + $0xc70] sm:$0xff] }
  0x72   :  { %v780_v55 = vld [vmem:[#allocation2 + $0x1680] sm:$0xff]  ;;  %v1769_v7 = vadd.f32 %v1768_v59, %v708_v50  ;;  %v1615_v10 = vrot.slane %v1614_v0, 4  ;;  %v2112_v45 = vmul.f32 0.015625, %v1308_v31  ;;  %v206_v59 = vld [vmem:[#allocation2 + $0x490] sm:$0xff]  ;;  %v1478_v30 = vadd.f32 %v458_v9, %v446_v8 }
  0x73   :  { %v720_v62 = vld [vmem:[#allocation2 + $0x14a0] sm:$0xff]  ;;  %v1923_v11 = vadd.f32 %v1922_v1, %v780_v55  ;;  %v1462_v26 = vadd.f32 %v1461_v15, %v1460_v6  ;;  %v1166_v55 = vadd.f32 %v266_v36, %v254_v35  ;;  %v218_v1 = vld [vmem:[#allocation2 + $0x4f0] sm:$0xff] }
  0x74   :  { %v792_v3 = vld [vmem:[#allocation2 + $0x16e0] sm:$0xff]  ;;  %v1770_v16 = vadd.f32 %v1769_v7, %v720_v62  ;;  %v1616_v20 = vadd.f32 %v1615_v10, %v1614_v0  ;;  %v2469_v58 = vsel %vm2468_vm2, %v2112_v45, %v2467_v40  ;;  %v146_v0 = vld [vmem:[#allocation2 + $0x2b0] sm:$0xff]  ;;  %v859_v10 = vadd.f32 %v858_v61, %v134_v51 }
  0x75   :  { %v804_v13 = vld [vmem:[#allocation2 + $0x1740] sm:$0xff]  ;;  %v1924_v21 = vadd.f32 %v1923_v11, %v792_v3  ;;  %v1463_v38 = vrot.slane %v1462_v26, 1  ;;  %v1012_v3 = vadd.f32 %v1011_v54, %v194_v46  ;;  %v1167_v4 = vadd.f32 %v1166_v55, %v278_v47  ;;  %v302_v7 = vld [vmem:[#allocation2 + $0x790] sm:$0xff] }
  0x76   :  { %v816_v25 = vld [vmem:[#allocation2 + $0x17a0] sm:$0xff]  ;;  %v1771_v27 = vrot.slane %v1770_v16, 4  ;;  %v1617_v32 = vrot.slane %v1616_v20, 2  ;;  %v1322_v11 = vadd.f32 %v362_v53, %v350_v52  ;;  %v230_v19 = vld [vmem:[#allocation2 + $0x550] sm:$0xff]  ;;  %v860_v22 = vadd.f32 %v859_v10, %v146_v0 }
  0x77   :  { %v1925_v33 = vadd.f32 %v1924_v21, %v804_v13  ;;  %v1464_v49 = vadd.f32 %v1463_v38, %v1462_v26  ;;  %v1013_v15 = vadd.f32 %v1012_v3, %v206_v59  ;;  %v470_v21 = vld [vmem:[#allocation2 + $0xcd0] sm:$0xff] }
  0x78   :  { %v1772_v39 = vadd.f32 %v1771_v27, %v1770_v16  ;;  %v1618_v43 = vadd.f32 %v1617_v32, %v1616_v20  ;;  %v1168_v16 = vadd.f32 %v1167_v4, %v290_v60  ;;  %v314_v20 = vld [vmem:[#allocation2 + $0x7f0] sm:$0xff]  ;;  %v1323_v23 = vadd.f32 %v1322_v11, %v374_v2 }
  0x79   :  { %v1926_v44 = vadd.f32 %v1925_v33, %v816_v25  ;;  %v2124_v63 = vmul.f32 0.015625, %v1464_v49  ;;  %v398_v25 = vld [vmem:[#allocation2 + $0xa90] sm:$0xff]  ;;  %v1014_v28 = vadd.f32 %v1013_v15, %v218_v1  ;;  %v861_v36 = vrot.slane %v860_v22, 4 }
  0x7a   :  { %v1773_v50 = vrot.slane %v1772_v39, 2  ;;  %v1619_v56 = vrot.slane %v1618_v43, 1  ;;  %v542_v26 = vld [vmem:[#allocation2 + $0xf10] sm:$0xff]  ;;  %v1169_v29 = vadd.f32 %v1168_v16, %v302_v7  ;;  %v1324_v37 = vadd.f32 %v1323_v23, %v386_v14 }
  0x7b   :  { %v1927_v57 = vrot.slane %v1926_v44, 4  ;;  %v2471_v13 = vsel %vm2470_vm3, %v2124_v63, %v2469_v58  ;;  %v554_v27 = vld [vmem:[#allocation2 + $0xf70] sm:$0xff]  ;;  %v1015_v42 = vadd.f32 %v1014_v28, %v230_v19  ;;  %v862_v49 = vadd.f32 %v861_v36, %v860_v22 }
  0x7c   :  { %v1774_v62 = vadd.f32 %v1773_v50, %v1772_v39  ;;  %v1620_v5 = vadd.f32 %v1619_v56, %v1618_v43  ;;  %v242_v33 = vld [vmem:[#allocation2 + $0x5b0] sm:$0xff]  ;;  %v1170_v43 = vadd.f32 %v1169_v29, %v314_v20  ;;  %v1325_v50 = vadd.f32 %v1324_v37, %v398_v25  ;;  %v2315_v20 = vld [vmem:[#allocation5 + $0x478] sm:$0xff] }
  0x7d   :  { %v1928_v6 = vadd.f32 %v1927_v57, %v1926_v44  ;;  %v326_v34 = vld [vmem:[#allocation2 + $0x850] sm:$0xff]  ;;  %v1479_v44 = vadd.f32 %v1478_v30, %v470_v21  ;;  %v1634_v51 = vadd.f32 %v554_v27, %v542_v26  ;;  %v1016_v55 = vadd.f32 %v1015_v42, %v242_v33  ;;  %v2252_v26 = vld [vmem:[#allocation5 + $0x280] sm:$0xff] }
  0x7e   :  { %v1775_v12 = vrot.slane %v1774_v62, 1  ;;  %v2136_v18 = vmul.f32 0.015625, %v1620_v5  ;;  %v482_v35 = vld [vmem:[#allocation2 + $0xd30] sm:$0xff]  ;;  %v1171_v56 = vadd.f32 %v1170_v43, %v326_v34  ;;  %v863_v61 = vrot.slane %v862_v49, 2  ;;  %v2284_v27 = vld [vmem:[#allocation5 + $0x380] sm:$0xff]  ;;  %2682 = vmatpush.msrb.mxu1 %v2252_v26  ;;  %v121_v26 = vld [vmem:[#allocation2 + $0x1e8] sm:$0xff] }
  0x7f   :  { %v1929_v17 = vrot.slane %v1928_v6, 2  ;;  %v338_v39 = vld [vmem:[#allocation2 + $0x8b0] sm:$0xff]  ;;  %v1480_v57 = vadd.f32 %v1479_v44, %v482_v35  ;;  %v1017_v3 = vrot.slane %v1016_v55, 4  ;;  %2722 = vmatpush.msrb.mxu3 %v2284_v27 }
  0x80   :  { %v1776_v24 = vadd.f32 %v1775_v12, %v1774_v62  ;;  %v2473_v32 = vsel %vm2472_vm4, %v2136_v18, %v2471_v13  ;;  %v410_v40 = vld [vmem:[#allocation2 + $0xaf0] sm:$0xff]  ;;  %v1172_v4 = vadd.f32 %v1171_v56, %v338_v39  ;;  %v864_v11 = vadd.f32 %v863_v61, %v862_v49 }
  0x81   :  { %v1930_v31 = vadd.f32 %v1929_v17, %v1928_v6  ;;  %v566_v41 = vld [vmem:[#allocation2 + $0xfd0] sm:$0xff]  ;;  %v1326_v62 = vadd.f32 %v1325_v50, %v410_v40  ;;  %v1018_v16 = vadd.f32 %v1017_v3, %v1016_v55 }
  0x82   :  { %v2148_v38 = vmul.f32 0.015625, %v1776_v24  ;;  %v494_v46 = vld [vmem:[#allocation2 + $0xd90] sm:$0xff]  ;;  %v1635_v63 = vadd.f32 %v1634_v51, %v566_v41  ;;  %v1173_v17 = vrot.slane %v1172_v4, 4  ;;  %v865_v23 = vrot.slane %v864_v11, 1 }
  0x83   :  { %v1931_v45 = vrot.slane %v1930_v31, 1  ;;  %v638_v47 = vld [vmem:[#allocation2 + $0x1210] sm:$0xff]  ;;  %v1481_v5 = vadd.f32 %v1480_v57, %v494_v46  ;;  %v1019_v30 = vrot.slane %v1018_v16, 2  ;;  %v73_v46 = vld [vmem:[#allocation2 + $0x68] sm:$0xff] }
  0x84   :  { %v650_v48 = vld [vmem:[#allocation2 + $0x1270] sm:$0xff]  ;;  %v2475_v52 = vsel %vm2474_vm5, %v2148_v38, %v2473_v32  ;;  %v866_v36 = vadd.f32 %v865_v23, %v864_v11  ;;  %v85_v57 = vld [vmem:[#allocation2 + $0xc8] sm:$0xff] }
  0x85   :  { %v422_v53 = vld [vmem:[#allocation2 + $0xb50] sm:$0xff]  ;;  %v1932_v58 = vadd.f32 %v1931_v45, %v1930_v31  ;;  %v1790_v6 = vadd.f32 %v650_v48, %v638_v47  ;;  %v1174_v31 = vadd.f32 %v1173_v17, %v1172_v4  ;;  %v1020_v41 = vadd.f32 %v1019_v30, %v1018_v16  ;;  %v61_v45 = vld [vmem:[#allocation2 + $0x8] sm:$0xff] }
  0x86   :  { %v578_v54 = vld [vmem:[#allocation2 + $0x1030] sm:$0xff]  ;;  %v1327_v12 = vadd.f32 %v1326_v62, %v422_v53  ;;  %v2078_v51 = vmul.f32 0.015625, %v866_v36  ;;  %v841_v62 = vadd.f32 %v73_v46, %v61_v45  ;;  %v97_v4 = vld [vmem:[#allocation2 + $0x128] sm:$0xff] }
  0x87   :  { %v506_v59 = vld [vmem:[#allocation2 + $0xdf0] sm:$0xff]  ;;  %v2160_v7 = vmul.f32 0.015625, %v1932_v58  ;;  %v1636_v13 = vadd.f32 %v1635_v63, %v578_v54  ;;  %v1175_v42 = vrot.slane %v1174_v31, 2  ;;  %v1021_v53 = vrot.slane %v1020_v41, 1  ;;  %v181_v30 = vld [vmem:[#allocation2 + $0x3c8] sm:$0xff] }
  0x88   :  { %v662_v60 = vld [vmem:[#allocation2 + $0x12d0] sm:$0xff]  ;;  %v1482_v18 = vadd.f32 %v1481_v5, %v506_v59 }
  0x89   :  { %v434_v0 = vld [vmem:[#allocation2 + $0xbb0] sm:$0xff]  ;;  %v1791_v19 = vadd.f32 %v1790_v6, %v662_v60  ;;  %v2477_v21 = vsel %vm2476_vm6, %v2160_v7, %v2475_v52  ;;  %v1176_v54 = vadd.f32 %v1175_v42, %v1174_v31  ;;  %v253_v31 = vld [vmem:[#allocation2 + $0x608] sm:$0xff] }
  0x8a   :  { %v518_v1 = vld [vmem:[#allocation2 + $0xe50] sm:$0xff]  ;;  %v1328_v24 = vadd.f32 %v1327_v12, %v434_v0  ;;  %2583 = vmatmul.f32.vlgmr.msra.gmra.mxu0 %v2477_v21  ;;  %v1022_v0 = vadd.f32 %v1021_v53, %v1020_v41  ;;  %v193_v42 = vld [vmem:[#allocation2 + $0x428] sm:$0xff] }
  0x8b   :  { %v590_v2 = vld [vmem:[#allocation2 + $0x1090] sm:$0xff]  ;;  %v1483_v32 = vadd.f32 %v1482_v18, %v518_v1  ;;  %2727 = vmatpush.msra.mxu0 %v2315_v20  ;;  %v1177_v1 = vrot.slane %v1176_v54, 1  ;;  %v157_v18 = vld [vmem:[#allocation2 + $0x308] sm:$0xff] }
  0x8c   :  { %v530_v8 = vld [vmem:[#allocation2 + $0xeb0] sm:$0xff]  ;;  %v1637_v25 = vadd.f32 %v1636_v13, %v590_v2  ;;  %v1329_v37 = vrot.slane %v1328_v24, 4  ;;  %v2090_v13 = vmul.f32 0.015625, %v1022_v0 }
  0x8d   :  { %v602_v9 = vld [vmem:[#allocation2 + $0x10f0] sm:$0xff]  ;;  %v1484_v43 = vadd.f32 %v1483_v32, %v530_v8  ;;  %v842_v8 = vadd.f32 %v841_v62, %v85_v57  ;;  %v265_v32 = vld [vmem:[#allocation2 + $0x668] sm:$0xff] }
  0x8e   :  { %v674_v10 = vld [vmem:[#allocation2 + $0x1330] sm:$0xff]  ;;  %v1638_v38 = vadd.f32 %v1637_v25, %v602_v9  ;;  %v1330_v48 = vadd.f32 %v1329_v37, %v1328_v24  ;;  %v2485_v25 = vsel %vm2464_vm0, %v2090_v13, %v2078_v51  ;;  %v133_v37 = vld [vmem:[#allocation2 + $0x248] sm:$0xff]  ;;  %v1153_v51 = vadd.f32 %v265_v32, %v253_v31 }
  0x8f   :  { %v734_v14 = vld [vmem:[#allocation2 + $0x1510] sm:$0xff]  ;;  %v1792_v33 = vadd.f32 %v1791_v19, %v674_v10  ;;  %v1485_v55 = vrot.slane %v1484_v43, 4  ;;  %v1178_v10 = vadd.f32 %v1177_v1, %v1176_v54  ;;  %v169_v19 = vld [vmem:[#allocation2 + $0x368] sm:$0xff]  ;;  %v843_v20 = vadd.f32 %v842_v8, %v97_v4 }
  0x90   :  { %v746_v15 = vld [vmem:[#allocation2 + $0x1570] sm:$0xff]  ;;  %v1331_v59 = vrot.slane %v1330_v48, 2  ;;  %v457_v4 = vld [vmem:[#allocation2 + $0xc68] sm:$0xff] }
  0x91   :  { %v686_v22 = vld [vmem:[#allocation2 + $0x1390] sm:$0xff]  ;;  %v1946_v39 = vadd.f32 %v746_v15, %v734_v14  ;;  %v1486_v2 = vadd.f32 %v1485_v55, %v1484_v43  ;;  %v109_v14 = vld [vmem:[#allocation2 + $0x188] sm:$0xff]  ;;  %v2102_v24 = vmul.f32 0.015625, %v1178_v10 }
  0x92   :  { %v614_v28 = vld [vmem:[#allocation2 + $0x1150] sm:$0xff]  ;;  %v1793_v44 = vadd.f32 %v1792_v33, %v686_v22  ;;  %v1332_v5 = vadd.f32 %v1331_v59, %v1330_v48  ;;  %v844_v33 = vadd.f32 %v843_v20, %v109_v14  ;;  %v277_v43 = vld [vmem:[#allocation2 + $0x6c8] sm:$0xff] }
  0x93   :  { %v758_v29 = vld [vmem:[#allocation2 + $0x15d0] sm:$0xff]  ;;  %v1639_v49 = vadd.f32 %v1638_v38, %v614_v28  ;;  %v1487_v11 = vrot.slane %v1486_v2, 2  ;;  %v2486_v36 = vsel %vm2466_vm1, %v2102_v24, %v2485_v25  ;;  %v997_v38 = vadd.f32 %v169_v19, %v157_v18  ;;  %v349_v48 = vld [vmem:[#allocation2 + $0x908] sm:$0xff] }
  0x94   :  { %v626_v34 = vld [vmem:[#allocation2 + $0x11b0] sm:$0xff]  ;;  %v1947_v50 = vadd.f32 %v1946_v39, %v758_v29  ;;  %v1333_v15 = vrot.slane %v1332_v5, 1  ;;  %v205_v55 = vld [vmem:[#allocation2 + $0x488] sm:$0xff] }
  0x95   :  { %v698_v35 = vld [vmem:[#allocation2 + $0x13f0] sm:$0xff]  ;;  %v1640_v60 = vadd.f32 %v1639_v49, %v626_v34  ;;  %v1488_v22 = vadd.f32 %v1487_v11, %v1486_v2  ;;  %v361_v49 = vld [vmem:[#allocation2 + $0x968] sm:$0xff] }
  0x96   :  { %v770_v40 = vld [vmem:[#allocation2 + $0x1630] sm:$0xff]  ;;  %v1794_v56 = vadd.f32 %v1793_v44, %v698_v35  ;;  %v1334_v27 = vadd.f32 %v1333_v15, %v1332_v5  ;;  %v845_v44 = vadd.f32 %v844_v33, %v121_v26  ;;  %v301_v2 = vld [vmem:[#allocation2 + $0x788] sm:$0xff] }
  0x97   :  { %v710_v47 = vld [vmem:[#allocation2 + $0x1450] sm:$0xff]  ;;  %v1948_v61 = vadd.f32 %v1947_v50, %v770_v40  ;;  %v1641_v6 = vrot.slane %v1640_v60, 4  ;;  %v1489_v34 = vrot.slane %v1488_v22, 1  ;;  %v998_v50 = vadd.f32 %v997_v38, %v181_v30  ;;  %v229_v14 = vld [vmem:[#allocation2 + $0x548] sm:$0xff] }
  0x98   :  { %v782_v52 = vld [vmem:[#allocation2 + $0x1690] sm:$0xff]  ;;  %v1795_v3 = vadd.f32 %v1794_v56, %v710_v47  ;;  %v2114_v41 = vmul.f32 0.015625, %v1334_v27  ;;  %v145_v47 = vld [vmem:[#allocation2 + $0x2a8] sm:$0xff]  ;;  %v846_v57 = vadd.f32 %v845_v44, %v133_v37 }
  0x99   :  { %v722_v58 = vld [vmem:[#allocation2 + $0x14b0] sm:$0xff]  ;;  %v1949_v7 = vadd.f32 %v1948_v61, %v782_v52  ;;  %v1642_v16 = vadd.f32 %v1641_v6, %v1640_v60  ;;  %v1490_v45 = vadd.f32 %v1489_v34, %v1488_v22  ;;  %v289_v56 = vld [vmem:[#allocation2 + $0x728] sm:$0xff]  ;;  %v999_v62 = vadd.f32 %v998_v50, %v193_v42 }
  0x9a   :  { %v794_v63 = vld [vmem:[#allocation2 + $0x16f0] sm:$0xff]  ;;  %v1796_v12 = vadd.f32 %v1795_v3, %v722_v58  ;;  %v2487_v54 = vsel %vm2468_vm2, %v2114_v41, %v2486_v36  ;;  %v217_v60 = vld [vmem:[#allocation2 + $0x4e8] sm:$0xff]  ;;  %v847_v5 = vadd.f32 %v846_v57, %v145_v47  ;;  %v1309_v6 = vadd.f32 %v361_v49, %v349_v48 }
  0x9b   :  { %v806_v9 = vld [vmem:[#allocation2 + $0x1750] sm:$0xff]  ;;  %v1950_v17 = vadd.f32 %v1949_v7, %v794_v63  ;;  %v1643_v28 = vrot.slane %v1642_v16, 2  ;;  %v2126_v59 = vmul.f32 0.015625, %v1490_v45  ;;  %v373_v61 = vld [vmem:[#allocation2 + $0x9c8] sm:$0xff]  ;;  %v1154_v63 = vadd.f32 %v1153_v51, %v277_v43 }
  0x9c   :  { %v818_v21 = vld [vmem:[#allocation2 + $0x17b0] sm:$0xff]  ;;  %v1797_v23 = vrot.slane %v1796_v12, 4  ;;  %v445_v3 = vld [vmem:[#allocation2 + $0xc08] sm:$0xff]  ;;  %v1000_v10 = vadd.f32 %v999_v62, %v205_v55  ;;  %v1310_v18 = vadd.f32 %v1309_v6, %v373_v61 }
  0x9d   :  { %v1951_v29 = vadd.f32 %v1950_v17, %v806_v9  ;;  %v1644_v39 = vadd.f32 %v1643_v28, %v1642_v16  ;;  %v2488_v8 = vsel %vm2470_vm3, %v2126_v59, %v2487_v54  ;;  %v385_v9 = vld [vmem:[#allocation2 + $0xa28] sm:$0xff]  ;;  %v1155_v11 = vadd.f32 %v1154_v63, %v289_v56 }
  0x9e   :  { %v1798_v35 = vadd.f32 %v1797_v23, %v1796_v12  ;;  %v313_v15 = vld [vmem:[#allocation2 + $0x7e8] sm:$0xff]  ;;  %v848_v17 = vrot.slane %v847_v5, 4  ;;  %v1001_v23 = vadd.f32 %v1000_v10, %v217_v60  ;;  %v1465_v25 = vadd.f32 %v457_v4, %v445_v3 }
  0x9f   :  { %v1952_v40 = vadd.f32 %v1951_v29, %v818_v21  ;;  %v1645_v52 = vrot.slane %v1644_v39, 1  ;;  %v469_v16 = vld [vmem:[#allocation2 + $0xcc8] sm:$0xff]  ;;  %v1156_v24 = vadd.f32 %v1155_v11, %v301_v2  ;;  %v1311_v32 = vadd.f32 %v1310_v18, %v385_v9  ;;  %v2347_v2 = vld [vmem:[#allocation5 + $0x578] sm:$0xff] }
  0xa0   :  { %v1799_v46 = vrot.slane %v1798_v35, 2  ;;  %v397_v20 = vld [vmem:[#allocation2 + $0xa88] sm:$0xff]  ;;  %v849_v31 = vadd.f32 %v848_v17, %v847_v5  ;;  %v1002_v37 = vadd.f32 %v1001_v23, %v229_v14 }
  0xa1   :  { %v1953_v53 = vrot.slane %v1952_v40, 4  ;;  %v1646_v0 = vadd.f32 %v1645_v52, %v1644_v39  ;;  %v541_v21 = vld [vmem:[#allocation2 + $0xf08] sm:$0xff]  ;;  %v1157_v38 = vadd.f32 %v1156_v24, %v313_v15  ;;  %v1466_v39 = vadd.f32 %v1465_v25, %v469_v16 }
  0xa2   :  { %v1800_v58 = vadd.f32 %v1799_v46, %v1798_v35  ;;  %v553_v22 = vld [vmem:[#allocation2 + $0xf68] sm:$0xff]  ;;  %v850_v44 = vrot.slane %v849_v31, 2  ;;  %v1312_v45 = vadd.f32 %v1311_v32, %v397_v20 }
  0xa3   :  { %v1954_v1 = vadd.f32 %v1953_v53, %v1952_v40  ;;  %v2138_v13 = vmul.f32 0.015625, %v1646_v0  ;;  %v241_v28 = vld [vmem:[#allocation2 + $0x5a8] sm:$0xff]  ;;  %v1621_v46 = vadd.f32 %v553_v22, %v541_v21 }
  0xa4   :  { %v1801_v7 = vrot.slane %v1800_v58, 1  ;;  %v325_v29 = vld [vmem:[#allocation2 + $0x848] sm:$0xff]  ;;  %v1003_v50 = vadd.f32 %v1002_v37, %v241_v28  ;;  %v851_v56 = vadd.f32 %v850_v44, %v849_v31  ;;  %v75_v28 = vld [vmem:[#allocation2 + $0x78] sm:$0xff] }
  0xa5   :  { %v1955_v12 = vrot.slane %v1954_v1, 2  ;;  %v2489_v27 = vsel %vm2472_vm4, %v2138_v13, %v2488_v8  ;;  %v481_v30 = vld [vmem:[#allocation2 + $0xd28] sm:$0xff]  ;;  %v1158_v51 = vadd.f32 %v1157_v38, %v325_v29 }
  0xa6   :  { %v1802_v19 = vadd.f32 %v1801_v7, %v1800_v58  ;;  %v337_v34 = vld [vmem:[#allocation2 + $0x8a8] sm:$0xff]  ;;  %v1467_v52 = vadd.f32 %v1466_v39, %v481_v30  ;;  %v1004_v61 = vrot.slane %v1003_v50, 4  ;;  %v852_v5 = vrot.slane %v851_v56, 1 }
  0xa7   :  { %v1956_v26 = vadd.f32 %v1955_v12, %v1954_v1  ;;  %v409_v35 = vld [vmem:[#allocation2 + $0xae8] sm:$0xff]  ;;  %v1159_v62 = vadd.f32 %v1158_v51, %v337_v34  ;;  %v99_v51 = vld [vmem:[#allocation2 + $0x138] sm:$0xff] }
  0xa8   :  { %v2150_v33 = vmul.f32 0.015625, %v1802_v19  ;;  %v565_v36 = vld [vmem:[#allocation2 + $0xfc8] sm:$0xff]  ;;  %v1313_v57 = vadd.f32 %v1312_v45, %v409_v35  ;;  %v1005_v11 = vadd.f32 %v1004_v61, %v1003_v50  ;;  %v853_v19 = vadd.f32 %v852_v5, %v851_v56 }
  0xa9   :  { %v1957_v40 = vrot.slane %v1956_v26, 1  ;;  %v493_v41 = vld [vmem:[#allocation2 + $0xd88] sm:$0xff]  ;;  %v1622_v58 = vadd.f32 %v1621_v46, %v565_v36  ;;  %v1160_v12 = vrot.slane %v1159_v62, 4 }
  0xaa   :  { %v637_v42 = vld [vmem:[#allocation2 + $0x1208] sm:$0xff]  ;;  %v2490_v47 = vsel %vm2474_vm5, %v2150_v33, %v2489_v27  ;;  %v1468_v63 = vadd.f32 %v1467_v52, %v493_v41  ;;  %v1006_v23 = vrot.slane %v1005_v11, 2  ;;  %v63_v27 = vld [vmem:[#allocation2 + $0x18] sm:$0xff]  ;;  %v2077_v33 = vmul.f32 0.015625, %v853_v19 }
  0xab   :  { %v649_v43 = vld [vmem:[#allocation2 + $0x1268] sm:$0xff]  ;;  %v1958_v53 = vadd.f32 %v1957_v40, %v1956_v26  ;;  %v1161_v24 = vadd.f32 %v1160_v12, %v1159_v62  ;;  %v87_v40 = vld [vmem:[#allocation2 + $0xd8] sm:$0xff]  ;;  %v867_v45 = vadd.f32 %v75_v28, %v63_v27 }
  0xac   :  { %v421_v48 = vld [vmem:[#allocation2 + $0xb48] sm:$0xff]  ;;  %v1777_v0 = vadd.f32 %v649_v43, %v637_v42  ;;  %v1007_v36 = vadd.f32 %v1006_v23, %v1005_v11  ;;  %v111_v62 = vld [vmem:[#allocation2 + $0x198] sm:$0xff] }
  0xad   :  { %v577_v49 = vld [vmem:[#allocation2 + $0x1028] sm:$0xff]  ;;  %v2162_v1 = vmul.f32 0.015625, %v1958_v53  ;;  %v1314_v6 = vadd.f32 %v1313_v57, %v421_v48  ;;  %v1162_v37 = vrot.slane %v1161_v24, 2  ;;  %v868_v56 = vadd.f32 %v867_v45, %v87_v40  ;;  %v159_v12 = vld [vmem:[#allocation2 + $0x318] sm:$0xff] }
  0xae   :  { %v505_v54 = vld [vmem:[#allocation2 + $0xde8] sm:$0xff]  ;;  %v1623_v7 = vadd.f32 %v1622_v58, %v577_v49 }
  0xaf   :  { %v661_v55 = vld [vmem:[#allocation2 + $0x12c8] sm:$0xff]  ;;  %v1469_v13 = vadd.f32 %v1468_v63, %v505_v54  ;;  %v2491_v15 = vsel %vm2476_vm6, %v2162_v1, %v2490_v47  ;;  %v1008_v47 = vrot.slane %v1007_v36, 1  ;;  %v1163_v48 = vadd.f32 %v1162_v37, %v1161_v24  ;;  %v183_v24 = vld [vmem:[#allocation2 + $0x3d8] sm:$0xff] }
  0xb0   :  { %v433_v59 = vld [vmem:[#allocation2 + $0xba8] sm:$0xff]  ;;  %v1778_v14 = vadd.f32 %v1777_v0, %v661_v55  ;;  %2623 = vmatmul.f32.vlgmr.msra.gmra.mxu2 %v2491_v15  ;;  %v195_v37 = vld [vmem:[#allocation2 + $0x438] sm:$0xff] }
  0xb1   :  { %v589_v60 = vld [vmem:[#allocation2 + $0x1088] sm:$0xff]  ;;  %v1315_v20 = vadd.f32 %v1314_v6, %v433_v59  ;;  %2767 = vmatpush.msra.mxu2 %v2347_v2  ;;  %v1009_v58 = vadd.f32 %v1008_v47, %v1007_v36  ;;  %v1164_v59 = vrot.slane %v1163_v48, 1  ;;  %v869_v2 = vadd.f32 %v868_v56, %v99_v51 }
  0xb2   :  { %v517_v3 = vld [vmem:[#allocation2 + $0xe48] sm:$0xff]  ;;  %v1624_v21 = vadd.f32 %v1623_v7, %v589_v60 }
  0xb3   :  { %v673_v4 = vld [vmem:[#allocation2 + $0x1328] sm:$0xff]  ;;  %v1470_v25 = vadd.f32 %v1469_v13, %v517_v3  ;;  %v1316_v30 = vrot.slane %v1315_v20, 4  ;;  %v2089_v7 = vmul.f32 0.015625, %v1009_v58  ;;  %v171_v13 = vld [vmem:[#allocation2 + $0x378] sm:$0xff] }
  0xb4   :  { %v601_v8 = vld [vmem:[#allocation2 + $0x10e8] sm:$0xff]  ;;  %v1779_v26 = vadd.f32 %v1778_v14, %v673_v4  ;;  %v1165_v4 = vadd.f32 %v1164_v59, %v1163_v48  ;;  %v870_v14 = vadd.f32 %v869_v2, %v111_v62  ;;  %v207_v48 = vld [vmem:[#allocation2 + $0x498] sm:$0xff] }
  0xb5   :  { %v733_v9 = vld [vmem:[#allocation2 + $0x1508] sm:$0xff]  ;;  %v1625_v31 = vadd.f32 %v1624_v21, %v601_v8  ;;  %v1317_v42 = vadd.f32 %v1316_v30, %v1315_v20  ;;  %v123_v8 = vld [vmem:[#allocation2 + $0x1f8] sm:$0xff]  ;;  %v2478_v19 = vsel %vm2464_vm0, %v2089_v7, %v2077_v33 }
  0xb6   :  { %v745_v10 = vld [vmem:[#allocation2 + $0x1568] sm:$0xff]  ;;  %v135_v20 = vld [vmem:[#allocation2 + $0x258] sm:$0xff]  ;;  %v871_v27 = vadd.f32 %v870_v14, %v123_v8 }
  0xb7   :  { %v529_v16 = vld [vmem:[#allocation2 + $0xea8] sm:$0xff]  ;;  %v1933_v32 = vadd.f32 %v745_v10, %v733_v9  ;;  %v1318_v53 = vrot.slane %v1317_v42, 2  ;;  %v303_v59 = vld [vmem:[#allocation2 + $0x798] sm:$0xff] }
  0xb8   :  { %v613_v17 = vld [vmem:[#allocation2 + $0x1148] sm:$0xff]  ;;  %v1471_v38 = vadd.f32 %v1470_v25, %v529_v16  ;;  %v255_v25 = vld [vmem:[#allocation2 + $0x618] sm:$0xff]  ;;  %v872_v33 = vadd.f32 %v871_v27, %v135_v20 }
  0xb9   :  { %v685_v18 = vld [vmem:[#allocation2 + $0x1388] sm:$0xff]  ;;  %v1626_v43 = vadd.f32 %v1625_v31, %v613_v17  ;;  %v1319_v63 = vadd.f32 %v1318_v53, %v1317_v42  ;;  %v147_v31 = vld [vmem:[#allocation2 + $0x2b8] sm:$0xff] }
  0xba   :  { %v757_v22 = vld [vmem:[#allocation2 + $0x15c8] sm:$0xff]  ;;  %v1780_v39 = vadd.f32 %v1779_v26, %v685_v18  ;;  %v1472_v49 = vrot.slane %v1471_v38, 4  ;;  %v2101_v18 = vmul.f32 0.015625, %v1165_v4  ;;  %v267_v26 = vld [vmem:[#allocation2 + $0x678] sm:$0xff] }
  0xbb   :  { %v697_v29 = vld [vmem:[#allocation2 + $0x13e8] sm:$0xff]  ;;  %v1934_v44 = vadd.f32 %v1933_v32, %v757_v22  ;;  %v1320_v9 = vrot.slane %v1319_v63, 1  ;;  %v1023_v32 = vadd.f32 %v171_v13, %v159_v12  ;;  %v363_v42 = vld [vmem:[#allocation2 + $0x978] sm:$0xff] }
  0xbc   :  { %v625_v34 = vld [vmem:[#allocation2 + $0x11a8] sm:$0xff]  ;;  %v1781_v50 = vadd.f32 %v1780_v39, %v697_v29  ;;  %v1473_v60 = vadd.f32 %v1472_v49, %v1471_v38  ;;  %v2479_v30 = vsel %vm2466_vm1, %v2101_v18, %v2478_v19  ;;  %v279_v38 = vld [vmem:[#allocation2 + $0x6d8] sm:$0xff] }
  0xbd   :  { %v769_v35 = vld [vmem:[#allocation2 + $0x1628] sm:$0xff]  ;;  %v1627_v54 = vadd.f32 %v1626_v43, %v625_v34  ;;  %v1321_v21 = vadd.f32 %v1320_v9, %v1319_v63  ;;  %v1024_v43 = vadd.f32 %v1023_v32, %v183_v24  ;;  %v291_v49 = vld [vmem:[#allocation2 + $0x738] sm:$0xff] }
  0xbe   :  { %v709_v41 = vld [vmem:[#allocation2 + $0x1448] sm:$0xff]  ;;  %v1935_v55 = vadd.f32 %v1934_v44, %v769_v35  ;;  %v1474_v5 = vrot.slane %v1473_v60, 2  ;;  %v1179_v44 = vadd.f32 %v267_v26, %v255_v25  ;;  %v219_v53 = vld [vmem:[#allocation2 + $0x4f8] sm:$0xff] }
  0xbf   :  { %v781_v46 = vld [vmem:[#allocation2 + $0x1688] sm:$0xff]  ;;  %v1782_v61 = vadd.f32 %v1781_v50, %v709_v41  ;;  %v1628_v0 = vrot.slane %v1627_v54, 4  ;;  %v2113_v36 = vmul.f32 0.015625, %v1321_v21  ;;  %v351_v41 = vld [vmem:[#allocation2 + $0x918] sm:$0xff]  ;;  %v873_v50 = vadd.f32 %v872_v33, %v147_v31 }
  0xc0   :  { %v721_v52 = vld [vmem:[#allocation2 + $0x14a8] sm:$0xff]  ;;  %v1936_v1 = vadd.f32 %v1935_v55, %v781_v46  ;;  %v1475_v16 = vadd.f32 %v1474_v5, %v1473_v60  ;;  %v1025_v55 = vadd.f32 %v1024_v43, %v195_v37  ;;  %v1180_v56 = vadd.f32 %v1179_v44, %v279_v38  ;;  %v447_v60 = vld [vmem:[#allocation2 + $0xc18] sm:$0xff] }
  0xc1   :  { %v793_v57 = vld [vmem:[#allocation2 + $0x16e8] sm:$0xff]  ;;  %v1783_v6 = vadd.f32 %v1782_v61, %v721_v52  ;;  %v1629_v10 = vadd.f32 %v1628_v0, %v1627_v54  ;;  %v2480_v47 = vsel %vm2468_vm2, %v2113_v36, %v2479_v30  ;;  %v375_v54 = vld [vmem:[#allocation2 + $0x9d8] sm:$0xff]  ;;  %v874_v62 = vrot.slane %v873_v50, 4 }
  0xc2   :  { %v805_v3 = vld [vmem:[#allocation2 + $0x1748] sm:$0xff]  ;;  %v1937_v11 = vadd.f32 %v1936_v1, %v793_v57  ;;  %v1476_v28 = vrot.slane %v1475_v16, 1  ;;  %v459_v61 = vld [vmem:[#allocation2 + $0xc78] sm:$0xff]  ;;  %v1335_v63 = vadd.f32 %v363_v42, %v351_v41  ;;  %v1026_v4 = vadd.f32 %v1025_v55, %v207_v48  ;;  %v2314_v55 = vld [vmem:[#allocation5 + $0x470] sm:$0xff] }
  0xc3   :  { %v817_v15 = vld [vmem:[#allocation2 + $0x17a8] sm:$0xff]  ;;  %v1784_v17 = vrot.slane %v1783_v6, 4  ;;  %v1630_v22 = vrot.slane %v1629_v10, 2  ;;  %v231_v2 = vld [vmem:[#allocation2 + $0x558] sm:$0xff]  ;;  %v1181_v5 = vadd.f32 %v1180_v56, %v291_v49  ;;  %v1491_v19 = vadd.f32 %v459_v61, %v447_v60  ;;  %v2346_v56 = vld [vmem:[#allocation5 + $0x570] sm:$0xff]  ;;  %2728 = vmatpush.msra.mxu0 %v2314_v55 }
  0xc4   :  { %v1938_v23 = vadd.f32 %v1937_v11, %v805_v3  ;;  %v1477_v39 = vadd.f32 %v1476_v28, %v1475_v16  ;;  %v387_v3 = vld [vmem:[#allocation2 + $0xa38] sm:$0xff]  ;;  %v875_v11 = vadd.f32 %v874_v62, %v873_v50  ;;  %v1336_v12 = vadd.f32 %v1335_v63, %v375_v54  ;;  %2768 = vmatpush.msra.mxu2 %v2346_v56 }
  0xc5   :  { %v1785_v29 = vadd.f32 %v1784_v17, %v1783_v6  ;;  %v1631_v34 = vadd.f32 %v1630_v22, %v1629_v10  ;;  %v243_v8 = vld [vmem:[#allocation2 + $0x5b8] sm:$0xff]  ;;  %v1027_v17 = vadd.f32 %v1026_v4, %v219_v53  ;;  %v1182_v18 = vadd.f32 %v1181_v5, %v303_v59 }
  0xc6   :  { %v1939_v35 = vadd.f32 %v1938_v23, %v817_v15  ;;  %v2125_v52 = vmul.f32 0.015625, %v1477_v39  ;;  %v315_v9 = vld [vmem:[#allocation2 + $0x7f8] sm:$0xff]  ;;  %v876_v25 = vrot.slane %v875_v11, 2  ;;  %v1337_v26 = vadd.f32 %v1336_v12, %v387_v3 }
  0xc7   :  { %v1786_v40 = vrot.slane %v1785_v29, 2  ;;  %v1632_v45 = vrot.slane %v1631_v34, 1  ;;  %v471_v10 = vld [vmem:[#allocation2 + $0xcd8] sm:$0xff]  ;;  %v1028_v31 = vadd.f32 %v1027_v17, %v231_v2  ;;  %v1183_v32 = vadd.f32 %v1182_v18, %v315_v9 }
  0xc8   :  { %v1940_v46 = vrot.slane %v1939_v35, 4  ;;  %v2481_v1 = vsel %vm2470_vm3, %v2125_v52, %v2480_v47  ;;  %v399_v14 = vld [vmem:[#allocation2 + $0xa98] sm:$0xff]  ;;  %v877_v33 = vadd.f32 %v876_v25, %v875_v11 }
  0xc9   :  { %v1787_v51 = vadd.f32 %v1786_v40, %v1785_v29  ;;  %v1633_v57 = vadd.f32 %v1632_v45, %v1631_v34  ;;  %v543_v15 = vld [vmem:[#allocation2 + $0xf18] sm:$0xff]  ;;  %v1492_v34 = vadd.f32 %v1491_v19, %v471_v10  ;;  %v1338_v39 = vadd.f32 %v1337_v26, %v399_v14 }
  0xca   :  { %v1941_v58 = vadd.f32 %v1940_v46, %v1939_v35  ;;  %v555_v16 = vld [vmem:[#allocation2 + $0xf78] sm:$0xff]  ;;  %v1029_v46 = vadd.f32 %v1028_v31, %v243_v8  ;;  %v878_v52 = vrot.slane %v877_v33, 1 }
  0xcb   :  { %v1788_v0 = vrot.slane %v1787_v51, 1  ;;  %v2137_v7 = vmul.f32 0.015625, %v1633_v57  ;;  %v327_v22 = vld [vmem:[#allocation2 + $0x858] sm:$0xff]  ;;  %v1647_v40 = vadd.f32 %v555_v16, %v543_v15 }
  0xcc   :  { %v1942_v6 = vrot.slane %v1941_v58, 2  ;;  %v339_v23 = vld [vmem:[#allocation2 + $0x8b8] sm:$0xff]  ;;  %v1184_v47 = vadd.f32 %v1183_v32, %v327_v22  ;;  %v1030_v60 = vrot.slane %v1029_v46, 4  ;;  %v879_v3 = vadd.f32 %v878_v52, %v877_v33  ;;  %v2344_v22 = vld [vmem:[#allocation5 + $0x560] sm:$0xff] }
  0xcd   :  { %v1789_v13 = vadd.f32 %v1788_v0, %v1787_v51  ;;  %v2482_v21 = vsel %vm2472_vm4, %v2137_v7, %v2481_v1  ;;  %v483_v24 = vld [vmem:[#allocation2 + $0xd38] sm:$0xff]  ;;  %v2345_v7 = vld [vmem:[#allocation5 + $0x568] sm:$0xff] }
  0xce   :  { %v1943_v20 = vadd.f32 %v1942_v6, %v1941_v58  ;;  %v411_v28 = vld [vmem:[#allocation2 + $0xaf8] sm:$0xff]  ;;  %v1493_v48 = vadd.f32 %v1492_v34, %v483_v24  ;;  %v1185_v61 = vadd.f32 %v1184_v47, %v339_v23  ;;  %v2313_v6 = vld [vmem:[#allocation5 + $0x468] sm:$0xff]  ;;  %v1031_v11 = vadd.f32 %v1030_v60, %v1029_v46  ;;  %2769 = vmatpush.msra.mxu2 %v2345_v7 }
  0xcf   :  { %v2149_v27 = vmul.f32 0.015625, %v1789_v13  ;;  %v423_v29 = vld [vmem:[#allocation2 + $0xb58] sm:$0xff]  ;;  %v1339_v53 = vadd.f32 %v1338_v39, %v411_v28  ;;  %2729 = vmatpush.msra.mxu0 %v2313_v6  ;;  %v66_v28 = vld [vmem:[#allocation2 + $0x30] sm:$0xff] }
  0xd0   :  { %v567_v30 = vld [vmem:[#allocation2 + $0xfd8] sm:$0xff]  ;;  %v1944_v35 = vrot.slane %v1943_v20, 1  ;;  %v1186_v12 = vrot.slane %v1185_v61, 4  ;;  %v1032_v23 = vrot.slane %v1031_v11, 2  ;;  %2770 = vmatpush.msra.mxu2 %v2344_v22 }
  0xd1   :  { %v495_v36 = vld [vmem:[#allocation2 + $0xd98] sm:$0xff]  ;;  %v2483_v41 = vsel %vm2474_vm5, %v2149_v27, %v2482_v21  ;;  %v1648_v54 = vadd.f32 %v1647_v40, %v567_v30  ;;  %v1340_v4 = vadd.f32 %v1339_v53, %v423_v29  ;;  %v2312_v21 = vld [vmem:[#allocation5 + $0x460] sm:$0xff]  ;;  %v2330_v27 = vld [vmem:[#allocation5 + $0x4f0] sm:$0xff] }
  0xd2   :  { %v639_v37 = vld [vmem:[#allocation2 + $0x1218] sm:$0xff]  ;;  %v1945_v49 = vadd.f32 %v1944_v35, %v1943_v20  ;;  %v1494_v62 = vadd.f32 %v1493_v48, %v495_v36  ;;  %v1187_v24 = vadd.f32 %v1186_v12, %v1185_v61  ;;  %2730 = vmatpush.msra.mxu0 %v2312_v21  ;;  %v78_v29 = vld [vmem:[#allocation2 + $0x90] sm:$0xff]  ;;  %v2079_v36 = vmul.f32 0.015625, %v879_v3 }
  0xd3   :  { %v651_v38 = vld [vmem:[#allocation2 + $0x1278] sm:$0xff]  ;;  %v906_v47 = vadd.f32 %v78_v29, %v66_v28  ;;  %v102_v53 = vld [vmem:[#allocation2 + $0x150] sm:$0xff] }
  0xd4   :  { %v435_v42 = vld [vmem:[#allocation2 + $0xbb8] sm:$0xff]  ;;  %v1803_v63 = vadd.f32 %v651_v38, %v639_v37  ;;  %v2161_v0 = vmul.f32 0.015625, %v1945_v49  ;;  %v1033_v38 = vadd.f32 %v1032_v23, %v1031_v11  ;;  %v1188_v33 = vrot.slane %v1187_v24, 2  ;;  %v138_v21 = vld [vmem:[#allocation2 + $0x270] sm:$0xff] }
  0xd5   :  { %v507_v43 = vld [vmem:[#allocation2 + $0xdf8] sm:$0xff]  ;;  %v1341_v18 = vadd.f32 %v1340_v4, %v435_v42  ;;  %v90_v42 = vld [vmem:[#allocation2 + $0xf0] sm:$0xff] }
  0xd6   :  { %v579_v44 = vld [vmem:[#allocation2 + $0x1038] sm:$0xff]  ;;  %v1495_v13 = vadd.f32 %v1494_v62, %v507_v43  ;;  %v2484_v16 = vsel %vm2476_vm6, %v2161_v0, %v2483_v41  ;;  %v2329_v41 = vld [vmem:[#allocation5 + $0x4e8] sm:$0xff]  ;;  %v1034_v49 = vrot.slane %v1033_v38, 1  ;;  %v114_v0 = vld [vmem:[#allocation2 + $0x1b0] sm:$0xff] }
  0xd7   :  { %v591_v45 = vld [vmem:[#allocation2 + $0x1098] sm:$0xff]  ;;  %v1649_v5 = vadd.f32 %v1648_v54, %v579_v44  ;;  %2603 = vmatmul.f32.vlgmr.msra.gmra.mxu1 %v2484_v16  ;;  %v1342_v32 = vrot.slane %v1341_v18, 4 }
  0xd8   :  { %v519_v50 = vld [vmem:[#allocation2 + $0xe58] sm:$0xff]  ;;  %v1035_v60 = vadd.f32 %v1034_v49, %v1033_v38  ;;  %v210_v49 = vld [vmem:[#allocation2 + $0x4b0] sm:$0xff] }
  0xd9   :  { %v663_v51 = vld [vmem:[#allocation2 + $0x12d8] sm:$0xff]  ;;  %v1650_v19 = vadd.f32 %v1649_v5, %v591_v45  ;;  %v1496_v25 = vadd.f32 %v1495_v13, %v519_v50  ;;  %v1343_v44 = vadd.f32 %v1342_v32, %v1341_v18  ;;  %v1189_v50 = vadd.f32 %v1188_v33, %v1187_v24  ;;  %v150_v32 = vld [vmem:[#allocation2 + $0x2d0] sm:$0xff] }
  0xda   :  { %v603_v57 = vld [vmem:[#allocation2 + $0x10f8] sm:$0xff]  ;;  %v1804_v14 = vadd.f32 %v1803_v63, %v663_v51  ;;  %v198_v33 = vld [vmem:[#allocation2 + $0x450] sm:$0xff] }
  0xdb   :  { %v735_v58 = vld [vmem:[#allocation2 + $0x1518] sm:$0xff]  ;;  %v1651_v34 = vadd.f32 %v1650_v19, %v603_v57  ;;  %v1344_v55 = vrot.slane %v1343_v44, 2  ;;  %v1190_v61 = vrot.slane %v1189_v50, 1 }
  0xdc   :  { %v747_v59 = vld [vmem:[#allocation2 + $0x1578] sm:$0xff] }
  0xdd   :  { %v531_v1 = vld [vmem:[#allocation2 + $0xeb8] sm:$0xff]  ;;  %v1959_v20 = vadd.f32 %v747_v59, %v735_v58  ;;  %v907_v58 = vadd.f32 %v906_v47, %v90_v42  ;;  %v1191_v6 = vadd.f32 %v1190_v61, %v1189_v50  ;;  %v354_v42 = vld [vmem:[#allocation2 + $0x930] sm:$0xff] }
  0xde   :  { %v675_v2 = vld [vmem:[#allocation2 + $0x1338] sm:$0xff]  ;;  %v1497_v39 = vadd.f32 %v1496_v25, %v531_v1  ;;  %v1345_v1 = vadd.f32 %v1344_v55, %v1343_v44  ;;  %v186_v25 = vld [vmem:[#allocation2 + $0x3f0] sm:$0xff] }
  0xdf   :  { %v615_v8 = vld [vmem:[#allocation2 + $0x1158] sm:$0xff]  ;;  %v1805_v26 = vadd.f32 %v1804_v14, %v675_v2  ;;  %v908_v4 = vadd.f32 %v907_v58, %v102_v53  ;;  %v162_v14 = vld [vmem:[#allocation2 + $0x330] sm:$0xff]  ;;  %v2103_v19 = vmul.f32 0.015625, %v1191_v6 }
  0xe0   :  { %v687_v9 = vld [vmem:[#allocation2 + $0x1398] sm:$0xff]  ;;  %v1652_v45 = vadd.f32 %v1651_v34, %v615_v8  ;;  %v1498_v51 = vrot.slane %v1497_v39, 4  ;;  %v1346_v11 = vrot.slane %v1345_v1, 1  ;;  %v294_v50 = vld [vmem:[#allocation2 + $0x750] sm:$0xff] }
  0xe1   :  { %v759_v10 = vld [vmem:[#allocation2 + $0x15d8] sm:$0xff]  ;;  %v1806_v40 = vadd.f32 %v1805_v26, %v687_v9  ;;  %v2091_v9 = vmul.f32 0.015625, %v1035_v60  ;;  %v909_v16 = vadd.f32 %v908_v4, %v114_v0  ;;  %v258_v26 = vld [vmem:[#allocation2 + $0x630] sm:$0xff] }
  0xe2   :  { %v2331_v15 = vld [vmem:[#allocation5 + $0x4f8] sm:$0xff]  ;;  %v1960_v35 = vadd.f32 %v1959_v20, %v759_v10  ;;  %v1499_v62 = vadd.f32 %v1498_v51, %v1497_v39  ;;  %v126_v10 = vld [vmem:[#allocation2 + $0x210] sm:$0xff]  ;;  %v1347_v22 = vadd.f32 %v1346_v11, %v1345_v1 }
  0xe3   :  { %v771_v17 = vld [vmem:[#allocation2 + $0x1638] sm:$0xff]  ;;  %2747 = vmatpush.msra.mxu1 %v2331_v15  ;;  %v174_v15 = vld [vmem:[#allocation2 + $0x390] sm:$0xff]  ;;  %v2492_v20 = vsel %vm2464_vm0, %v2091_v9, %v2079_v36  ;;  %v910_v28 = vadd.f32 %v909_v16, %v126_v10 }
  0xe4   :  { %v627_v30 = vld [vmem:[#allocation2 + $0x11b8] sm:$0xff]  ;;  %v1961_v46 = vadd.f32 %v1960_v35, %v771_v17  ;;  %v1500_v7 = vrot.slane %v1499_v62, 2  ;;  %v1062_v34 = vadd.f32 %v174_v15, %v162_v14  ;;  %v2115_v38 = vmul.f32 0.015625, %v1347_v22  ;;  %v282_v39 = vld [vmem:[#allocation2 + $0x6f0] sm:$0xff] }
  0xe5   :  { %v699_v31 = vld [vmem:[#allocation2 + $0x13f8] sm:$0xff]  ;;  %2748 = vmatpush.msra.mxu1 %v2330_v27  ;;  %v1653_v56 = vadd.f32 %v1652_v45, %v627_v30  ;;  %v270_v27 = vld [vmem:[#allocation2 + $0x690] sm:$0xff]  ;;  %v911_v36 = vadd.f32 %v910_v28, %v138_v21 }
  0xe6   :  { %v783_v37 = vld [vmem:[#allocation2 + $0x1698] sm:$0xff]  ;;  %v1807_v52 = vadd.f32 %v1806_v40, %v699_v31  ;;  %v1501_v17 = vadd.f32 %v1500_v7, %v1499_v62  ;;  %v2493_v31 = vsel %vm2466_vm1, %v2103_v19, %v2492_v20  ;;  %v1063_v44 = vadd.f32 %v1062_v34, %v186_v25  ;;  %v378_v55 = vld [vmem:[#allocation2 + $0x9f0] sm:$0xff] }
  0xe7   :  { %v711_v43 = vld [vmem:[#allocation2 + $0x1458] sm:$0xff]  ;;  %v1962_v57 = vadd.f32 %v1961_v46, %v783_v37  ;;  %2749 = vmatpush.msra.mxu1 %v2329_v41  ;;  %v1654_v2 = vrot.slane %v1653_v56, 4  ;;  %v1218_v45 = vadd.f32 %v270_v27, %v258_v26  ;;  %v912_v51 = vadd.f32 %v911_v36, %v150_v32  ;;  %v306_v60 = vld [vmem:[#allocation2 + $0x7b0] sm:$0xff] }
  0xe8   :  { %v795_v48 = vld [vmem:[#allocation2 + $0x16f8] sm:$0xff]  ;;  %v1808_v63 = vadd.f32 %v1807_v52, %v711_v43  ;;  %v1502_v29 = vrot.slane %v1501_v17, 1  ;;  %v366_v43 = vld [vmem:[#allocation2 + $0x990] sm:$0xff] }
  0xe9   :  { %v723_v54 = vld [vmem:[#allocation2 + $0x14b8] sm:$0xff]  ;;  %v1963_v3 = vadd.f32 %v1962_v57, %v795_v48  ;;  %v1655_v12 = vadd.f32 %v1654_v2, %v1653_v56  ;;  %v2494_v48 = vsel %vm2468_vm2, %v2115_v38, %v2493_v31  ;;  %v1064_v56 = vadd.f32 %v1063_v44, %v198_v33  ;;  %v450_v61 = vld [vmem:[#allocation2 + $0xc30] sm:$0xff] }
  0xea   :  { %v807_v59 = vld [vmem:[#allocation2 + $0x1758] sm:$0xff]  ;;  %v1809_v8 = vadd.f32 %v1808_v63, %v723_v54  ;;  %v1503_v40 = vadd.f32 %v1502_v29, %v1501_v17  ;;  %v222_v54 = vld [vmem:[#allocation2 + $0x510] sm:$0xff]  ;;  %v1219_v57 = vadd.f32 %v1218_v45, %v282_v39  ;;  %v913_v63 = vrot.slane %v912_v51, 4 }
  0xeb   :  { %v819_v5 = vld [vmem:[#allocation2 + $0x17b8] sm:$0xff]  ;;  %v1964_v13 = vadd.f32 %v1963_v3, %v807_v59  ;;  %v1656_v23 = vrot.slane %v1655_v12, 2  ;;  %v462_v62 = vld [vmem:[#allocation2 + $0xc90] sm:$0xff]  ;;  %v1374_v0 = vadd.f32 %v366_v43, %v354_v42 }
  0xec   :  { %v1810_v18 = vrot.slane %v1809_v8, 4  ;;  %v2127_v53 = vmul.f32 0.015625, %v1503_v40  ;;  %v234_v3 = vld [vmem:[#allocation2 + $0x570] sm:$0xff]  ;;  %v1220_v6 = vadd.f32 %v1219_v57, %v294_v50  ;;  %v1530_v21 = vadd.f32 %v462_v62, %v450_v61  ;;  %v2328_v57 = vld [vmem:[#allocation5 + $0x4e0] sm:$0xff] }
  0xed   :  { %v1965_v24 = vadd.f32 %v1964_v13, %v819_v5  ;;  %v1657_v35 = vadd.f32 %v1656_v23, %v1655_v12  ;;  %v390_v4 = vld [vmem:[#allocation2 + $0xa50] sm:$0xff]  ;;  %v1065_v5 = vadd.f32 %v1064_v56, %v210_v49  ;;  %v914_v13 = vadd.f32 %v913_v63, %v912_v51  ;;  %v2311_v56 = vld [vmem:[#allocation5 + $0x458] sm:$0xff]  ;;  %2750 = vmatpush.msra.mxu1 %v2328_v57 }
  0xee   :  { %v1811_v30 = vadd.f32 %v1810_v18, %v1809_v8  ;;  %v2495_v2 = vsel %vm2470_vm3, %v2127_v53, %v2494_v48  ;;  %v246_v9 = vld [vmem:[#allocation2 + $0x5d0] sm:$0xff]  ;;  %v1375_v14 = vadd.f32 %v1374_v0, %v378_v55  ;;  %v1221_v20 = vadd.f32 %v1220_v6, %v306_v60  ;;  %2731 = vmatpush.msra.mxu0 %v2311_v56 }
  0xef   :  { %v1966_v37 = vrot.slane %v1965_v24, 4  ;;  %v1658_v46 = vrot.slane %v1657_v35, 1  ;;  %v318_v10 = vld [vmem:[#allocation2 + $0x810] sm:$0xff]  ;;  %v1066_v19 = vadd.f32 %v1065_v5, %v222_v54  ;;  %v915_v27 = vrot.slane %v914_v13, 2 }
  0xf0   :  { %v1812_v41 = vrot.slane %v1811_v30, 2  ;;  %v330_v11 = vld [vmem:[#allocation2 + $0x870] sm:$0xff]  ;;  %v1376_v28 = vadd.f32 %v1375_v14, %v390_v4  ;;  %v64_v14 = vld [vmem:[#allocation2 + $0x20] sm:$0xff] }
  0xf1   :  { %v1967_v47 = vadd.f32 %v1966_v37, %v1965_v24  ;;  %v1659_v58 = vadd.f32 %v1658_v46, %v1657_v35  ;;  %v474_v12 = vld [vmem:[#allocation2 + $0xcf0] sm:$0xff]  ;;  %v1067_v34 = vadd.f32 %v1066_v19, %v234_v3  ;;  %v1222_v35 = vadd.f32 %v1221_v20, %v318_v10 }
  0xf2   :  { %v1813_v52 = vadd.f32 %v1812_v41, %v1811_v30  ;;  %v402_v16 = vld [vmem:[#allocation2 + $0xab0] sm:$0xff]  ;;  %v1531_v37 = vadd.f32 %v1530_v21, %v474_v12  ;;  %v916_v40 = vadd.f32 %v915_v27, %v914_v13 }
  0xf3   :  { %v1968_v59 = vrot.slane %v1967_v47, 2  ;;  %v2139_v8 = vmul.f32 0.015625, %v1659_v58  ;;  %v546_v17 = vld [vmem:[#allocation2 + $0xf30] sm:$0xff]  ;;  %v1377_v41 = vadd.f32 %v1376_v28, %v402_v16  ;;  %v1068_v48 = vadd.f32 %v1067_v34, %v246_v9  ;;  %v2343_v58 = vld [vmem:[#allocation5 + $0x558] sm:$0xff] }
  0xf4   :  { %v1814_v1 = vrot.slane %v1813_v52, 1  ;;  %v558_v18 = vld [vmem:[#allocation2 + $0xf90] sm:$0xff]  ;;  %v1223_v49 = vadd.f32 %v1222_v35, %v330_v11  ;;  %v917_v53 = vrot.slane %v916_v40, 1  ;;  %2771 = vmatpush.msra.mxu2 %v2343_v58 }
  0xf5   :  { %v1969_v7 = vadd.f32 %v1968_v59, %v1967_v47  ;;  %v2496_v23 = vsel %vm2472_vm4, %v2139_v8, %v2495_v2  ;;  %v342_v24 = vld [vmem:[#allocation2 + $0x8d0] sm:$0xff]  ;;  %v1686_v42 = vadd.f32 %v558_v18, %v546_v17  ;;  %v2363_v59 = vld [vmem:[#allocation5 + $0x5f8] sm:$0xff]  ;;  %v1069_v62 = vrot.slane %v1068_v48, 4 }
  0xf6   :  { %v1815_v15 = vadd.f32 %v1814_v1, %v1813_v52  ;;  %v414_v25 = vld [vmem:[#allocation2 + $0xb10] sm:$0xff]  ;;  %v1224_v63 = vadd.f32 %v1223_v49, %v342_v24  ;;  %v918_v6 = vadd.f32 %v917_v53, %v916_v40  ;;  %v112_v53 = vld [vmem:[#allocation2 + $0x1a0] sm:$0xff] }
  0xf7   :  { %v1970_v22 = vrot.slane %v1969_v7, 1  ;;  %v486_v26 = vld [vmem:[#allocation2 + $0xd50] sm:$0xff]  ;;  %v1378_v54 = vadd.f32 %v1377_v41, %v414_v25  ;;  %v1070_v10 = vadd.f32 %v1069_v62, %v1068_v48  ;;  %v2360_v41 = vld [vmem:[#allocation5 + $0x5e0] sm:$0xff] }
  0xf8   :  { %v2151_v29 = vmul.f32 0.015625, %v1815_v15  ;;  %v426_v30 = vld [vmem:[#allocation2 + $0xb70] sm:$0xff]  ;;  %v1532_v50 = vadd.f32 %v1531_v37, %v486_v26  ;;  %v1225_v11 = vrot.slane %v1224_v63, 4  ;;  %v76_v15 = vld [vmem:[#allocation2 + $0x80] sm:$0xff] }
  0xf9   :  { %v498_v31 = vld [vmem:[#allocation2 + $0xdb0] sm:$0xff]  ;;  %v1971_v38 = vadd.f32 %v1970_v22, %v1969_v7  ;;  %v1379_v7 = vadd.f32 %v1378_v54, %v426_v30  ;;  %v3002_v22 = vmul.f32 0.015625, %v918_v6  ;;  %v1071_v25 = vrot.slane %v1070_v10, 2 }
  0xfa   :  { %v570_v32 = vld [vmem:[#allocation2 + $0xff0] sm:$0xff]  ;;  %v2497_v43 = vsel %vm2474_vm5, %v2151_v29, %v2496_v23  ;;  %v1533_v0 = vadd.f32 %v1532_v50, %v498_v31  ;;  %v2361_v23 = vld [vmem:[#allocation5 + $0x5e8] sm:$0xff]  ;;  %v1226_v26 = vadd.f32 %v1225_v11, %v1224_v63  ;;  %v88_v29 = vld [vmem:[#allocation2 + $0xe0] sm:$0xff]  ;;  %v880_v37 = vadd.f32 %v76_v15, %v64_v14 }
  0xfb   :  { %v510_v33 = vld [vmem:[#allocation2 + $0xe10] sm:$0xff]  ;;  %v2163_v51 = vmul.f32 0.015625, %v1971_v38  ;;  %v1687_v55 = vadd.f32 %v1686_v42, %v570_v32  ;;  %v100_v42 = vld [vmem:[#allocation2 + $0x140] sm:$0xff] }
  0xfc   :  { %v642_v39 = vld [vmem:[#allocation2 + $0x1230] sm:$0xff]  ;;  %v1534_v12 = vadd.f32 %v1533_v0, %v510_v33  ;;  %v1072_v33 = vadd.f32 %v1071_v25, %v1070_v10  ;;  %v124_v0 = vld [vmem:[#allocation2 + $0x200] sm:$0xff] }
  0xfd   :  { %v654_v36 = vld [vmem:[#allocation2 + $0x1290] sm:$0xff]  ;;  %v2498_v2 = vsel %vm2476_vm6, %v2163_v51, %v2497_v43  ;;  %v136_v10 = vld [vmem:[#allocation2 + $0x260] sm:$0xff] }
  0xfe   :  { %v438_v44 = vld [vmem:[#allocation2 + $0xbd0] sm:$0xff]  ;;  %v1842_v1 = vadd.f32 %v654_v36, %v642_v39  ;;  %2643 = vmatmul.f32.vlgmr.msra.gmra.mxu3 %v2498_v2  ;;  %v1227_v39 = vrot.slane %v1226_v26, 2  ;;  %v1073_v49 = vrot.slane %v1072_v33, 1  ;;  %v160_v14 = vld [vmem:[#allocation2 + $0x320] sm:$0xff] }
  0xff   :  { %v582_v45 = vld [vmem:[#allocation2 + $0x1050] sm:$0xff]  ;;  %2787 = vmatpush.msra.mxu3 %v2363_v59  ;;  %v1380_v19 = vadd.f32 %v1379_v7, %v438_v44  ;;  %v172_v15 = vld [vmem:[#allocation2 + $0x380] sm:$0xff] }
 0x100   :  { %v594_v46 = vld [vmem:[#allocation2 + $0x10b0] sm:$0xff]  ;;  %v1688_v8 = vadd.f32 %v1687_v55, %v582_v45  ;;  %v1228_v50 = vadd.f32 %v1227_v39, %v1226_v26  ;;  %v184_v26 = vld [vmem:[#allocation2 + $0x3e0] sm:$0xff] }
 0x101   :  { %v666_v47 = vld [vmem:[#allocation2 + $0x12f0] sm:$0xff]  ;;  %v1381_v32 = vrot.slane %v1380_v19, 4  ;;  %v280_v39 = vld [vmem:[#allocation2 + $0x6e0] sm:$0xff] }
 0x102   :  { %v522_v52 = vld [vmem:[#allocation2 + $0xe70] sm:$0xff]  ;;  %v1843_v13 = vadd.f32 %v1842_v1, %v666_v47  ;;  %v1689_v20 = vadd.f32 %v1688_v8, %v594_v46  ;;  %v881_v47 = vadd.f32 %v880_v37, %v88_v29 }
 0x103   :  { %v738_v60 = vld [vmem:[#allocation2 + $0x1530] sm:$0xff]  ;;  %v1535_v27 = vadd.f32 %v1534_v12, %v522_v52  ;;  %v1382_v44 = vadd.f32 %v1381_v32, %v1380_v19 }
 0x104   :  { %v750_v61 = vld [vmem:[#allocation2 + $0x1590] sm:$0xff]  ;;  %v882_v58 = vadd.f32 %v881_v47, %v100_v42  ;;  %v364_v42 = vld [vmem:[#allocation2 + $0x980] sm:$0xff] }
 0x105   :  { %v606_v3 = vld [vmem:[#allocation2 + $0x1110] sm:$0xff]  ;;  %v1998_v21 = vadd.f32 %v750_v61, %v738_v60  ;;  %v1383_v55 = vrot.slane %v1382_v44, 2  ;;  %v1074_v60 = vadd.f32 %v1073_v49, %v1072_v33  ;;  %v1229_v61 = vrot.slane %v1228_v50, 1  ;;  %v196_v33 = vld [vmem:[#allocation2 + $0x440] sm:$0xff] }
 0x106   :  { %v678_v4 = vld [vmem:[#allocation2 + $0x1350] sm:$0xff]  ;;  %v1690_v34 = vadd.f32 %v1689_v20, %v606_v3  ;;  %v292_v49 = vld [vmem:[#allocation2 + $0x740] sm:$0xff] }
 0x107   :  { %v762_v5 = vld [vmem:[#allocation2 + $0x15f0] sm:$0xff]  ;;  %v1844_v28 = vadd.f32 %v1843_v13, %v678_v4  ;;  %v1384_v1 = vadd.f32 %v1383_v55, %v1382_v44  ;;  %v883_v4 = vadd.f32 %v882_v58, %v112_v53  ;;  %v1230_v6 = vadd.f32 %v1229_v61, %v1228_v50  ;;  %v220_v53 = vld [vmem:[#allocation2 + $0x500] sm:$0xff] }
 0x108   :  { %v2362_v9 = vld [vmem:[#allocation5 + $0x5f0] sm:$0xff]  ;;  %v1999_v35 = vadd.f32 %v1998_v21, %v762_v5  ;;  %v148_v21 = vld [vmem:[#allocation2 + $0x2c0] sm:$0xff] }
 0x109   :  { %v534_v16 = vld [vmem:[#allocation2 + $0xed0] sm:$0xff]  ;;  %2788 = vmatpush.msra.mxu3 %v2362_v9  ;;  %v2094_v9 = vmul.f32 0.015625, %v1074_v60  ;;  %v1385_v11 = vrot.slane %v1384_v1, 1  ;;  %v2106_v19 = vmul.f32 0.015625, %v1230_v6  ;;  %v448_v60 = vld [vmem:[#allocation2 + $0xc20] sm:$0xff] }
 0x10a   :  { %v618_v17 = vld [vmem:[#allocation2 + $0x1170] sm:$0xff]  ;;  %v1536_v36 = vadd.f32 %v1535_v27, %v534_v16  ;;  %v884_v16 = vadd.f32 %v883_v4, %v124_v0  ;;  %v256_v27 = vld [vmem:[#allocation2 + $0x620] sm:$0xff] }
 0x10b   :  { %v690_v18 = vld [vmem:[#allocation2 + $0x13b0] sm:$0xff]  ;;  %2789 = vmatpush.msra.mxu3 %v2361_v23  ;;  %v1691_v45 = vadd.f32 %v1690_v34, %v618_v17  ;;  %v2513_v20 = vsel %vm2464_vm0, %v2094_v9, %v3002_v22  ;;  %v1386_v23 = vadd.f32 %v1385_v11, %v1384_v1  ;;  %v1036_v34 = vadd.f32 %v172_v15, %v160_v14  ;;  %v460_v61 = vld [vmem:[#allocation2 + $0xc80] sm:$0xff] }
 0x10c   :  { %v774_v24 = vld [vmem:[#allocation2 + $0x1650] sm:$0xff]  ;;  %v1845_v40 = vadd.f32 %v1844_v28, %v690_v18  ;;  %v1537_v51 = vrot.slane %v1536_v36, 4  ;;  %v268_v28 = vld [vmem:[#allocation2 + $0x680] sm:$0xff]  ;;  %v885_v29 = vadd.f32 %v884_v16, %v136_v10  ;;  %v2514_v32 = vsel %vm2466_vm1, %v2106_v19, %v2513_v20 }
 0x10d   :  { %v630_v30 = vld [vmem:[#allocation2 + $0x11d0] sm:$0xff]  ;;  %v2000_v46 = vadd.f32 %v1999_v35, %v774_v24  ;;  %2790 = vmatpush.msra.mxu3 %v2360_v41  ;;  %v352_v41 = vld [vmem:[#allocation2 + $0x920] sm:$0xff]  ;;  %v1192_v44 = vadd.f32 %v268_v28, %v256_v27  ;;  %v1504_v19 = vadd.f32 %v460_v61, %v448_v60 }
 0x10e   :  { %v702_v31 = vld [vmem:[#allocation2 + $0x1410] sm:$0xff]  ;;  %v1692_v56 = vadd.f32 %v1691_v45, %v630_v30  ;;  %v1538_v62 = vadd.f32 %v1537_v51, %v1536_v36  ;;  %v886_v36 = vadd.f32 %v885_v29, %v148_v21  ;;  %v316_v9 = vld [vmem:[#allocation2 + $0x800] sm:$0xff] }
 0x10f   :  { %v786_v38 = vld [vmem:[#allocation2 + $0x16b0] sm:$0xff]  ;;  %v1846_v52 = vadd.f32 %v1845_v40, %v702_v31  ;;  %v472_v10 = vld [vmem:[#allocation2 + $0xce0] sm:$0xff] }
 0x110   :  { %v714_v43 = vld [vmem:[#allocation2 + $0x1470] sm:$0xff]  ;;  %v2001_v57 = vadd.f32 %v2000_v46, %v786_v38  ;;  %v1693_v2 = vrot.slane %v1692_v56, 4  ;;  %v1539_v7 = vrot.slane %v1538_v62, 2  ;;  %v2118_v38 = vmul.f32 0.015625, %v1386_v23  ;;  %v400_v14 = vld [vmem:[#allocation2 + $0xaa0] sm:$0xff] }
 0x111   :  { %v798_v48 = vld [vmem:[#allocation2 + $0x1710] sm:$0xff]  ;;  %v1847_v63 = vadd.f32 %v1846_v52, %v714_v43  ;;  %v1037_v43 = vadd.f32 %v1036_v34, %v184_v26  ;;  %v887_v50 = vrot.slane %v886_v36, 4  ;;  %v544_v15 = vld [vmem:[#allocation2 + $0xf20] sm:$0xff] }
 0x112   :  { %v726_v54 = vld [vmem:[#allocation2 + $0x14d0] sm:$0xff]  ;;  %v2002_v3 = vadd.f32 %v2001_v57, %v798_v48  ;;  %v1694_v12 = vadd.f32 %v1693_v2, %v1692_v56  ;;  %v1540_v17 = vadd.f32 %v1539_v7, %v1538_v62  ;;  %v2515_v47 = vsel %vm2468_vm2, %v2118_v38, %v2514_v32  ;;  %v208_v48 = vld [vmem:[#allocation2 + $0x4a0] sm:$0xff] }
 0x113   :  { %v810_v59 = vld [vmem:[#allocation2 + $0x1770] sm:$0xff]  ;;  %v1848_v8 = vadd.f32 %v1847_v63, %v726_v54  ;;  %v376_v54 = vld [vmem:[#allocation2 + $0x9e0] sm:$0xff]  ;;  %v1038_v55 = vadd.f32 %v1037_v43, %v196_v33  ;;  %v1193_v56 = vadd.f32 %v1192_v44, %v280_v39  ;;  %v888_v62 = vadd.f32 %v887_v50, %v886_v36 }
 0x114   :  { %v822_v5 = vld [vmem:[#allocation2 + $0x17d0] sm:$0xff]  ;;  %v2003_v13 = vadd.f32 %v2002_v3, %v810_v59  ;;  %v1695_v24 = vrot.slane %v1694_v12, 2  ;;  %v1541_v30 = vrot.slane %v1540_v17, 1  ;;  %v304_v59 = vld [vmem:[#allocation2 + $0x7a0] sm:$0xff]  ;;  %v1348_v63 = vadd.f32 %v364_v42, %v352_v41 }
 0x115   :  { %v1849_v18 = vrot.slane %v1848_v8, 4  ;;  %v232_v2 = vld [vmem:[#allocation2 + $0x560] sm:$0xff]  ;;  %v1039_v4 = vadd.f32 %v1038_v55, %v208_v48  ;;  %v889_v11 = vrot.slane %v888_v62, 2 }
 0x116   :  { %v2004_v25 = vadd.f32 %v2003_v13, %v822_v5  ;;  %v1696_v35 = vadd.f32 %v1695_v24, %v1694_v12  ;;  %v1542_v22 = vadd.f32 %v1541_v30, %v1540_v17  ;;  %v388_v3 = vld [vmem:[#allocation2 + $0xa40] sm:$0xff]  ;;  %v1194_v5 = vadd.f32 %v1193_v56, %v292_v49 }
 0x117   :  { %v1850_v31 = vadd.f32 %v1849_v18, %v1848_v8  ;;  %v244_v8 = vld [vmem:[#allocation2 + $0x5c0] sm:$0xff]  ;;  %v1349_v12 = vadd.f32 %v1348_v63, %v376_v54  ;;  %v1040_v17 = vadd.f32 %v1039_v4, %v220_v53  ;;  %v890_v26 = vadd.f32 %v889_v11, %v888_v62 }
 0x118   :  { %v2005_v37 = vrot.slane %v2004_v25, 4  ;;  %v1697_v45 = vrot.slane %v1696_v35, 1  ;;  %v2130_v52 = vmul.f32 0.015625, %v1542_v22  ;;  %v556_v16 = vld [vmem:[#allocation2 + $0xf80] sm:$0xff]  ;;  %v1195_v18 = vadd.f32 %v1194_v5, %v304_v59 }
 0x119   :  { %v1851_v40 = vrot.slane %v1850_v31, 2  ;;  %v328_v23 = vld [vmem:[#allocation2 + $0x860] sm:$0xff]  ;;  %v1350_v27 = vadd.f32 %v1349_v12, %v388_v3  ;;  %v1041_v32 = vadd.f32 %v1040_v17, %v232_v2  ;;  %v891_v36 = vrot.slane %v890_v26, 1 }
 0x11a   :  { %v2006_v46 = vadd.f32 %v2005_v37, %v2004_v25  ;;  %v1698_v57 = vadd.f32 %v1697_v45, %v1696_v35  ;;  %v2516_v1 = vsel %vm2470_vm3, %v2130_v52, %v2515_v47  ;;  %v340_v24 = vld [vmem:[#allocation2 + $0x8c0] sm:$0xff]  ;;  %v1196_v34 = vadd.f32 %v1195_v18, %v316_v9  ;;  %v67_v9 = vld [vmem:[#allocation2 + $0x38] sm:$0xff] }
 0x11b   :  { %v1852_v51 = vadd.f32 %v1851_v40, %v1850_v31  ;;  %v484_v25 = vld [vmem:[#allocation2 + $0xd40] sm:$0xff]  ;;  %v1505_v35 = vadd.f32 %v1504_v19, %v472_v10  ;;  %v1351_v22 = vadd.f32 %v1350_v27, %v400_v14  ;;  %v1660_v40 = vadd.f32 %v556_v16, %v544_v15  ;;  %v79_v10 = vld [vmem:[#allocation2 + $0x98] sm:$0xff] }
 0x11c   :  { %v2007_v58 = vrot.slane %v2006_v46, 2  ;;  %v2142_v7 = vmul.f32 0.015625, %v1698_v57  ;;  %v412_v29 = vld [vmem:[#allocation2 + $0xb00] sm:$0xff]  ;;  %v1042_v45 = vadd.f32 %v1041_v32, %v244_v8 }
 0x11d   :  { %v1853_v0 = vrot.slane %v1852_v51, 1  ;;  %v424_v30 = vld [vmem:[#allocation2 + $0xb60] sm:$0xff]  ;;  %v1506_v47 = vadd.f32 %v1505_v35, %v484_v25  ;;  %v1352_v52 = vadd.f32 %v1351_v22, %v412_v29  ;;  %v919_v29 = vadd.f32 %v79_v10, %v67_v9 }
 0x11e   :  { %v2008_v6 = vadd.f32 %v2007_v58, %v2006_v46  ;;  %v2517_v21 = vsel %vm2472_vm4, %v2142_v7, %v2516_v1  ;;  %v568_v31 = vld [vmem:[#allocation2 + $0xfe0] sm:$0xff]  ;;  %v1197_v46 = vadd.f32 %v1196_v34, %v328_v23  ;;  %v1043_v57 = vrot.slane %v1042_v45, 4 }
 0x11f   :  { %v1854_v13 = vadd.f32 %v1853_v0, %v1852_v51  ;;  %v496_v38 = vld [vmem:[#allocation2 + $0xda0] sm:$0xff]  ;;  %v892_v51 = vadd.f32 %v891_v36, %v890_v26  ;;  %v1661_v53 = vadd.f32 %v1660_v40, %v568_v31  ;;  %v1353_v1 = vadd.f32 %v1352_v52, %v424_v30 }
 0x120   :  { %v2009_v20 = vrot.slane %v2008_v6, 1  ;;  %v640_v33 = vld [vmem:[#allocation2 + $0x1220] sm:$0xff]  ;;  %v1198_v58 = vadd.f32 %v1197_v46, %v340_v24  ;;  %v1507_v59 = vadd.f32 %v1506_v47, %v496_v38  ;;  %v1044_v5 = vadd.f32 %v1043_v57, %v1042_v45  ;;  %v91_v24 = vld [vmem:[#allocation2 + $0xf8] sm:$0xff] }
 0x121   :  { %v2154_v28 = vmul.f32 0.015625, %v1854_v13  ;;  %v652_v39 = vld [vmem:[#allocation2 + $0x1280] sm:$0xff]  ;;  %v2080_v16 = vmul.f32 0.015625, %v892_v51  ;;  %v103_v38 = vld [vmem:[#allocation2 + $0x158] sm:$0xff]  ;;  %v920_v40 = vadd.f32 %v919_v29, %v91_v24 }
 0x122   :  { %v2010_v37 = vadd.f32 %v2009_v20, %v2008_v6  ;;  %v580_v42 = vld [vmem:[#allocation2 + $0x1040] sm:$0xff]  ;;  %v1816_v60 = vadd.f32 %v652_v39, %v640_v33  ;;  %v1199_v6 = vrot.slane %v1198_v58, 4  ;;  %v1045_v19 = vrot.slane %v1044_v5, 2  ;;  %v115_v46 = vld [vmem:[#allocation2 + $0x1b8] sm:$0xff] }
 0x123   :  { %v2518_v41 = vsel %vm2474_vm5, %v2154_v28, %v2517_v21  ;;  %v736_v43 = vld [vmem:[#allocation2 + $0x1520] sm:$0xff]  ;;  %v1662_v2 = vadd.f32 %v1661_v53, %v580_v42  ;;  %v921_v51 = vadd.f32 %v920_v40, %v103_v38  ;;  %v127_v57 = vld [vmem:[#allocation2 + $0x218] sm:$0xff] }
 0x124   :  { %v748_v44 = vld [vmem:[#allocation2 + $0x1580] sm:$0xff]  ;;  %v2166_v48 = vmul.f32 0.015625, %v2010_v37  ;;  %v1200_v20 = vadd.f32 %v1199_v6, %v1198_v58  ;;  %v1046_v32 = vadd.f32 %v1045_v19, %v1044_v5  ;;  %v163_v6 = vld [vmem:[#allocation2 + $0x338] sm:$0xff] }
 0x125   :  { %v508_v49 = vld [vmem:[#allocation2 + $0xe00] sm:$0xff]  ;;  %v1972_v3 = vadd.f32 %v748_v44, %v736_v43  ;;  %v259_v19 = vld [vmem:[#allocation2 + $0x638] sm:$0xff] }
 0x126   :  { %v664_v50 = vld [vmem:[#allocation2 + $0x12e0] sm:$0xff]  ;;  %v2519_v61 = vsel %vm2476_vm6, %v2166_v48, %v2518_v41  ;;  %v1508_v7 = vadd.f32 %v1507_v59, %v508_v49  ;;  %v1201_v34 = vrot.slane %v1200_v20, 2  ;;  %v1047_v42 = vrot.slane %v1046_v32, 1  ;;  %v211_v40 = vld [vmem:[#allocation2 + $0x4b8] sm:$0xff] }
 0x127   :  { %v436_v54 = vld [vmem:[#allocation2 + $0xbc0] sm:$0xff]  ;;  %2703 = vmatmul.f32.vlgmr.msrb.gmra.mxu2 %v2519_v61  ;;  %v1817_v8 = vadd.f32 %v1816_v60, %v664_v50  ;;  %v922_v61 = vadd.f32 %v921_v51, %v115_v46  ;;  %v379_v46 = vld [vmem:[#allocation2 + $0x9f8] sm:$0xff] }
 0x128   :  { %v592_v55 = vld [vmem:[#allocation2 + $0x10a0] sm:$0xff]  ;;  %v1354_v13 = vadd.f32 %v1353_v1, %v436_v54  ;;  %v1202_v43 = vadd.f32 %v1201_v34, %v1200_v20  ;;  %v1048_v53 = vadd.f32 %v1047_v42, %v1046_v32  ;;  %v271_v20 = vld [vmem:[#allocation2 + $0x698] sm:$0xff] }
 0x129   :  { %v760_v56 = vld [vmem:[#allocation2 + $0x15e0] sm:$0xff]  ;;  %v1663_v14 = vadd.f32 %v1662_v2, %v592_v55  ;;  %v139_v2 = vld [vmem:[#allocation2 + $0x278] sm:$0xff] }
 0x12a   :  { %v520_v62 = vld [vmem:[#allocation2 + $0xe60] sm:$0xff]  ;;  %v1973_v15 = vadd.f32 %v1972_v3, %v760_v56  ;;  %v1355_v26 = vrot.slane %v1354_v13, 4  ;;  %v1203_v54 = vrot.slane %v1202_v43, 1  ;;  %v2092_v1 = vmul.f32 0.015625, %v1048_v53  ;;  %v307_v51 = vld [vmem:[#allocation2 + $0x7b8] sm:$0xff] }
 0x12b   :  { %v604_v63 = vld [vmem:[#allocation2 + $0x1100] sm:$0xff]  ;;  %v1509_v21 = vadd.f32 %v1508_v7, %v520_v62  ;;  %v175_v7 = vld [vmem:[#allocation2 + $0x398] sm:$0xff] }
 0x12c   :  { %v676_v0 = vld [vmem:[#allocation2 + $0x1340] sm:$0xff]  ;;  %v1664_v27 = vadd.f32 %v1663_v14, %v604_v63  ;;  %v1356_v39 = vadd.f32 %v1355_v26, %v1354_v13  ;;  %v1204_v62 = vadd.f32 %v1203_v54, %v1202_v43  ;;  %v151_v13 = vld [vmem:[#allocation2 + $0x2d8] sm:$0xff]  ;;  %v1075_v26 = vadd.f32 %v175_v7, %v163_v6 }
 0x12d   :  { %v772_v4 = vld [vmem:[#allocation2 + $0x1640] sm:$0xff]  ;;  %v1818_v23 = vadd.f32 %v1817_v8, %v676_v0  ;;  %v923_v8 = vadd.f32 %v922_v61, %v127_v57  ;;  %v463_v53 = vld [vmem:[#allocation2 + $0xc98] sm:$0xff] }
 0x12e   :  { %v532_v11 = vld [vmem:[#allocation2 + $0xec0] sm:$0xff]  ;;  %v1974_v28 = vadd.f32 %v1973_v15, %v772_v4  ;;  %v1357_v48 = vrot.slane %v1356_v39, 2 }
 0x12f   :  { %v688_v12 = vld [vmem:[#allocation2 + $0x13a0] sm:$0xff]  ;;  %v1510_v35 = vadd.f32 %v1509_v21, %v532_v11  ;;  %v2104_v11 = vmul.f32 0.015625, %v1204_v62  ;;  %v924_v21 = vadd.f32 %v923_v8, %v139_v2  ;;  %v331_v2 = vld [vmem:[#allocation2 + $0x878] sm:$0xff] }
 0x130   :  { %v616_v17 = vld [vmem:[#allocation2 + $0x1160] sm:$0xff]  ;;  %v1819_v37 = vadd.f32 %v1818_v23, %v688_v12  ;;  %v1358_v58 = vadd.f32 %v1357_v48, %v1356_v39  ;;  %v2499_v12 = vsel %vm2464_vm0, %v2092_v1, %v2080_v16  ;;  %v247_v1 = vld [vmem:[#allocation2 + $0x5d8] sm:$0xff] }
 0x131   :  { %v784_v18 = vld [vmem:[#allocation2 + $0x16a0] sm:$0xff]  ;;  %v1665_v36 = vadd.f32 %v1664_v27, %v616_v17  ;;  %v1511_v44 = vrot.slane %v1510_v35, 4  ;;  %v925_v32 = vadd.f32 %v924_v21, %v151_v13  ;;  %v415_v8 = vld [vmem:[#allocation2 + $0xb18] sm:$0xff] }
 0x132   :  { %v700_v25 = vld [vmem:[#allocation2 + $0x1400] sm:$0xff]  ;;  %v1975_v22 = vadd.f32 %v1974_v28, %v784_v18  ;;  %v1359_v3 = vrot.slane %v1358_v58, 1  ;;  %v187_v18 = vld [vmem:[#allocation2 + $0x3f8] sm:$0xff] }
 0x133   :  { %v628_v30 = vld [vmem:[#allocation2 + $0x11c0] sm:$0xff]  ;;  %v1820_v45 = vadd.f32 %v1819_v37, %v700_v25  ;;  %v1512_v55 = vadd.f32 %v1511_v44, %v1510_v35  ;;  %v2500_v25 = vsel %vm2466_vm1, %v2104_v11, %v2499_v12  ;;  %v355_v35 = vld [vmem:[#allocation2 + $0x938] sm:$0xff]  ;;  %v1076_v38 = vadd.f32 %v1075_v26, %v187_v18 }
 0x134   :  { %v796_v31 = vld [vmem:[#allocation2 + $0x1700] sm:$0xff]  ;;  %v1666_v49 = vadd.f32 %v1665_v36, %v628_v30  ;;  %v1360_v14 = vadd.f32 %v1359_v3, %v1358_v58  ;;  %v199_v30 = vld [vmem:[#allocation2 + $0x458] sm:$0xff]  ;;  %v926_v42 = vrot.slane %v925_v32, 4 }
 0x135   :  { %v712_v33 = vld [vmem:[#allocation2 + $0x1460] sm:$0xff]  ;;  %v1976_v50 = vadd.f32 %v1975_v22, %v796_v31  ;;  %v1513_v63 = vrot.slane %v1512_v55, 2  ;;  %v283_v31 = vld [vmem:[#allocation2 + $0x6f8] sm:$0xff] }
 0x136   :  { %v808_v41 = vld [vmem:[#allocation2 + $0x1760] sm:$0xff]  ;;  %v1821_v56 = vadd.f32 %v1820_v45, %v712_v33  ;;  %v1667_v59 = vrot.slane %v1666_v49, 4  ;;  %v2116_v29 = vmul.f32 0.015625, %v1360_v14  ;;  %v367_v37 = vld [vmem:[#allocation2 + $0x998] sm:$0xff]  ;;  %v1231_v33 = vadd.f32 %v271_v20, %v259_v19 }
 0x137   :  { %v724_v47 = vld [vmem:[#allocation2 + $0x14c0] sm:$0xff]  ;;  %v1977_v60 = vadd.f32 %v1976_v50, %v808_v41  ;;  %v1514_v9 = vadd.f32 %v1513_v63, %v1512_v55  ;;  %v295_v41 = vld [vmem:[#allocation2 + $0x758] sm:$0xff]  ;;  %v927_v54 = vadd.f32 %v926_v42, %v925_v32  ;;  %v1387_v55 = vadd.f32 %v367_v37, %v355_v35  ;;  %v2310_v37 = vld [vmem:[#allocation5 + $0x450] sm:$0xff] }
 0x138   :  { %v820_v52 = vld [vmem:[#allocation2 + $0x17c0] sm:$0xff]  ;;  %v1822_v0 = vadd.f32 %v1821_v56, %v724_v47  ;;  %v1668_v4 = vadd.f32 %v1667_v59, %v1666_v49  ;;  %v2501_v22 = vsel %vm2468_vm2, %v2116_v29, %v2500_v25  ;;  %v223_v45 = vld [vmem:[#allocation2 + $0x518] sm:$0xff]  ;;  %v1077_v47 = vadd.f32 %v1076_v38, %v199_v30  ;;  %2732 = vmatpush.msra.mxu0 %v2310_v37 }
 0x139   :  { %v1978_v5 = vadd.f32 %v1977_v60, %v820_v52  ;;  %v1515_v23 = vrot.slane %v1514_v9, 1  ;;  %v1232_v48 = vadd.f32 %v1231_v33, %v283_v31  ;;  %v451_v52 = vld [vmem:[#allocation2 + $0xc38] sm:$0xff]  ;;  %v1388_v6 = vadd.f32 %v1387_v55, %v379_v46  ;;  %v2342_v33 = vld [vmem:[#allocation5 + $0x550] sm:$0xff] }
 0x13a   :  { %v1823_v10 = vrot.slane %v1822_v0, 4  ;;  %v1669_v15 = vrot.slane %v1668_v4, 2  ;;  %v235_v58 = vld [vmem:[#allocation2 + $0x578] sm:$0xff]  ;;  %v1078_v61 = vadd.f32 %v1077_v47, %v211_v40  ;;  %v1543_v13 = vadd.f32 %v463_v53, %v451_v52  ;;  %2772 = vmatpush.msra.mxu2 %v2342_v33 }
 0x13b   :  { %v1979_v17 = vrot.slane %v1978_v5, 4  ;;  %v1516_v16 = vadd.f32 %v1515_v23, %v1514_v9  ;;  %v319_v59 = vld [vmem:[#allocation2 + $0x818] sm:$0xff]  ;;  %v1233_v62 = vadd.f32 %v1232_v48, %v295_v41 }
 0x13c   :  { %v1824_v24 = vadd.f32 %v1823_v10, %v1822_v0  ;;  %v1670_v27 = vadd.f32 %v1669_v15, %v1668_v4  ;;  %v391_v60 = vld [vmem:[#allocation2 + $0xa58] sm:$0xff]  ;;  %v1079_v11 = vadd.f32 %v1078_v61, %v223_v45 }
 0x13d   :  { %v1980_v28 = vadd.f32 %v1979_v17, %v1978_v5  ;;  %v2128_v44 = vmul.f32 0.015625, %v1516_v16  ;;  %v403_v3 = vld [vmem:[#allocation2 + $0xab8] sm:$0xff]  ;;  %v928_v5 = vrot.slane %v927_v54, 2  ;;  %v1234_v12 = vadd.f32 %v1233_v62, %v307_v51 }
 0x13e   :  { %v1825_v34 = vrot.slane %v1824_v24, 2  ;;  %v1671_v39 = vrot.slane %v1670_v27, 1  ;;  %v475_v4 = vld [vmem:[#allocation2 + $0xcf8] sm:$0xff]  ;;  %v1389_v23 = vadd.f32 %v1388_v6, %v391_v60  ;;  %v1080_v29 = vadd.f32 %v1079_v11, %v235_v58  ;;  %v77_v58 = vld [vmem:[#allocation2 + $0x88] sm:$0xff] }
 0x13f   :  { %v1981_v36 = vrot.slane %v1980_v28, 2  ;;  %v2502_v57 = vsel %vm2470_vm3, %v2128_v44, %v2501_v22  ;;  %v547_v9 = vld [vmem:[#allocation2 + $0xf38] sm:$0xff]  ;;  %v929_v21 = vadd.f32 %v928_v5, %v927_v54  ;;  %v1235_v30 = vadd.f32 %v1234_v12, %v319_v59 }
 0x140   :  { %v1826_v43 = vadd.f32 %v1825_v34, %v1824_v24  ;;  %v1672_v49 = vadd.f32 %v1671_v39, %v1670_v27  ;;  %v559_v10 = vld [vmem:[#allocation2 + $0xf98] sm:$0xff]  ;;  %v1544_v31 = vadd.f32 %v1543_v13, %v475_v4  ;;  %v1390_v34 = vadd.f32 %v1389_v23, %v403_v3 }
 0x141   :  { %v1982_v50 = vadd.f32 %v1981_v36, %v1980_v28  ;;  %v343_v17 = vld [vmem:[#allocation2 + $0x8d8] sm:$0xff]  ;;  %v930_v16 = vrot.slane %v929_v21, 1  ;;  %v1699_v35 = vadd.f32 %v559_v10, %v547_v9  ;;  %v1081_v41 = vadd.f32 %v1080_v29, %v247_v1 }
 0x142   :  { %v1827_v56 = vrot.slane %v1826_v43, 1  ;;  %v2140_v0 = vmul.f32 0.015625, %v1672_v49  ;;  %v487_v18 = vld [vmem:[#allocation2 + $0xd58] sm:$0xff]  ;;  %v1236_v42 = vadd.f32 %v1235_v30, %v331_v2 }
 0x143   :  { %v1983_v63 = vrot.slane %v1982_v50, 1  ;;  %v499_v19 = vld [vmem:[#allocation2 + $0xdb8] sm:$0xff]  ;;  %v931_v49 = vadd.f32 %v930_v16, %v929_v21  ;;  %v1082_v53 = vrot.slane %v1081_v41, 4  ;;  %v101_v21 = vld [vmem:[#allocation2 + $0x148] sm:$0xff] }
 0x144   :  { %v1828_v7 = vadd.f32 %v1827_v56, %v1826_v43  ;;  %v2503_v15 = vsel %vm2472_vm4, %v2140_v0, %v2502_v57  ;;  %v571_v20 = vld [vmem:[#allocation2 + $0xff8] sm:$0xff]  ;;  %v1545_v43 = vadd.f32 %v1544_v31, %v487_v18  ;;  %v1237_v54 = vadd.f32 %v1236_v42, %v343_v17  ;;  %v65_v57 = vld [vmem:[#allocation2 + $0x28] sm:$0xff] }
 0x145   :  { %v1984_v14 = vadd.f32 %v1983_v63, %v1982_v50  ;;  %v427_v25 = vld [vmem:[#allocation2 + $0xb78] sm:$0xff]  ;;  %v1391_v50 = vadd.f32 %v1390_v34, %v415_v8  ;;  %v1700_v51 = vadd.f32 %v1699_v35, %v571_v20  ;;  %v3019_v0 = vmul.f32 0.015625, %v931_v49  ;;  %v113_v34 = vld [vmem:[#allocation2 + $0x1a8] sm:$0xff] }
 0x146   :  { %v2152_v24 = vmul.f32 0.015625, %v1828_v7  ;;  %v583_v26 = vld [vmem:[#allocation2 + $0x1058] sm:$0xff]  ;;  %v1546_v55 = vadd.f32 %v1545_v43, %v499_v19  ;;  %v1083_v3 = vadd.f32 %v1082_v53, %v1081_v41  ;;  %v1238_v4 = vrot.slane %v1237_v54, 4  ;;  %v89_v7 = vld [vmem:[#allocation2 + $0xe8] sm:$0xff] }
 0x147   :  { %v643_v27 = vld [vmem:[#allocation2 + $0x1238] sm:$0xff]  ;;  %v2164_v32 = vmul.f32 0.015625, %v1984_v14  ;;  %v1392_v61 = vadd.f32 %v1391_v50, %v427_v25  ;;  %v1701_v62 = vadd.f32 %v1700_v51, %v583_v26  ;;  %v893_v13 = vadd.f32 %v77_v58, %v65_v57  ;;  %v125_v43 = vld [vmem:[#allocation2 + $0x208] sm:$0xff] }
 0x148   :  { %v655_v28 = vld [vmem:[#allocation2 + $0x1298] sm:$0xff]  ;;  %v2504_v39 = vsel %vm2474_vm5, %v2152_v24, %v2503_v15  ;;  %v1084_v17 = vrot.slane %v1083_v3, 2  ;;  %v1239_v18 = vadd.f32 %v1238_v4, %v1237_v54  ;;  %v137_v54 = vld [vmem:[#allocation2 + $0x268] sm:$0xff] }
 0x149   :  { %v2327_v38 = vld [vmem:[#allocation5 + $0x4d8] sm:$0xff]  ;;  %v2505_v45 = vsel %vm2476_vm6, %v2164_v32, %v2504_v39  ;;  %v1855_v56 = vadd.f32 %v655_v28, %v643_v27  ;;  %v894_v27 = vadd.f32 %v893_v13, %v89_v7  ;;  %v161_v4 = vld [vmem:[#allocation2 + $0x328] sm:$0xff] }
 0x14a   :  { %v439_v36 = vld [vmem:[#allocation2 + $0xbd8] sm:$0xff]  ;;  %2751 = vmatpush.msra.mxu1 %v2327_v38  ;;  %2663 = vmatmul.f32.vlgmr.msrb.gmra.mxu0 %v2505_v45  ;;  %v1085_v30 = vadd.f32 %v1084_v17, %v1083_v3  ;;  %v1240_v31 = vrot.slane %v1239_v18, 2  ;;  %v269_v17 = vld [vmem:[#allocation2 + $0x688] sm:$0xff] }
 0x14b   :  { %v739_v22 = vld [vmem:[#allocation2 + $0x1538] sm:$0xff]  ;;  %v1393_v10 = vadd.f32 %v1392_v61, %v439_v36  ;;  %v895_v39 = vadd.f32 %v894_v27, %v101_v21  ;;  %v197_v27 = vld [vmem:[#allocation2 + $0x448] sm:$0xff] }
 0x14c   :  { %v751_v40 = vld [vmem:[#allocation2 + $0x1598] sm:$0xff] }
 0x14d   :  { %v2359_v44 = vld [vmem:[#allocation5 + $0x5d8] sm:$0xff]  ;;  %v2011_v63 = vadd.f32 %v751_v40, %v739_v22  ;;  %v1394_v24 = vrot.slane %v1393_v10, 4  ;;  %v1086_v22 = vrot.slane %v1085_v30, 1  ;;  %v1241_v40 = vadd.f32 %v1240_v31, %v1239_v18  ;;  %v353_v31 = vld [vmem:[#allocation2 + $0x928] sm:$0xff] }
 0x14e   :  { %v511_v46 = vld [vmem:[#allocation2 + $0xe18] sm:$0xff]  ;;  %2791 = vmatpush.msra.mxu3 %v2359_v44 }
 0x14f   :  { %v595_v47 = vld [vmem:[#allocation2 + $0x10b8] sm:$0xff]  ;;  %v1547_v5 = vadd.f32 %v1546_v55, %v511_v46  ;;  %v1395_v37 = vadd.f32 %v1394_v24, %v1393_v10  ;;  %v1087_v50 = vadd.f32 %v1086_v22, %v1085_v30  ;;  %v1242_v51 = vrot.slane %v1241_v40, 1 }
 0x150   :  { %v667_v48 = vld [vmem:[#allocation2 + $0x12f8] sm:$0xff]  ;;  %v1702_v11 = vadd.f32 %v1701_v62, %v595_v47 }
 0x151   :  { %v763_v52 = vld [vmem:[#allocation2 + $0x15f8] sm:$0xff]  ;;  %v1856_v6 = vadd.f32 %v1855_v56, %v667_v48  ;;  %v1396_v45 = vrot.slane %v1395_v37, 2  ;;  %v896_v48 = vadd.f32 %v895_v39, %v113_v34  ;;  %v2095_v62 = vmul.f32 0.015625, %v1087_v50  ;;  %v293_v39 = vld [vmem:[#allocation2 + $0x748] sm:$0xff] }
 0x152   :  { %v523_v59 = vld [vmem:[#allocation2 + $0xe78] sm:$0xff]  ;;  %v2012_v12 = vadd.f32 %v2011_v63, %v763_v52  ;;  %v149_v63 = vld [vmem:[#allocation2 + $0x2c8] sm:$0xff] }
 0x153   :  { %v679_v60 = vld [vmem:[#allocation2 + $0x1358] sm:$0xff]  ;;  %v1548_v19 = vadd.f32 %v1547_v5, %v523_v59  ;;  %v1397_v55 = vadd.f32 %v1396_v45, %v1395_v37  ;;  %v897_v58 = vadd.f32 %v896_v48, %v125_v43  ;;  %v1243_v59 = vadd.f32 %v1242_v51, %v1241_v40  ;;  %v173_v5 = vld [vmem:[#allocation2 + $0x388] sm:$0xff] }
 0x154   :  { %v607_v1 = vld [vmem:[#allocation2 + $0x1118] sm:$0xff]  ;;  %v1857_v20 = vadd.f32 %v1856_v6, %v679_v60  ;;  %v2520_v10 = vsel %vm2464_vm0, %v2095_v62, %v3019_v0  ;;  %v461_v43 = vld [vmem:[#allocation2 + $0xc88] sm:$0xff] }
 0x155   :  { %v775_v2 = vld [vmem:[#allocation2 + $0x1658] sm:$0xff]  ;;  %v1703_v25 = vadd.f32 %v1702_v11, %v607_v1  ;;  %v1398_v1 = vrot.slane %v1397_v55, 1  ;;  %v898_v6 = vadd.f32 %v897_v58, %v137_v54  ;;  %v221_v48 = vld [vmem:[#allocation2 + $0x508] sm:$0xff] }
 0x156   :  { %v535_v8 = vld [vmem:[#allocation2 + $0xed8] sm:$0xff]  ;;  %v2013_v26 = vadd.f32 %v2012_v12, %v775_v2  ;;  %v473_v50 = vld [vmem:[#allocation2 + $0xce8] sm:$0xff] }
 0x157   :  { %v691_v9 = vld [vmem:[#allocation2 + $0x13b8] sm:$0xff]  ;;  %v1549_v32 = vadd.f32 %v1548_v19, %v535_v8  ;;  %v1399_v11 = vadd.f32 %v1398_v1, %v1397_v55  ;;  %v899_v18 = vadd.f32 %v898_v6, %v149_v63  ;;  %v389_v55 = vld [vmem:[#allocation2 + $0xa48] sm:$0xff] }
 0x158   :  { %v619_v14 = vld [vmem:[#allocation2 + $0x1178] sm:$0xff]  ;;  %v1858_v16 = vadd.f32 %v1857_v20, %v691_v9  ;;  %v2107_v9 = vmul.f32 0.015625, %v1243_v59  ;;  %v233_v62 = vld [vmem:[#allocation2 + $0x568] sm:$0xff] }
 0x159   :  { %v787_v15 = vld [vmem:[#allocation2 + $0x16b8] sm:$0xff]  ;;  %v1704_v38 = vadd.f32 %v1703_v25, %v619_v14  ;;  %v1550_v41 = vrot.slane %v1549_v32, 4  ;;  %v185_v14 = vld [vmem:[#allocation2 + $0x3e8] sm:$0xff] }
 0x15a   :  { %v703_v23 = vld [vmem:[#allocation2 + $0x1418] sm:$0xff]  ;;  %v2014_v33 = vadd.f32 %v2013_v26, %v787_v15  ;;  %v257_v15 = vld [vmem:[#allocation2 + $0x628] sm:$0xff]  ;;  %v2521_v21 = vsel %vm2466_vm1, %v2107_v9, %v2520_v10  ;;  %v2119_v26 = vmul.f32 0.015625, %v1399_v11 }
 0x15b   :  { %v631_v28 = vld [vmem:[#allocation2 + $0x11d8] sm:$0xff]  ;;  %v1859_v42 = vadd.f32 %v1858_v16, %v703_v23  ;;  %v1551_v52 = vadd.f32 %v1550_v41, %v1549_v32  ;;  %v1049_v23 = vadd.f32 %v173_v5, %v161_v4  ;;  %v365_v32 = vld [vmem:[#allocation2 + $0x988] sm:$0xff]  ;;  %v1205_v34 = vadd.f32 %v269_v17, %v257_v15 }
 0x15c   :  { %v799_v29 = vld [vmem:[#allocation2 + $0x1718] sm:$0xff]  ;;  %v1705_v46 = vadd.f32 %v1704_v38, %v631_v28  ;;  %v281_v28 = vld [vmem:[#allocation2 + $0x6e8] sm:$0xff]  ;;  %v2522_v38 = vsel %vm2468_vm2, %v2119_v26, %v2521_v21 }
 0x15d   :  { %v715_v35 = vld [vmem:[#allocation2 + $0x1478] sm:$0xff]  ;;  %v2015_v47 = vadd.f32 %v2014_v33, %v799_v29  ;;  %v1552_v60 = vrot.slane %v1551_v52, 2  ;;  %v900_v29 = vrot.slane %v899_v18, 4  ;;  %v1050_v16 = vadd.f32 %v1049_v23, %v185_v14  ;;  %v209_v33 = vld [vmem:[#allocation2 + $0x4a8] sm:$0xff] }
 0x15e   :  { %v811_v36 = vld [vmem:[#allocation2 + $0x1778] sm:$0xff]  ;;  %v1860_v53 = vadd.f32 %v1859_v42, %v715_v35  ;;  %v1706_v56 = vrot.slane %v1705_v46, 4  ;;  %v377_v41 = vld [vmem:[#allocation2 + $0x9e8] sm:$0xff]  ;;  %v1206_v45 = vadd.f32 %v1205_v34, %v281_v28 }
 0x15f   :  { %v727_v44 = vld [vmem:[#allocation2 + $0x14d8] sm:$0xff]  ;;  %v2016_v57 = vadd.f32 %v2015_v47, %v811_v36  ;;  %v1553_v7 = vadd.f32 %v1552_v60, %v1551_v52  ;;  %v901_v36 = vadd.f32 %v900_v29, %v899_v18  ;;  %v449_v42 = vld [vmem:[#allocation2 + $0xc28] sm:$0xff]  ;;  %v1361_v52 = vadd.f32 %v365_v32, %v353_v31  ;;  %v2326_v31 = vld [vmem:[#allocation5 + $0x4d0] sm:$0xff] }
 0x160   :  { %v823_v49 = vld [vmem:[#allocation2 + $0x17d8] sm:$0xff]  ;;  %v1861_v61 = vadd.f32 %v1860_v53, %v727_v44  ;;  %v1707_v2 = vadd.f32 %v1706_v56, %v1705_v46  ;;  %v1051_v44 = vadd.f32 %v1050_v16, %v197_v27  ;;  %v401_v56 = vld [vmem:[#allocation2 + $0xaa8] sm:$0xff]  ;;  %v1207_v59 = vadd.f32 %v1206_v45, %v293_v39  ;;  %2752 = vmatpush.msra.mxu1 %v2326_v31  ;;  %v2358_v39 = vld [vmem:[#allocation5 + $0x5d0] sm:$0xff] }
 0x161   :  { %v2017_v3 = vadd.f32 %v2016_v57, %v823_v49  ;;  %v1554_v19 = vrot.slane %v1553_v7, 1  ;;  %v305_v49 = vld [vmem:[#allocation2 + $0x7a8] sm:$0xff]  ;;  %v902_v51 = vrot.slane %v901_v36, 2  ;;  %v1362_v4 = vadd.f32 %v1361_v52, %v377_v41  ;;  %2792 = vmatpush.msra.mxu3 %v2358_v39  ;;  %v2322_v31 = vld [vmem:[#allocation5 + $0x4b0] sm:$0xff]  ;;  %v2304_v39 = vld [vmem:[#allocation5 + $0x420] sm:$0xff] }
 0x162   :  { %v1862_v8 = vrot.slane %v1861_v61, 4  ;;  %v1708_v12 = vrot.slane %v1707_v2, 2  ;;  %v545_v57 = vld [vmem:[#allocation2 + $0xf28] sm:$0xff]  ;;  %v1052_v58 = vadd.f32 %v1051_v44, %v209_v33  ;;  %v1208_v11 = vadd.f32 %v1207_v59, %v305_v49 }
 0x163   :  { %v2018_v13 = vrot.slane %v2017_v3, 4  ;;  %v1555_v30 = vadd.f32 %v1554_v19, %v1553_v7  ;;  %v317_v63 = vld [vmem:[#allocation2 + $0x808] sm:$0xff]  ;;  %v1363_v23 = vadd.f32 %v1362_v4, %v389_v55  ;;  %v2307_v55 = vld [vmem:[#allocation5 + $0x438] sm:$0xff] }
 0x164   :  { %v1863_v20 = vadd.f32 %v1862_v8, %v1861_v61  ;;  %v1709_v24 = vadd.f32 %v1708_v12, %v1707_v2  ;;  %v485_v1 = vld [vmem:[#allocation2 + $0xd48] sm:$0xff]  ;;  %v1053_v10 = vadd.f32 %v1052_v58, %v221_v48  ;;  %v1517_v12 = vadd.f32 %v461_v43, %v449_v42 }
 0x165   :  { %v2019_v25 = vadd.f32 %v2018_v13, %v2017_v3  ;;  %v2131_v40 = vmul.f32 0.015625, %v1555_v30  ;;  %v557_v2 = vld [vmem:[#allocation2 + $0xf88] sm:$0xff]  ;;  %v903_v3 = vadd.f32 %v902_v51, %v901_v36  ;;  %v1209_v29 = vadd.f32 %v1208_v11, %v317_v63  ;;  %v2308_v36 = vld [vmem:[#allocation5 + $0x440] sm:$0xff] }
 0x166   :  { %v1864_v0 = vrot.slane %v1863_v20, 2  ;;  %v1710_v35 = vrot.slane %v1709_v24, 1  ;;  %v245_v6 = vld [vmem:[#allocation2 + $0x5c8] sm:$0xff]  ;;  %v1054_v28 = vadd.f32 %v1053_v10, %v233_v62  ;;  %v1518_v30 = vadd.f32 %v1517_v12, %v473_v50  ;;  %v2324_v63 = vld [vmem:[#allocation5 + $0x4c0] sm:$0xff] }
 0x167   :  { %v2020_v37 = vrot.slane %v2019_v25, 2  ;;  %v2523_v54 = vsel %vm2470_vm3, %v2131_v40, %v2522_v38  ;;  %v329_v7 = vld [vmem:[#allocation2 + $0x868] sm:$0xff]  ;;  %v904_v21 = vrot.slane %v903_v3, 1  ;;  %v1364_v38 = vadd.f32 %v1363_v23, %v401_v56 }
 0x168   :  { %v1865_v22 = vadd.f32 %v1864_v0, %v1863_v20  ;;  %v1711_v46 = vadd.f32 %v1710_v35, %v1709_v24  ;;  %v413_v8 = vld [vmem:[#allocation2 + $0xb08] sm:$0xff]  ;;  %v1673_v33 = vadd.f32 %v557_v2, %v545_v57  ;;  %v1055_v43 = vadd.f32 %v1054_v28, %v245_v6  ;;  %v2356_v6 = vld [vmem:[#allocation5 + $0x5c0] sm:$0xff] }
 0x169   :  { %v2021_v47 = vadd.f32 %v2020_v37, %v2019_v25  ;;  %v569_v9 = vld [vmem:[#allocation2 + $0xfe8] sm:$0xff]  ;;  %v3027_v37 = vadd.f32 %v904_v21, %v903_v3  ;;  %v1210_v44 = vadd.f32 %v1209_v29, %v329_v7  ;;  %v1519_v45 = vadd.f32 %v1518_v30, %v485_v1  ;;  %v2339_v1 = vld [vmem:[#allocation5 + $0x538] sm:$0xff]  ;;  %v2306_v7 = vld [vmem:[#allocation5 + $0x430] sm:$0xff] }
 0x16a   :  { %v1866_v53 = vrot.slane %v1865_v22, 1  ;;  %v2143_v61 = vmul.f32 0.015625, %v1711_v46  ;;  %v341_v15 = vld [vmem:[#allocation2 + $0x8c8] sm:$0xff]  ;;  %v1365_v51 = vadd.f32 %v1364_v38, %v413_v8  ;;  %v1674_v52 = vadd.f32 %v1673_v33, %v569_v9  ;;  %v68_v8 = vld [vmem:[#allocation2 + $0x40] sm:$0xff]  ;;  %v2354_v33 = vld [vmem:[#allocation5 + $0x5b0] sm:$0xff] }
 0x16b   :  { %v2022_v60 = vrot.slane %v2021_v47, 1  ;;  %v497_v17 = vld [vmem:[#allocation2 + $0xda8] sm:$0xff]  ;;  %v1056_v59 = vrot.slane %v1055_v43, 4 }
 0x16c   :  { %v1867_v5 = vadd.f32 %v1866_v53, %v1865_v22  ;;  %v2524_v14 = vsel %vm2472_vm4, %v2143_v61, %v2523_v54  ;;  %v641_v18 = vld [vmem:[#allocation2 + $0x1228] sm:$0xff]  ;;  %v1520_v61 = vadd.f32 %v1519_v45, %v497_v17  ;;  %v2338_v17 = vld [vmem:[#allocation5 + $0x530] sm:$0xff]  ;;  %v2336_v45 = vld [vmem:[#allocation5 + $0x520] sm:$0xff] }
 0x16d   :  { %v2023_v13 = vadd.f32 %v2022_v60, %v2021_v47  ;;  %v653_v19 = vld [vmem:[#allocation2 + $0x1288] sm:$0xff]  ;;  %v2340_v47 = vld [vmem:[#allocation5 + $0x540] sm:$0xff]  ;;  %v1211_v60 = vadd.f32 %v1210_v44, %v341_v15  ;;  %v1057_v11 = vadd.f32 %v1056_v59, %v1055_v43  ;;  %v2323_v15 = vld [vmem:[#allocation5 + $0x4b8] sm:$0xff] }
 0x16e   :  { %v737_v20 = vld [vmem:[#allocation2 + $0x1528] sm:$0xff]  ;;  %v2155_v24 = vmul.f32 0.015625, %v1867_v5  ;;  %v1829_v53 = vadd.f32 %v653_v19, %v641_v18  ;;  %v80_v18 = vld [vmem:[#allocation2 + $0xa0] sm:$0xff]  ;;  %v2335_v59 = vld [vmem:[#allocation5 + $0x518] sm:$0xff] }
 0x16f   :  { %v425_v25 = vld [vmem:[#allocation2 + $0xb68] sm:$0xff]  ;;  %v2167_v16 = vmul.f32 0.015625, %v2023_v13  ;;  %v1212_v12 = vrot.slane %v1211_v60, 4  ;;  %v1058_v28 = vrot.slane %v1057_v11, 2 }
 0x170   :  { %v581_v26 = vld [vmem:[#allocation2 + $0x1048] sm:$0xff]  ;;  %v2525_v22 = vsel %vm2474_vm5, %v2155_v24, %v2524_v14  ;;  %v1366_v3 = vadd.f32 %v1365_v51, %v425_v25  ;;  %v2355_v24 = vld [vmem:[#allocation5 + $0x5b8] sm:$0xff]  ;;  %v3032_v51 = vmul.f32 0.015625, %v3027_v37  ;;  %v2352_v37 = vld [vmem:[#allocation5 + $0x5a0] sm:$0xff] }
 0x171   :  { %v665_v27 = vld [vmem:[#allocation2 + $0x12e8] sm:$0xff]  ;;  %v2526_v48 = vsel %vm2476_vm6, %v2167_v16, %v2525_v22  ;;  %v1675_v4 = vadd.f32 %v1674_v52, %v581_v26  ;;  %v1213_v29 = vadd.f32 %v1212_v12, %v1211_v60  ;;  %v104_v60 = vld [vmem:[#allocation2 + $0x160] sm:$0xff] }
 0x172   :  { %v2309_v0 = vld [vmem:[#allocation5 + $0x448] sm:$0xff]  ;;  %2723 = vmatmul.f32.vlgmr.msrb.gmra.mxu3 %v2526_v48  ;;  %v1830_v5 = vadd.f32 %v1829_v53, %v665_v27  ;;  %v2303_v53 = vld [vmem:[#allocation5 + $0x418] sm:$0xff] }
 0x173   :  { %v2341_v32 = vld [vmem:[#allocation5 + $0x548] sm:$0xff]  ;;  %2733 = vmatpush.msra.mxu0 %v2309_v0 }
 0x174   :  { %v509_v34 = vld [vmem:[#allocation2 + $0xe08] sm:$0xff]  ;;  %2773 = vmatpush.msra.mxu2 %v2341_v32 }
 0x175   :  { %v749_v35 = vld [vmem:[#allocation2 + $0x1588] sm:$0xff]  ;;  %2734 = vmatpush.msra.mxu0 %v2308_v36  ;;  %v1521_v13 = vadd.f32 %v1520_v61, %v509_v34  ;;  %v932_v36 = vadd.f32 %v80_v18, %v68_v8  ;;  %v2319_v8 = vld [vmem:[#allocation5 + $0x498] sm:$0xff]  ;;  %v176_v18 = vld [vmem:[#allocation2 + $0x3a0] sm:$0xff] }
 0x176   :  { %v437_v40 = vld [vmem:[#allocation2 + $0xbc8] sm:$0xff]  ;;  %v1985_v62 = vadd.f32 %v749_v35, %v737_v20  ;;  %2774 = vmatpush.msra.mxu2 %v2340_v47 }
 0x177   :  { %v593_v41 = vld [vmem:[#allocation2 + $0x10a8] sm:$0xff]  ;;  %2735 = vmatpush.msra.mxu0 %v2307_v55  ;;  %v1367_v20 = vadd.f32 %v1366_v3, %v437_v40  ;;  %v1059_v40 = vadd.f32 %v1058_v28, %v1057_v11 }
 0x178   :  { %v677_v42 = vld [vmem:[#allocation2 + $0x1348] sm:$0xff]  ;;  %v1676_v21 = vadd.f32 %v1675_v4, %v593_v41  ;;  %2775 = vmatpush.msra.mxu2 %v2339_v1  ;;  %v1214_v41 = vrot.slane %v1213_v29, 2 }
 0x179   :  { %v2325_v46 = vld [vmem:[#allocation5 + $0x4c8] sm:$0xff]  ;;  %v1831_v23 = vadd.f32 %v1830_v5, %v677_v42  ;;  %2736 = vmatpush.msra.mxu0 %v2306_v7  ;;  %v1368_v34 = vrot.slane %v1367_v20, 4 }
 0x17a   :  { %v521_v49 = vld [vmem:[#allocation2 + $0xe68] sm:$0xff]  ;;  %2753 = vmatpush.msra.mxu1 %v2325_v46  ;;  %2776 = vmatpush.msra.mxu2 %v2338_v17  ;;  %v92_v46 = vld [vmem:[#allocation2 + $0x100] sm:$0xff]  ;;  %v1215_v55 = vadd.f32 %v1214_v41, %v1213_v29 }
 0x17b   :  { %v761_v50 = vld [vmem:[#allocation2 + $0x15e8] sm:$0xff]  ;;  %v1522_v30 = vadd.f32 %v1521_v13, %v521_v49  ;;  %v1369_v48 = vadd.f32 %v1368_v34, %v1367_v20  ;;  %v933_v3 = vadd.f32 %v932_v36, %v92_v46  ;;  %v164_v17 = vld [vmem:[#allocation2 + $0x340] sm:$0xff] }
 0x17c   :  { %v2357_v54 = vld [vmem:[#allocation5 + $0x5c8] sm:$0xff]  ;;  %v1986_v14 = vadd.f32 %v1985_v62, %v761_v50  ;;  %2754 = vmatpush.msra.mxu1 %v2324_v63  ;;  %v1216_v5 = vrot.slane %v1215_v55, 1  ;;  %v2332_v36 = vld [vmem:[#allocation5 + $0x500] sm:$0xff] }
 0x17d   :  { %v605_v56 = vld [vmem:[#allocation2 + $0x1108] sm:$0xff]  ;;  %2793 = vmatpush.msra.mxu3 %v2357_v54  ;;  %v1060_v54 = vrot.slane %v1059_v40, 1  ;;  %v1370_v62 = vrot.slane %v1369_v48, 2 }
 0x17e   :  { %v689_v57 = vld [vmem:[#allocation2 + $0x13a8] sm:$0xff]  ;;  %v1677_v35 = vadd.f32 %v1676_v21, %v605_v56  ;;  %2755 = vmatpush.msra.mxu1 %v2323_v15  ;;  %v1217_v20 = vadd.f32 %v1216_v5, %v1215_v55  ;;  %v200_v55 = vld [vmem:[#allocation2 + $0x460] sm:$0xff] }
 0x17f   :  { %v773_v58 = vld [vmem:[#allocation2 + $0x1648] sm:$0xff]  ;;  %2794 = vmatpush.msra.mxu3 %v2356_v6  ;;  %v1832_v38 = vadd.f32 %v1831_v23, %v689_v57  ;;  %v1061_v4 = vadd.f32 %v1060_v54, %v1059_v40  ;;  %v1371_v11 = vadd.f32 %v1370_v62, %v1369_v48 }
 0x180   :  { %v533_v2 = vld [vmem:[#allocation2 + $0xec8] sm:$0xff]  ;;  %v1987_v0 = vadd.f32 %v1986_v14, %v773_v58  ;;  %2756 = vmatpush.msra.mxu1 %v2322_v31  ;;  %v2320_v58 = vld [vmem:[#allocation5 + $0x4a0] sm:$0xff]  ;;  %v2351_v14 = vld [vmem:[#allocation5 + $0x598] sm:$0xff] }
 0x181   :  { %v617_v9 = vld [vmem:[#allocation2 + $0x1168] sm:$0xff]  ;;  %v1523_v42 = vadd.f32 %v1522_v30, %v533_v2  ;;  %2795 = vmatpush.msra.mxu3 %v2355_v24  ;;  %v2302_v2 = vld [vmem:[#allocation5 + $0x410] sm:$0xff]  ;;  %v2093_v24 = vmul.f32 0.015625, %v1061_v4  ;;  %v1372_v28 = vrot.slane %v1371_v11, 1  ;;  %v2300_v31 = vld [vmem:[#allocation5 + $0x400] sm:$0xff] }
 0x182   :  { %v701_v10 = vld [vmem:[#allocation2 + $0x1408] sm:$0xff]  ;;  %v1678_v49 = vadd.f32 %v1677_v35, %v617_v9  ;;  %v2334_v9 = vld [vmem:[#allocation5 + $0x510] sm:$0xff]  ;;  %v296_v4 = vld [vmem:[#allocation2 + $0x760] sm:$0xff] }
 0x183   :  { %v785_v19 = vld [vmem:[#allocation2 + $0x16a8] sm:$0xff]  ;;  %v1833_v50 = vadd.f32 %v1832_v38, %v701_v10  ;;  %v1524_v56 = vrot.slane %v1523_v42, 4  ;;  %2796 = vmatpush.msra.mxu3 %v2354_v33  ;;  %v116_v10 = vld [vmem:[#allocation2 + $0x1c0] sm:$0xff]  ;;  %v2105_v38 = vmul.f32 0.015625, %v1217_v20  ;;  %v2506_v33 = vsel %vm2464_vm0, %v2093_v24, %v3032_v51 }
 0x184   :  { %v2305_v25 = vld [vmem:[#allocation5 + $0x428] sm:$0xff]  ;;  %v1988_v43 = vadd.f32 %v1987_v0, %v785_v19  ;;  %v934_v19 = vadd.f32 %v933_v3, %v104_v60  ;;  %v2350_v0 = vld [vmem:[#allocation5 + $0x590] sm:$0xff]  ;;  %v1373_v40 = vadd.f32 %v1372_v28, %v1371_v11  ;;  %v1088_v51 = vadd.f32 %v176_v18, %v164_v17  ;;  %v356_v60 = vld [vmem:[#allocation2 + $0x940] sm:$0xff] }
 0x185   :  { %v629_v26 = vld [vmem:[#allocation2 + $0x11c8] sm:$0xff]  ;;  %2737 = vmatpush.msra.mxu0 %v2305_v25  ;;  %v1525_v6 = vadd.f32 %v1524_v56, %v1523_v42  ;;  %v2318_v25 = vld [vmem:[#allocation5 + $0x490] sm:$0xff]  ;;  %v284_v56 = vld [vmem:[#allocation2 + $0x700] sm:$0xff] }
 0x186   :  { %v713_v27 = vld [vmem:[#allocation2 + $0x1468] sm:$0xff]  ;;  %v1679_v63 = vadd.f32 %v1678_v49, %v629_v26  ;;  %v2507_v49 = vsel %vm2466_vm1, %v2105_v38, %v2506_v33  ;;  %v2117_v54 = vmul.f32 0.015625, %v1373_v40  ;;  %v212_v3 = vld [vmem:[#allocation2 + $0x4c0] sm:$0xff] }
 0x187   :  { %v2337_v32 = vld [vmem:[#allocation5 + $0x528] sm:$0xff]  ;;  %2738 = vmatpush.msra.mxu0 %v2304_v39  ;;  %v1834_v1 = vadd.f32 %v1833_v50, %v713_v27  ;;  %v1526_v21 = vrot.slane %v1525_v6, 2  ;;  %v128_v27 = vld [vmem:[#allocation2 + $0x220] sm:$0xff] }
 0x188   :  { %v797_v16 = vld [vmem:[#allocation2 + $0x1708] sm:$0xff]  ;;  %2777 = vmatpush.msra.mxu2 %v2337_v32  ;;  %v1680_v12 = vrot.slane %v1679_v63, 4  ;;  %v260_v32 = vld [vmem:[#allocation2 + $0x640] sm:$0xff] }
 0x189   :  { %v725_v22 = vld [vmem:[#allocation2 + $0x14c8] sm:$0xff]  ;;  %v1989_v57 = vadd.f32 %v1988_v43, %v797_v16  ;;  %2739 = vmatpush.msra.mxu0 %v2303_v53  ;;  %v935_v16 = vadd.f32 %v934_v19, %v116_v10  ;;  %v1527_v34 = vadd.f32 %v1526_v21, %v1525_v6  ;;  %v152_v50 = vld [vmem:[#allocation2 + $0x2e0] sm:$0xff] }
 0x18a   :  { %v2321_v44 = vld [vmem:[#allocation5 + $0x4a8] sm:$0xff]  ;;  %2778 = vmatpush.msra.mxu2 %v2336_v45  ;;  %v1835_v13 = vadd.f32 %v1834_v1, %v725_v22  ;;  %v1681_v29 = vadd.f32 %v1680_v12, %v1679_v63  ;;  %v140_v22 = vld [vmem:[#allocation2 + $0x280] sm:$0xff] }
 0x18b   :  { %v809_v47 = vld [vmem:[#allocation2 + $0x1768] sm:$0xff]  ;;  %2757 = vmatpush.msra.mxu1 %v2321_v44  ;;  %2740 = vmatpush.msra.mxu0 %v2302_v2  ;;  %v188_v44 = vld [vmem:[#allocation2 + $0x400] sm:$0xff]  ;;  %v936_v46 = vadd.f32 %v935_v16, %v128_v27  ;;  %v2508_v2 = vsel %vm2468_vm2, %v2117_v54, %v2507_v49 }
 0x18c   :  { %v2353_v52 = vld [vmem:[#allocation5 + $0x5a8] sm:$0xff]  ;;  %v1990_v7 = vadd.f32 %v1989_v57, %v809_v47  ;;  %2779 = vmatpush.msra.mxu2 %v2335_v59  ;;  %v1836_v30 = vrot.slane %v1835_v13, 4  ;;  %v1682_v41 = vrot.slane %v1681_v29, 2  ;;  %v272_v45 = vld [vmem:[#allocation2 + $0x6a0] sm:$0xff]  ;;  %v1528_v47 = vrot.slane %v1527_v34, 1 }
 0x18d   :  { %v821_v61 = vld [vmem:[#allocation2 + $0x17c8] sm:$0xff]  ;;  %2797 = vmatpush.msra.mxu3 %v2353_v52  ;;  %2758 = vmatpush.msra.mxu1 %v2320_v58  ;;  %v937_v57 = vadd.f32 %v936_v46, %v140_v22  ;;  %v1089_v62 = vadd.f32 %v1088_v51, %v188_v44  ;;  %v1244_v63 = vadd.f32 %v272_v45, %v260_v32  ;;  %v464_v17 = vld [vmem:[#allocation2 + $0xca0] sm:$0xff] }
 0x18e   :  { %v2301_v15 = vld [vmem:[#allocation5 + $0x408] sm:$0xff]  ;;  %v1991_v23 = vadd.f32 %v1990_v7, %v821_v61  ;;  %2780 = vmatpush.msra.mxu2 %v2334_v9  ;;  %v1837_v42 = vadd.f32 %v1836_v30, %v1835_v13  ;;  %v1683_v52 = vadd.f32 %v1682_v41, %v1681_v29  ;;  %v1529_v58 = vadd.f32 %v1528_v47, %v1527_v34  ;;  %v368_v61 = vld [vmem:[#allocation2 + $0x9a0] sm:$0xff] }
 0x18f   :  { %2798 = vmatpush.msra.mxu3 %v2352_v37  ;;  %v2333_v26 = vld [vmem:[#allocation5 + $0x508] sm:$0xff]  ;;  %2759 = vmatpush.msra.mxu1 %v2319_v8  ;;  %v938_v5 = vadd.f32 %v937_v57, %v152_v50  ;;  %v380_v8 = vld [vmem:[#allocation2 + $0xa00] sm:$0xff]  ;;  %v1090_v10 = vadd.f32 %v1089_v62, %v200_v55  ;;  %v1245_v11 = vadd.f32 %v1244_v63, %v284_v56 }
 0x190   :  { %v1992_v35 = vrot.slane %v1991_v23, 4  ;;  %2741 = vmatpush.msra.mxu0 %v2301_v15  ;;  %v2317_v39 = vld [vmem:[#allocation5 + $0x488] sm:$0xff]  ;;  %2781 = vmatpush.msra.mxu2 %v2333_v26  ;;  %v1838_v53 = vrot.slane %v1837_v42, 2  ;;  %v1684_v1 = vrot.slane %v1683_v52, 1  ;;  %v2129_v7 = vmul.f32 0.015625, %v1529_v58  ;;  %v452_v9 = vld [vmem:[#allocation2 + $0xc40] sm:$0xff] }
 0x191   :  { %2799 = vmatpush.msra.mxu3 %v2351_v14  ;;  %2760 = vmatpush.msra.mxu1 %v2318_v25  ;;  %v2349_v43 = vld [vmem:[#allocation5 + $0x588] sm:$0xff]  ;;  %v224_v14 = vld [vmem:[#allocation2 + $0x520] sm:$0xff]  ;;  %v939_v18 = vrot.slane %v938_v5, 4  ;;  %v1400_v19 = vadd.f32 %v368_v61, %v356_v60  ;;  %v1091_v25 = vadd.f32 %v1090_v10, %v212_v3  ;;  %v1246_v26 = vadd.f32 %v1245_v11, %v296_v4 }
 0x192   :  { %v1993_v48 = vadd.f32 %v1992_v35, %v1991_v23  ;;  %2742 = vmatpush.msra.mxu0 %v2300_v31  ;;  %2782 = vmatpush.msra.mxu2 %v2332_v36  ;;  %v1839_v37 = vadd.f32 %v1838_v53, %v1837_v42  ;;  %v1685_v12 = vadd.f32 %v1684_v1, %v1683_v52  ;;  %v308_v15 = vld [vmem:[#allocation2 + $0x7c0] sm:$0xff] }
 0x193   :  { %2800 = vmatpush.msra.mxu3 %v2350_v0  ;;  %2761 = vmatpush.msra.mxu1 %v2317_v39  ;;  %v2509_v21 = vsel %vm2470_vm3, %v2129_v7, %v2508_v2  ;;  %v392_v23 = vld [vmem:[#allocation2 + $0xa60] sm:$0xff]  ;;  %v940_v31 = vadd.f32 %v939_v18, %v938_v5  ;;  %v1401_v32 = vadd.f32 %v1400_v19, %v380_v8 }
 0x194   :  { %v1994_v59 = vrot.slane %v1993_v48, 2  ;;  %v1840_v13 = vrot.slane %v1839_v37, 1  ;;  %v476_v24 = vld [vmem:[#allocation2 + $0xd00] sm:$0xff]  ;;  %v2141_v28 = vmul.f32 0.015625, %v1685_v12  ;;  %v1092_v33 = vadd.f32 %v1091_v25, %v224_v14 }
 0x195   :  { %2801 = vmatpush.msra.mxu3 %v2349_v43  ;;  %v236_v29 = vld [vmem:[#allocation2 + $0x580] sm:$0xff]  ;;  %v1247_v39 = vadd.f32 %v1246_v26, %v308_v15  ;;  %v1556_v36 = vadd.f32 %v464_v17, %v452_v9  ;;  %v941_v45 = vrot.slane %v940_v31, 2  ;;  %v1402_v46 = vadd.f32 %v1401_v32, %v392_v23 }
 0x196   :  { %v1995_v6 = vadd.f32 %v1994_v59, %v1993_v48  ;;  %v1841_v27 = vadd.f32 %v1840_v13, %v1839_v37  ;;  %v320_v30 = vld [vmem:[#allocation2 + $0x820] sm:$0xff]  ;;  %v2510_v40 = vsel %vm2472_vm4, %v2141_v28, %v2509_v21  ;;  %v1093_v51 = vadd.f32 %v1092_v33, %v236_v29 }
 0x197   :  { %v488_v0 = vld [vmem:[#allocation2 + $0xd60] sm:$0xff]  ;;  %v1248_v52 = vadd.f32 %v1247_v39, %v320_v30  ;;  %v1557_v53 = vadd.f32 %v1556_v36, %v476_v24  ;;  %v942_v58 = vadd.f32 %v941_v45, %v940_v31  ;;  %v82_v31 = vld [vmem:[#allocation2 + $0xb0] sm:$0xff] }
 0x198   :  { %v1996_v20 = vrot.slane %v1995_v6, 1  ;;  %v404_v34 = vld [vmem:[#allocation2 + $0xac0] sm:$0xff]  ;;  %v2153_v22 = vmul.f32 0.015625, %v1841_v27 }
 0x199   :  { %v548_v35 = vld [vmem:[#allocation2 + $0xf40] sm:$0xff]  ;;  %v1403_v59 = vadd.f32 %v1402_v46, %v404_v34  ;;  %v1558_v3 = vadd.f32 %v1557_v53, %v488_v0  ;;  %v70_v0 = vld [vmem:[#allocation2 + $0x50] sm:$0xff] }
 0x19a   :  { %v1997_v16 = vadd.f32 %v1996_v20, %v1995_v6  ;;  %v560_v38 = vld [vmem:[#allocation2 + $0xfa0] sm:$0xff]  ;;  %v2511_v54 = vsel %vm2474_vm5, %v2153_v22, %v2510_v40  ;;  %v943_v6 = vrot.slane %v942_v58, 1 }
 0x19b   :  { %v248_v41 = vld [vmem:[#allocation2 + $0x5e0] sm:$0xff]  ;;  %v1712_v60 = vadd.f32 %v560_v38, %v548_v35 }
 0x19c   :  { %v332_v42 = vld [vmem:[#allocation2 + $0x880] sm:$0xff]  ;;  %v2165_v47 = vmul.f32 0.015625, %v1997_v16  ;;  %v1094_v37 = vadd.f32 %v1093_v51, %v248_v41  ;;  %v944_v21 = vadd.f32 %v943_v6, %v942_v58 }
 0x19d   :  { %v416_v43 = vld [vmem:[#allocation2 + $0xb20] sm:$0xff]  ;;  %v1249_v2 = vadd.f32 %v1248_v52, %v332_v42 }
 0x19e   :  { %v500_v44 = vld [vmem:[#allocation2 + $0xdc0] sm:$0xff]  ;;  %v2512_v61 = vsel %vm2476_vm6, %v2165_v47, %v2511_v54  ;;  %v1404_v7 = vadd.f32 %v1403_v59, %v416_v43  ;;  %v1095_v13 = vrot.slane %v1094_v37, 4  ;;  %v2084_v33 = vmul.f32 0.015625, %v944_v21  ;;  %v94_v43 = vld [vmem:[#allocation2 + $0x110] sm:$0xff] }
 0x19f   :  { %v572_v48 = vld [vmem:[#allocation2 + $0x1000] sm:$0xff]  ;;  %2683 = vmatmul.f32.vlgmr.msrb.gmra.mxu1 %v2512_v61  ;;  %v1559_v15 = vadd.f32 %v1558_v3, %v500_v44 }
 0x1a0   :  { %v644_v49 = vld [vmem:[#allocation2 + $0x1240] sm:$0xff]  ;;  %v1713_v8 = vadd.f32 %v1712_v60, %v572_v48  ;;  %v1096_v27 = vadd.f32 %v1095_v13, %v1094_v37  ;;  %v958_v48 = vadd.f32 %v82_v31, %v70_v0 }
 0x1a1   :  { %v656_v50 = vld [vmem:[#allocation2 + $0x12a0] sm:$0xff] }
 0x1a2   :  { %v344_v55 = vld [vmem:[#allocation2 + $0x8e0] sm:$0xff]  ;;  %v1868_v9 = vadd.f32 %v656_v50, %v644_v49  ;;  %v1097_v22 = vrot.slane %v1096_v27, 2  ;;  %v959_v60 = vadd.f32 %v958_v48, %v94_v43  ;;  %v202_v48 = vld [vmem:[#allocation2 + $0x470] sm:$0xff] }
 0x1a3   :  { %v740_v56 = vld [vmem:[#allocation2 + $0x1540] sm:$0xff]  ;;  %v1250_v14 = vadd.f32 %v1249_v2, %v344_v55  ;;  %v106_v55 = vld [vmem:[#allocation2 + $0x170] sm:$0xff] }
 0x1a4   :  { %v752_v57 = vld [vmem:[#allocation2 + $0x15a0] sm:$0xff]  ;;  %v1098_v51 = vadd.f32 %v1097_v22, %v1096_v27  ;;  %v118_v2 = vld [vmem:[#allocation2 + $0x1d0] sm:$0xff] }
 0x1a5   :  { %v428_v62 = vld [vmem:[#allocation2 + $0xb80] sm:$0xff]  ;;  %v2024_v17 = vadd.f32 %v752_v57, %v740_v56  ;;  %v1251_v28 = vrot.slane %v1250_v14, 4  ;;  %v166_v27 = vld [vmem:[#allocation2 + $0x350] sm:$0xff] }
 0x1a6   :  { %v584_v63 = vld [vmem:[#allocation2 + $0x1060] sm:$0xff]  ;;  %v1405_v23 = vadd.f32 %v1404_v7, %v428_v62  ;;  %v1099_v62 = vrot.slane %v1098_v51, 1  ;;  %v960_v7 = vadd.f32 %v959_v60, %v106_v55  ;;  %v274_v22 = vld [vmem:[#allocation2 + $0x6b0] sm:$0xff] }
 0x1a7   :  { %v668_v1 = vld [vmem:[#allocation2 + $0x1300] sm:$0xff]  ;;  %v1714_v24 = vadd.f32 %v1713_v8, %v584_v63  ;;  %v1252_v40 = vadd.f32 %v1251_v28, %v1250_v14  ;;  %v178_v28 = vld [vmem:[#allocation2 + $0x3b0] sm:$0xff] }
 0x1a8   :  { %v512_v4 = vld [vmem:[#allocation2 + $0xe20] sm:$0xff]  ;;  %v1869_v25 = vadd.f32 %v1868_v9, %v668_v1  ;;  %v1100_v8 = vadd.f32 %v1099_v62, %v1098_v51  ;;  %v298_v60 = vld [vmem:[#allocation2 + $0x770] sm:$0xff] }
 0x1a9   :  { %v764_v5 = vld [vmem:[#allocation2 + $0x1600] sm:$0xff]  ;;  %v1560_v29 = vadd.f32 %v1559_v15, %v512_v4  ;;  %v1253_v52 = vrot.slane %v1252_v40, 2 }
 0x1aa   :  { %v440_v10 = vld [vmem:[#allocation2 + $0xbe0] sm:$0xff]  ;;  %v2025_v30 = vadd.f32 %v2024_v17, %v764_v5  ;;  %v961_v17 = vadd.f32 %v960_v7, %v118_v2  ;;  %v2096_v21 = vmul.f32 0.015625, %v1100_v8  ;;  %v454_v7 = vld [vmem:[#allocation2 + $0xc50] sm:$0xff] }
 0x1ab   :  { %v596_v11 = vld [vmem:[#allocation2 + $0x10c0] sm:$0xff]  ;;  %v1406_v34 = vadd.f32 %v1405_v23, %v440_v10  ;;  %v1254_v63 = vadd.f32 %v1253_v52, %v1252_v40  ;;  %v142_v23 = vld [vmem:[#allocation2 + $0x290] sm:$0xff] }
 0x1ac   :  { %v680_v12 = vld [vmem:[#allocation2 + $0x1360] sm:$0xff]  ;;  %v1715_v35 = vadd.f32 %v1714_v24, %v596_v11  ;;  %v358_v52 = vld [vmem:[#allocation2 + $0x950] sm:$0xff] }
 0x1ad   :  { %v524_v18 = vld [vmem:[#allocation2 + $0xe80] sm:$0xff]  ;;  %v1870_v38 = vadd.f32 %v1869_v25, %v680_v12  ;;  %v1407_v45 = vrot.slane %v1406_v34, 4  ;;  %v1255_v9 = vrot.slane %v1254_v63, 1  ;;  %v130_v12 = vld [vmem:[#allocation2 + $0x230] sm:$0xff] }
 0x1ae   :  { %v608_v19 = vld [vmem:[#allocation2 + $0x1120] sm:$0xff]  ;;  %v1561_v41 = vadd.f32 %v1560_v29, %v524_v18  ;;  %v962_v29 = vadd.f32 %v961_v17, %v130_v12  ;;  %v466_v8 = vld [vmem:[#allocation2 + $0xcb0] sm:$0xff] }
 0x1af   :  { %v776_v20 = vld [vmem:[#allocation2 + $0x1660] sm:$0xff]  ;;  %v1716_v46 = vadd.f32 %v1715_v35, %v608_v19  ;;  %v1408_v57 = vadd.f32 %v1407_v45, %v1406_v34  ;;  %v1256_v18 = vadd.f32 %v1255_v9, %v1254_v63 }
 0x1b0   :  { %v692_v26 = vld [vmem:[#allocation2 + $0x13c0] sm:$0xff]  ;;  %v2026_v42 = vadd.f32 %v2025_v30, %v776_v20  ;;  %v963_v40 = vadd.f32 %v962_v29, %v142_v23  ;;  %v334_v23 = vld [vmem:[#allocation2 + $0x890] sm:$0xff] }
 0x1b1   :  { %v536_v32 = vld [vmem:[#allocation2 + $0xee0] sm:$0xff]  ;;  %v1871_v47 = vadd.f32 %v1870_v38, %v692_v26  ;;  %v1409_v4 = vrot.slane %v1408_v57, 2  ;;  %v2108_v31 = vmul.f32 0.015625, %v1256_v18  ;;  %v418_v29 = vld [vmem:[#allocation2 + $0xb30] sm:$0xff] }
 0x1b2   :  { %v788_v16 = vld [vmem:[#allocation2 + $0x16c0] sm:$0xff]  ;;  %v1562_v53 = vadd.f32 %v1561_v41, %v536_v32  ;;  %v2527_v32 = vsel %vm2464_vm0, %v2096_v21, %v2084_v33  ;;  %v250_v21 = vld [vmem:[#allocation2 + $0x5f0] sm:$0xff] }
 0x1b3   :  { %v620_v39 = vld [vmem:[#allocation2 + $0x1180] sm:$0xff]  ;;  %v2027_v54 = vadd.f32 %v2026_v42, %v788_v16  ;;  %v1410_v13 = vadd.f32 %v1409_v4, %v1408_v57  ;;  %v154_v16 = vld [vmem:[#allocation2 + $0x2f0] sm:$0xff]  ;;  %v2528_v43 = vsel %vm2466_vm1, %v2108_v31, %v2527_v32 }
 0x1b4   :  { %v704_v36 = vld [vmem:[#allocation2 + $0x1420] sm:$0xff]  ;;  %v1717_v58 = vadd.f32 %v1716_v46, %v620_v39  ;;  %v1563_v1 = vrot.slane %v1562_v53, 4  ;;  %v190_v39 = vld [vmem:[#allocation2 + $0x410] sm:$0xff] }
 0x1b5   :  { %v800_v44 = vld [vmem:[#allocation2 + $0x1720] sm:$0xff]  ;;  %v1872_v59 = vadd.f32 %v1871_v47, %v704_v36  ;;  %v1411_v24 = vrot.slane %v1410_v13, 1  ;;  %v262_v36 = vld [vmem:[#allocation2 + $0x650] sm:$0xff] }
 0x1b6   :  { %v632_v49 = vld [vmem:[#allocation2 + $0x11e0] sm:$0xff]  ;;  %v2028_v37 = vadd.f32 %v2027_v54, %v800_v44  ;;  %v1564_v10 = vadd.f32 %v1563_v1, %v1562_v53  ;;  %v1114_v44 = vadd.f32 %v178_v28, %v166_v27  ;;  %v370_v53 = vld [vmem:[#allocation2 + $0x9b0] sm:$0xff]  ;;  %v1270_v55 = vadd.f32 %v274_v22, %v262_v36 }
 0x1b7   :  { %v716_v50 = vld [vmem:[#allocation2 + $0x1480] sm:$0xff]  ;;  %v1718_v5 = vadd.f32 %v1717_v58, %v632_v49  ;;  %v1412_v34 = vadd.f32 %v1411_v24, %v1410_v13  ;;  %v286_v49 = vld [vmem:[#allocation2 + $0x710] sm:$0xff] }
 0x1b8   :  { %v812_v56 = vld [vmem:[#allocation2 + $0x1780] sm:$0xff]  ;;  %v1873_v6 = vadd.f32 %v1872_v59, %v716_v50  ;;  %v1565_v19 = vrot.slane %v1564_v10, 2  ;;  %v964_v50 = vadd.f32 %v963_v40, %v154_v16  ;;  %v1115_v54 = vadd.f32 %v1114_v44, %v190_v39  ;;  %v214_v59 = vld [vmem:[#allocation2 + $0x4d0] sm:$0xff] }
 0x1b9   :  { %v728_v61 = vld [vmem:[#allocation2 + $0x14e0] sm:$0xff]  ;;  %v2029_v11 = vadd.f32 %v2028_v37, %v812_v56  ;;  %v1719_v14 = vrot.slane %v1718_v5, 4  ;;  %v2120_v47 = vmul.f32 0.015625, %v1412_v34  ;;  %v226_v1 = vld [vmem:[#allocation2 + $0x530] sm:$0xff]  ;;  %v1582_v16 = vadd.f32 %v466_v8, %v454_v7 }
 0x1ba   :  { %v824_v3 = vld [vmem:[#allocation2 + $0x17e0] sm:$0xff]  ;;  %v1874_v15 = vadd.f32 %v1873_v6, %v728_v61  ;;  %v1566_v30 = vadd.f32 %v1565_v19, %v1564_v10  ;;  %v965_v61 = vrot.slane %v964_v50, 4  ;;  %v382_v37 = vld [vmem:[#allocation2 + $0xa10] sm:$0xff]  ;;  %v1116_v2 = vadd.f32 %v1115_v54, %v202_v48 }
 0x1bb   :  { %v2030_v20 = vadd.f32 %v2029_v11, %v824_v3  ;;  %v1720_v25 = vadd.f32 %v1719_v14, %v1718_v5  ;;  %v2529_v58 = vsel %vm2468_vm2, %v2120_v47, %v2528_v43  ;;  %v1271_v3 = vadd.f32 %v1270_v55, %v286_v49  ;;  %v310_v6 = vld [vmem:[#allocation2 + $0x7d0] sm:$0xff]  ;;  %v2316_v54 = vld [vmem:[#allocation5 + $0x480] sm:$0xff] }
 0x1bc   :  { %v1875_v26 = vrot.slane %v1874_v15, 4  ;;  %v1567_v41 = vrot.slane %v1566_v30, 1  ;;  %v966_v9 = vadd.f32 %v965_v61, %v964_v50  ;;  %v1426_v10 = vadd.f32 %v370_v53, %v358_v52  ;;  %v238_v13 = vld [vmem:[#allocation2 + $0x590] sm:$0xff]  ;;  %v2348_v55 = vld [vmem:[#allocation5 + $0x580] sm:$0xff]  ;;  %2762 = vmatpush.msra.mxu1 %v2316_v54 }
 0x1bd   :  { %v2031_v0 = vrot.slane %v2030_v20, 4  ;;  %v1721_v35 = vrot.slane %v1720_v25, 2  ;;  %v322_v14 = vld [vmem:[#allocation2 + $0x830] sm:$0xff]  ;;  %v1117_v17 = vadd.f32 %v1116_v2, %v214_v59  ;;  %v1272_v18 = vadd.f32 %v1271_v3, %v298_v60  ;;  %2802 = vmatpush.msra.mxu3 %v2348_v55 }
 0x1be   :  { %v1876_v38 = vadd.f32 %v1875_v26, %v1874_v15  ;;  %v1568_v33 = vadd.f32 %v1567_v41, %v1566_v30  ;;  %v394_v15 = vld [vmem:[#allocation2 + $0xa70] sm:$0xff]  ;;  %v967_v26 = vrot.slane %v966_v9, 2  ;;  %v1427_v27 = vadd.f32 %v1426_v10, %v382_v37 }
 0x1bf   :  { %v2032_v42 = vadd.f32 %v2031_v0, %v2030_v20  ;;  %v1722_v45 = vadd.f32 %v1721_v35, %v1720_v25  ;;  %v406_v24 = vld [vmem:[#allocation2 + $0xad0] sm:$0xff]  ;;  %v1118_v31 = vadd.f32 %v1117_v17, %v226_v1  ;;  %v1273_v32 = vadd.f32 %v1272_v18, %v310_v6 }
 0x1c0   :  { %v1877_v46 = vrot.slane %v1876_v38, 2  ;;  %v2132_v63 = vmul.f32 0.015625, %v1568_v33  ;;  %v478_v25 = vld [vmem:[#allocation2 + $0xd10] sm:$0xff]  ;;  %v968_v40 = vadd.f32 %v967_v26, %v966_v9  ;;  %v1428_v41 = vadd.f32 %v1427_v27, %v394_v15  ;;  %v93_v27 = vld [vmem:[#allocation2 + $0x108] sm:$0xff] }
 0x1c1   :  { %v2033_v51 = vrot.slane %v2032_v42, 2  ;;  %v1723_v56 = vrot.slane %v1722_v45, 1  ;;  %v550_v30 = vld [vmem:[#allocation2 + $0xf50] sm:$0xff]  ;;  %v1119_v47 = vadd.f32 %v1118_v31, %v238_v13  ;;  %v1274_v48 = vadd.f32 %v1273_v32, %v322_v14 }
 0x1c2   :  { %v1878_v57 = vadd.f32 %v1877_v46, %v1876_v38  ;;  %v2530_v12 = vsel %vm2470_vm3, %v2132_v63, %v2529_v58  ;;  %v562_v0 = vld [vmem:[#allocation2 + $0xfb0] sm:$0xff]  ;;  %v1583_v49 = vadd.f32 %v1582_v16, %v478_v25  ;;  %v1429_v52 = vadd.f32 %v1428_v41, %v406_v24 }
 0x1c3   :  { %v2034_v62 = vadd.f32 %v2033_v51, %v2032_v42  ;;  %v1724_v4 = vadd.f32 %v1723_v56, %v1722_v45  ;;  %v346_v38 = vld [vmem:[#allocation2 + $0x8f0] sm:$0xff]  ;;  %v969_v51 = vrot.slane %v968_v40, 1  ;;  %v1738_v53 = vadd.f32 %v562_v0, %v550_v30 }
 0x1c4   :  { %v1879_v5 = vrot.slane %v1878_v57, 1  ;;  %v490_v39 = vld [vmem:[#allocation2 + $0xd70] sm:$0xff]  ;;  %v1120_v60 = vadd.f32 %v1119_v47, %v250_v21  ;;  %v1275_v61 = vadd.f32 %v1274_v48, %v334_v23  ;;  %v1430_v3 = vadd.f32 %v1429_v52, %v418_v29 }
 0x1c5   :  { %v2035_v11 = vrot.slane %v2034_v62, 1  ;;  %v2144_v20 = vmul.f32 0.015625, %v1724_v4  ;;  %v502_v36 = vld [vmem:[#allocation2 + $0xdd0] sm:$0xff]  ;;  %v970_v2 = vadd.f32 %v969_v51, %v968_v40 }
 0x1c6   :  { %v1880_v19 = vadd.f32 %v1879_v5, %v1878_v57  ;;  %v574_v22 = vld [vmem:[#allocation2 + $0x1010] sm:$0xff]  ;;  %v1121_v7 = vrot.slane %v1120_v60, 4  ;;  %v1276_v8 = vadd.f32 %v1275_v61, %v346_v38  ;;  %v129_v61 = vld [vmem:[#allocation2 + $0x228] sm:$0xff] }
 0x1c7   :  { %v2036_v28 = vadd.f32 %v2035_v11, %v2034_v62  ;;  %v2531_v35 = vsel %vm2472_vm4, %v2144_v20, %v2530_v12  ;;  %v430_v43 = vld [vmem:[#allocation2 + $0xb90] sm:$0xff]  ;;  %v1584_v62 = vadd.f32 %v1583_v49, %v490_v39  ;;  %v1739_v4 = vadd.f32 %v1738_v53, %v574_v22  ;;  %v69_v11 = vld [vmem:[#allocation2 + $0x48] sm:$0xff] }
 0x1c8   :  { %v2156_v34 = vmul.f32 0.015625, %v1880_v19  ;;  %v646_v44 = vld [vmem:[#allocation2 + $0x1250] sm:$0xff]  ;;  %v81_v12 = vld [vmem:[#allocation2 + $0xa8] sm:$0xff]  ;;  %v1431_v15 = vadd.f32 %v1430_v3, %v430_v43  ;;  %v3049_v19 = vmul.f32 0.015625, %v970_v2  ;;  %v1122_v23 = vadd.f32 %v1121_v7, %v1120_v60 }
 0x1c9   :  { %v2168_v42 = vmul.f32 0.015625, %v2036_v28  ;;  %v658_v45 = vld [vmem:[#allocation2 + $0x12b0] sm:$0xff]  ;;  %v1585_v9 = vadd.f32 %v1584_v62, %v502_v36  ;;  %v1277_v24 = vrot.slane %v1276_v8, 4  ;;  %v945_v32 = vadd.f32 %v81_v12, %v69_v11  ;;  %v105_v22 = vld [vmem:[#allocation2 + $0x168] sm:$0xff] }
 0x1ca   :  { %v742_v46 = vld [vmem:[#allocation2 + $0x1550] sm:$0xff]  ;;  %v2532_v50 = vsel %vm2474_vm5, %v2156_v34, %v2531_v35  ;;  %v1894_v5 = vadd.f32 %v658_v45, %v646_v44  ;;  %v1123_v35 = vrot.slane %v1122_v23, 2  ;;  %v141_v7 = vld [vmem:[#allocation2 + $0x288] sm:$0xff] }
 0x1cb   :  { %v754_v33 = vld [vmem:[#allocation2 + $0x15b0] sm:$0xff]  ;;  %v2533_v56 = vsel %vm2476_vm6, %v2168_v42, %v2532_v50  ;;  %v1278_v38 = vadd.f32 %v1277_v24, %v1276_v8  ;;  %v946_v44 = vadd.f32 %v945_v32, %v93_v27  ;;  %v177_v24 = vld [vmem:[#allocation2 + $0x3a8] sm:$0xff] }
 0x1cc   :  { %v442_v57 = vld [vmem:[#allocation2 + $0xbf0] sm:$0xff]  ;;  %2743 = vmatmul.f32.vlgmr.msra.gmra.mxu0 %v2533_v56  ;;  %v2050_v10 = vadd.f32 %v754_v33, %v742_v46  ;;  %v1124_v47 = vadd.f32 %v1123_v35, %v1122_v23  ;;  %v117_v33 = vld [vmem:[#allocation2 + $0x1c8] sm:$0xff] }
 0x1cd   :  { %v586_v58 = vld [vmem:[#allocation2 + $0x1070] sm:$0xff]  ;;  %v1432_v30 = vadd.f32 %v1431_v15, %v442_v57  ;;  %v1279_v48 = vrot.slane %v1278_v38, 2  ;;  %v947_v55 = vadd.f32 %v946_v44, %v105_v22  ;;  %v165_v23 = vld [vmem:[#allocation2 + $0x348] sm:$0xff] }
 0x1ce   :  { %v670_v59 = vld [vmem:[#allocation2 + $0x1310] sm:$0xff]  ;;  %v1740_v17 = vadd.f32 %v1739_v4, %v586_v58  ;;  %v1125_v57 = vrot.slane %v1124_v47, 1  ;;  %v189_v32 = vld [vmem:[#allocation2 + $0x408] sm:$0xff]  ;;  %v1101_v22 = vadd.f32 %v177_v24, %v165_v23 }
 0x1cf   :  { %v514_v63 = vld [vmem:[#allocation2 + $0xe30] sm:$0xff]  ;;  %v1895_v18 = vadd.f32 %v1894_v5, %v670_v59  ;;  %v1433_v41 = vrot.slane %v1432_v30, 4  ;;  %v1280_v58 = vadd.f32 %v1279_v48, %v1278_v38  ;;  %v948_v2 = vadd.f32 %v947_v55, %v117_v33  ;;  %v285_v44 = vld [vmem:[#allocation2 + $0x708] sm:$0xff] }
 0x1d0   :  { %v598_v1 = vld [vmem:[#allocation2 + $0x10d0] sm:$0xff]  ;;  %v1586_v25 = vadd.f32 %v1585_v9, %v514_v63  ;;  %v1126_v3 = vadd.f32 %v1125_v57, %v1124_v47  ;;  %v357_v47 = vld [vmem:[#allocation2 + $0x948] sm:$0xff] }
 0x1d1   :  { %v766_v37 = vld [vmem:[#allocation2 + $0x1610] sm:$0xff]  ;;  %v1741_v0 = vadd.f32 %v1740_v17, %v598_v1  ;;  %v1434_v52 = vadd.f32 %v1433_v41, %v1432_v30  ;;  %v1281_v4 = vrot.slane %v1280_v58, 1  ;;  %v949_v11 = vadd.f32 %v948_v2, %v129_v61  ;;  %v153_v17 = vld [vmem:[#allocation2 + $0x2e8] sm:$0xff] }
 0x1d2   :  { %v682_v6 = vld [vmem:[#allocation2 + $0x1370] sm:$0xff]  ;;  %v2051_v26 = vadd.f32 %v2050_v10, %v766_v37  ;;  %v2098_v15 = vmul.f32 0.015625, %v1126_v3  ;;  %v369_v48 = vld [vmem:[#allocation2 + $0x9a8] sm:$0xff] }
 0x1d3   :  { %v526_v13 = vld [vmem:[#allocation2 + $0xe90] sm:$0xff]  ;;  %v1896_v31 = vadd.f32 %v1895_v18, %v682_v6  ;;  %v1435_v63 = vrot.slane %v1434_v52, 2  ;;  %v1282_v12 = vadd.f32 %v1281_v4, %v1280_v58  ;;  %v225_v58 = vld [vmem:[#allocation2 + $0x528] sm:$0xff]  ;;  %v1413_v4 = vadd.f32 %v369_v48, %v357_v47 }
 0x1d4   :  { %v778_v14 = vld [vmem:[#allocation2 + $0x1670] sm:$0xff]  ;;  %v1587_v39 = vadd.f32 %v1586_v25, %v526_v13  ;;  %v950_v25 = vadd.f32 %v949_v11, %v141_v7  ;;  %v465_v2 = vld [vmem:[#allocation2 + $0xca8] sm:$0xff] }
 0x1d5   :  { %v610_v20 = vld [vmem:[#allocation2 + $0x1130] sm:$0xff]  ;;  %v2052_v36 = vadd.f32 %v2051_v26, %v778_v14  ;;  %v1436_v8 = vadd.f32 %v1435_v63, %v1434_v52  ;;  %v237_v7 = vld [vmem:[#allocation2 + $0x588] sm:$0xff] }
 0x1d6   :  { %v694_v21 = vld [vmem:[#allocation2 + $0x13d0] sm:$0xff]  ;;  %v1742_v42 = vadd.f32 %v1741_v0, %v610_v20  ;;  %v951_v35 = vadd.f32 %v950_v25, %v153_v17  ;;  %v405_v17 = vld [vmem:[#allocation2 + $0xac8] sm:$0xff] }
 0x1d7   :  { %v538_v28 = vld [vmem:[#allocation2 + $0xef0] sm:$0xff]  ;;  %v1897_v43 = vadd.f32 %v1896_v31, %v694_v21  ;;  %v1437_v18 = vrot.slane %v1436_v8, 1  ;;  %v417_v24 = vld [vmem:[#allocation2 + $0xb28] sm:$0xff] }
 0x1d8   :  { %v790_v29 = vld [vmem:[#allocation2 + $0x16d0] sm:$0xff]  ;;  %v1588_v49 = vadd.f32 %v1587_v39, %v538_v28  ;;  %v2110_v28 = vmul.f32 0.015625, %v1282_v12  ;;  %v549_v25 = vld [vmem:[#allocation2 + $0xf48] sm:$0xff] }
 0x1d9   :  { %v622_v16 = vld [vmem:[#allocation2 + $0x1190] sm:$0xff]  ;;  %v2053_v50 = vadd.f32 %v2052_v36, %v790_v29  ;;  %v2541_v29 = vsel %vm2464_vm0, %v2098_v15, %v3049_v19  ;;  %v1438_v30 = vadd.f32 %v1437_v18, %v1436_v8  ;;  %v321_v8 = vld [vmem:[#allocation2 + $0x828] sm:$0xff] }
 0x1da   :  { %v706_v34 = vld [vmem:[#allocation2 + $0x1430] sm:$0xff]  ;;  %v1743_v53 = vadd.f32 %v1742_v42, %v622_v16  ;;  %v1589_v59 = vrot.slane %v1588_v49, 4  ;;  %v261_v16 = vld [vmem:[#allocation2 + $0x648] sm:$0xff]  ;;  %v2542_v36 = vsel %vm2466_vm1, %v2110_v28, %v2541_v29 }
 0x1db   :  { %v802_v40 = vld [vmem:[#allocation2 + $0x1730] sm:$0xff]  ;;  %v1898_v54 = vadd.f32 %v1897_v43, %v706_v34  ;;  %v273_v34 = vld [vmem:[#allocation2 + $0x6a8] sm:$0xff]  ;;  %v2122_v42 = vmul.f32 0.015625, %v1438_v30 }
 0x1dc   :  { %v634_v45 = vld [vmem:[#allocation2 + $0x11f0] sm:$0xff]  ;;  %v2054_v60 = vadd.f32 %v2053_v50, %v802_v40  ;;  %v1590_v5 = vadd.f32 %v1589_v59, %v1588_v49  ;;  %v201_v43 = vld [vmem:[#allocation2 + $0x468] sm:$0xff]  ;;  %v1102_v49 = vadd.f32 %v1101_v22, %v189_v32  ;;  %v1257_v50 = vadd.f32 %v273_v34, %v261_v16 }
 0x1dd   :  { %v718_v46 = vld [vmem:[#allocation2 + $0x1490] sm:$0xff]  ;;  %v1744_v1 = vadd.f32 %v1743_v53, %v634_v45  ;;  %v952_v45 = vrot.slane %v951_v35, 4  ;;  %v2543_v52 = vsel %vm2468_vm2, %v2122_v42, %v2542_v36  ;;  %v213_v53 = vld [vmem:[#allocation2 + $0x4c8] sm:$0xff] }
 0x1de   :  { %v814_v51 = vld [vmem:[#allocation2 + $0x1790] sm:$0xff]  ;;  %v1899_v37 = vadd.f32 %v1898_v54, %v718_v46  ;;  %v1591_v13 = vrot.slane %v1590_v5, 2  ;;  %v297_v54 = vld [vmem:[#allocation2 + $0x768] sm:$0xff]  ;;  %v1258_v61 = vadd.f32 %v1257_v50, %v285_v44 }
 0x1df   :  { %v730_v56 = vld [vmem:[#allocation2 + $0x14f0] sm:$0xff]  ;;  %v2055_v6 = vadd.f32 %v2054_v60, %v814_v51  ;;  %v1745_v9 = vrot.slane %v1744_v1, 4  ;;  %v953_v55 = vadd.f32 %v952_v45, %v951_v35  ;;  %v381_v59 = vld [vmem:[#allocation2 + $0xa08] sm:$0xff]  ;;  %v1103_v60 = vadd.f32 %v1102_v49, %v201_v43 }
 0x1e0   :  { %v826_v62 = vld [vmem:[#allocation2 + $0x17f0] sm:$0xff]  ;;  %v1900_v10 = vadd.f32 %v1899_v37, %v730_v56  ;;  %v1592_v26 = vadd.f32 %v1591_v13, %v1590_v5  ;;  %v453_v37 = vld [vmem:[#allocation2 + $0xc48] sm:$0xff]  ;;  %v1259_v11 = vadd.f32 %v1258_v61, %v297_v54  ;;  %v71_v61 = vld [vmem:[#allocation2 + $0x58] sm:$0xff] }
 0x1e1   :  { %v2056_v14 = vadd.f32 %v2055_v6, %v826_v62  ;;  %v1746_v20 = vadd.f32 %v1745_v9, %v1744_v1  ;;  %v309_v1 = vld [vmem:[#allocation2 + $0x7c8] sm:$0xff]  ;;  %v954_v3 = vrot.slane %v953_v55, 2  ;;  %v1569_v29 = vadd.f32 %v465_v2, %v453_v37 }
 0x1e2   :  { %v1901_v21 = vrot.slane %v1900_v10, 4  ;;  %v1593_v38 = vrot.slane %v1592_v26, 1  ;;  %v393_v9 = vld [vmem:[#allocation2 + $0xa68] sm:$0xff]  ;;  %v1260_v28 = vadd.f32 %v1259_v11, %v309_v1  ;;  %v95_v11 = vld [vmem:[#allocation2 + $0x118] sm:$0xff] }
 0x1e3   :  { %v2057_v27 = vrot.slane %v2056_v14, 4  ;;  %v1747_v0 = vrot.slane %v1746_v20, 2  ;;  %v333_v15 = vld [vmem:[#allocation2 + $0x888] sm:$0xff] }
 0x1e4   :  { %v1902_v31 = vadd.f32 %v1901_v21, %v1900_v10  ;;  %v1594_v46 = vadd.f32 %v1593_v38, %v1592_v26  ;;  %v1104_v10 = vadd.f32 %v1103_v60, %v213_v53  ;;  %v477_v18 = vld [vmem:[#allocation2 + $0xd08] sm:$0xff]  ;;  %v1414_v21 = vadd.f32 %v1413_v4, %v381_v59 }
 0x1e5   :  { %v2058_v39 = vadd.f32 %v2057_v27, %v2056_v14  ;;  %v1748_v40 = vadd.f32 %v1747_v0, %v1746_v20  ;;  %v249_v14 = vld [vmem:[#allocation2 + $0x5e8] sm:$0xff]  ;;  %v955_v20 = vadd.f32 %v954_v3, %v953_v55  ;;  %v1570_v42 = vadd.f32 %v1569_v29, %v477_v18 }
 0x1e6   :  { %v1903_v41 = vrot.slane %v1902_v31, 2  ;;  %v2134_v57 = vmul.f32 0.015625, %v1594_v46  ;;  %v561_v26 = vld [vmem:[#allocation2 + $0xfa8] sm:$0xff]  ;;  %v1105_v27 = vadd.f32 %v1104_v10, %v225_v58  ;;  %v1415_v35 = vadd.f32 %v1414_v21, %v393_v9 }
 0x1e7   :  { %v2059_v19 = vrot.slane %v2058_v39, 2  ;;  %v1749_v33 = vrot.slane %v1748_v40, 1  ;;  %v573_v32 = vld [vmem:[#allocation2 + $0x1008] sm:$0xff]  ;;  %v956_v34 = vrot.slane %v955_v20, 1  ;;  %v1725_v48 = vadd.f32 %v561_v26, %v549_v25 }
 0x1e8   :  { %v1904_v51 = vadd.f32 %v1903_v41, %v1902_v31  ;;  %v2544_v6 = vsel %vm2470_vm3, %v2134_v57, %v2543_v52  ;;  %v489_v31 = vld [vmem:[#allocation2 + $0xd68] sm:$0xff]  ;;  %v1261_v41 = vadd.f32 %v1260_v28, %v321_v8  ;;  %v1416_v47 = vadd.f32 %v1415_v35, %v405_v17 }
 0x1e9   :  { %v2060_v56 = vadd.f32 %v2059_v19, %v2058_v39  ;;  %v1750_v62 = vadd.f32 %v1749_v33, %v1748_v40  ;;  %v645_v16 = vld [vmem:[#allocation2 + $0x1248] sm:$0xff]  ;;  %v1106_v40 = vadd.f32 %v1105_v27, %v237_v7  ;;  %v957_v19 = vadd.f32 %v956_v34, %v955_v20  ;;  %v107_v27 = vld [vmem:[#allocation2 + $0x178] sm:$0xff] }
 0x1ea   :  { %v1905_v63 = vrot.slane %v1904_v51, 1  ;;  %v657_v39 = vld [vmem:[#allocation2 + $0x12a8] sm:$0xff]  ;;  %v1262_v54 = vadd.f32 %v1261_v41, %v333_v15  ;;  %v1571_v55 = vadd.f32 %v1570_v42, %v489_v31  ;;  %v1417_v57 = vadd.f32 %v1416_v47, %v417_v24 }
 0x1eb   :  { %v2061_v5 = vrot.slane %v2060_v56, 1  ;;  %v2146_v13 = vmul.f32 0.015625, %v1750_v62  ;;  %v741_v36 = vld [vmem:[#allocation2 + $0x1548] sm:$0xff]  ;;  %v1107_v53 = vadd.f32 %v1106_v40, %v249_v14  ;;  %v1726_v58 = vadd.f32 %v1725_v48, %v573_v32  ;;  %v83_v62 = vld [vmem:[#allocation2 + $0xb8] sm:$0xff] }
 0x1ec   :  { %v1906_v12 = vadd.f32 %v1905_v63, %v1904_v51  ;;  %v753_v22 = vld [vmem:[#allocation2 + $0x15a8] sm:$0xff]  ;;  %v1881_v59 = vadd.f32 %v657_v39, %v645_v16  ;;  %v971_v20 = vadd.f32 %v83_v62, %v71_v61 }
 0x1ed   :  { %v2062_v23 = vadd.f32 %v2061_v5, %v2060_v56  ;;  %v2545_v0 = vsel %vm2472_vm4, %v2146_v13, %v2544_v6  ;;  %v345_v44 = vld [vmem:[#allocation2 + $0x8e8] sm:$0xff]  ;;  %v2037_v60 = vadd.f32 %v753_v22, %v741_v36  ;;  %v1108_v2 = vrot.slane %v1107_v53, 4  ;;  %v119_v36 = vld [vmem:[#allocation2 + $0x1d8] sm:$0xff] }
 0x1ee   :  { %v2158_v30 = vmul.f32 0.015625, %v1906_v12  ;;  %v429_v45 = vld [vmem:[#allocation2 + $0xb88] sm:$0xff]  ;;  %v1263_v3 = vadd.f32 %v1262_v54, %v345_v44  ;;  %v3059_v5 = vmul.f32 0.015625, %v957_v19  ;;  %v972_v16 = vadd.f32 %v971_v20, %v95_v11 }
 0x1ef   :  { %v2170_v38 = vmul.f32 0.015625, %v2062_v23  ;;  %v501_v46 = vld [vmem:[#allocation2 + $0xdc8] sm:$0xff]  ;;  %v1418_v7 = vadd.f32 %v1417_v57, %v429_v45  ;;  %v1109_v15 = vadd.f32 %v1108_v2, %v1107_v53 }
 0x1f0   :  { %v2546_v43 = vsel %vm2474_vm5, %v2158_v30, %v2545_v0  ;;  %v441_v50 = vld [vmem:[#allocation2 + $0xbe8] sm:$0xff]  ;;  %v1572_v4 = vadd.f32 %v1571_v55, %v501_v46  ;;  %v1264_v17 = vrot.slane %v1263_v3, 4  ;;  %v973_v45 = vadd.f32 %v972_v16, %v107_v27  ;;  %v191_v27 = vld [vmem:[#allocation2 + $0x418] sm:$0xff] }
 0x1f1   :  { %v2547_v49 = vsel %vm2476_vm6, %v2170_v38, %v2546_v43  ;;  %v585_v33 = vld [vmem:[#allocation2 + $0x1068] sm:$0xff]  ;;  %v1419_v23 = vadd.f32 %v1418_v7, %v441_v50  ;;  %v1110_v0 = vrot.slane %v1109_v15, 2 }
 0x1f2   :  { %v669_v51 = vld [vmem:[#allocation2 + $0x1308] sm:$0xff]  ;;  %2783 = vmatmul.f32.vlgmr.msra.gmra.mxu2 %v2547_v49  ;;  %v1727_v8 = vadd.f32 %v1726_v58, %v585_v33  ;;  %v1265_v31 = vadd.f32 %v1264_v17, %v1263_v3  ;;  %v131_v49 = vld [vmem:[#allocation2 + $0x238] sm:$0xff]  ;;  %v974_v54 = vadd.f32 %v973_v45, %v119_v36 }
 0x1f3   :  { %v765_v52 = vld [vmem:[#allocation2 + $0x1608] sm:$0xff]  ;;  %v1882_v9 = vadd.f32 %v1881_v59, %v669_v51  ;;  %v1420_v34 = vrot.slane %v1419_v23, 4  ;;  %v1111_v42 = vadd.f32 %v1110_v0, %v1109_v15  ;;  %v143_v59 = vld [vmem:[#allocation2 + $0x298] sm:$0xff] }
 0x1f4   :  { %v513_v56 = vld [vmem:[#allocation2 + $0xe28] sm:$0xff]  ;;  %v2038_v10 = vadd.f32 %v2037_v60, %v765_v52  ;;  %v1266_v43 = vrot.slane %v1265_v31, 2  ;;  %v179_v15 = vld [vmem:[#allocation2 + $0x3b8] sm:$0xff] }
 0x1f5   :  { %v597_v63 = vld [vmem:[#allocation2 + $0x10c8] sm:$0xff]  ;;  %v1573_v18 = vadd.f32 %v1572_v4, %v513_v56  ;;  %v1421_v46 = vadd.f32 %v1420_v34, %v1419_v23  ;;  %v1112_v51 = vrot.slane %v1111_v42, 1  ;;  %v155_v4 = vld [vmem:[#allocation2 + $0x2f8] sm:$0xff] }
 0x1f6   :  { %v681_v1 = vld [vmem:[#allocation2 + $0x1368] sm:$0xff]  ;;  %v1728_v24 = vadd.f32 %v1727_v8, %v597_v63  ;;  %v1267_v52 = vadd.f32 %v1266_v43, %v1265_v31  ;;  %v975_v63 = vadd.f32 %v974_v54, %v131_v49  ;;  %v287_v36 = vld [vmem:[#allocation2 + $0x718] sm:$0xff] }
 0x1f7   :  { %v777_v37 = vld [vmem:[#allocation2 + $0x1668] sm:$0xff]  ;;  %v1883_v25 = vadd.f32 %v1882_v9, %v681_v1  ;;  %v1422_v55 = vrot.slane %v1421_v46, 2  ;;  %v1113_v60 = vadd.f32 %v1112_v51, %v1111_v42 }
 0x1f8   :  { %v525_v6 = vld [vmem:[#allocation2 + $0xe88] sm:$0xff]  ;;  %v2039_v26 = vadd.f32 %v2038_v10, %v777_v37  ;;  %v1268_v61 = vrot.slane %v1267_v52, 1  ;;  %v976_v9 = vadd.f32 %v975_v63, %v143_v59  ;;  %v395_v63 = vld [vmem:[#allocation2 + $0xa78] sm:$0xff] }
 0x1f9   :  { %v609_v12 = vld [vmem:[#allocation2 + $0x1128] sm:$0xff]  ;;  %v1574_v32 = vadd.f32 %v1573_v18, %v525_v6  ;;  %v1423_v1 = vadd.f32 %v1422_v55, %v1421_v46  ;;  %v2097_v8 = vmul.f32 0.015625, %v1113_v60 }
 0x1fa   :  { %v693_v13 = vld [vmem:[#allocation2 + $0x13c8] sm:$0xff]  ;;  %v1729_v35 = vadd.f32 %v1728_v24, %v609_v12  ;;  %v1269_v6 = vadd.f32 %v1268_v61, %v1267_v52  ;;  %v239_v61 = vld [vmem:[#allocation2 + $0x598] sm:$0xff] }
 0x1fb   :  { %v789_v14 = vld [vmem:[#allocation2 + $0x16c8] sm:$0xff]  ;;  %v1884_v38 = vadd.f32 %v1883_v25, %v693_v13  ;;  %v1424_v10 = vrot.slane %v1423_v1, 1  ;;  %v2534_v20 = vsel %vm2464_vm0, %v2097_v8, %v3059_v5  ;;  %v335_v8 = vld [vmem:[#allocation2 + $0x898] sm:$0xff] }
 0x1fc   :  { %v537_v21 = vld [vmem:[#allocation2 + $0xee8] sm:$0xff]  ;;  %v2040_v39 = vadd.f32 %v2039_v26, %v789_v14  ;;  %v167_v14 = vld [vmem:[#allocation2 + $0x358] sm:$0xff]  ;;  %v2109_v18 = vmul.f32 0.015625, %v1269_v6 }
 0x1fd   :  { %v621_v28 = vld [vmem:[#allocation2 + $0x1188] sm:$0xff]  ;;  %v1575_v44 = vadd.f32 %v1574_v32, %v537_v21  ;;  %v977_v21 = vadd.f32 %v976_v9, %v155_v4  ;;  %v1425_v23 = vadd.f32 %v1424_v10, %v1423_v1  ;;  %v1127_v32 = vadd.f32 %v179_v15, %v167_v14  ;;  %v407_v9 = vld [vmem:[#allocation2 + $0xad8] sm:$0xff] }
 0x1fe   :  { %v705_v29 = vld [vmem:[#allocation2 + $0x1428] sm:$0xff]  ;;  %v1730_v19 = vadd.f32 %v1729_v35, %v621_v28  ;;  %v263_v28 = vld [vmem:[#allocation2 + $0x658] sm:$0xff]  ;;  %v2535_v0 = vsel %vm2466_vm1, %v2109_v18, %v2534_v20 }
 0x1ff   :  { %v801_v30 = vld [vmem:[#allocation2 + $0x1728] sm:$0xff]  ;;  %v1885_v47 = vadd.f32 %v1884_v38, %v705_v29  ;;  %v1576_v53 = vrot.slane %v1575_v44, 4  ;;  %v275_v29 = vld [vmem:[#allocation2 + $0x6b8] sm:$0xff]  ;;  %v978_v31 = vrot.slane %v977_v21, 4  ;;  %v2121_v38 = vmul.f32 0.015625, %v1425_v23 }
 0x200   :  { %v633_v22 = vld [vmem:[#allocation2 + $0x11e8] sm:$0xff]  ;;  %v2041_v48 = vadd.f32 %v2040_v39, %v801_v30  ;;  %v203_v39 = vld [vmem:[#allocation2 + $0x478] sm:$0xff]  ;;  %v1128_v42 = vadd.f32 %v1127_v32, %v191_v27  ;;  %v1283_v43 = vadd.f32 %v275_v29, %v263_v28 }
 0x201   :  { %v717_v40 = vld [vmem:[#allocation2 + $0x1488] sm:$0xff]  ;;  %v1731_v56 = vadd.f32 %v1730_v19, %v633_v22  ;;  %v1577_v62 = vadd.f32 %v1576_v53, %v1575_v44  ;;  %v359_v22 = vld [vmem:[#allocation2 + $0x958] sm:$0xff]  ;;  %v2536_v19 = vsel %vm2468_vm2, %v2121_v38, %v2535_v0 }
 0x202   :  { %v813_v41 = vld [vmem:[#allocation2 + $0x1788] sm:$0xff]  ;;  %v1886_v57 = vadd.f32 %v1885_v47, %v717_v40  ;;  %v371_v40 = vld [vmem:[#allocation2 + $0x9b8] sm:$0xff]  ;;  %v1129_v51 = vadd.f32 %v1128_v42, %v203_v39  ;;  %v1284_v52 = vadd.f32 %v1283_v43, %v287_v36 }
 0x203   :  { %v729_v50 = vld [vmem:[#allocation2 + $0x14e8] sm:$0xff]  ;;  %v2042_v58 = vadd.f32 %v2041_v48, %v813_v41  ;;  %v1732_v37 = vrot.slane %v1731_v56, 4  ;;  %v1578_v7 = vrot.slane %v1577_v62, 2  ;;  %v979_v41 = vadd.f32 %v978_v31, %v977_v21  ;;  %v215_v47 = vld [vmem:[#allocation2 + $0x4d8] sm:$0xff] }
 0x204   :  { %v825_v33 = vld [vmem:[#allocation2 + $0x17e8] sm:$0xff]  ;;  %v1887_v2 = vadd.f32 %v1886_v57, %v729_v50  ;;  %v299_v48 = vld [vmem:[#allocation2 + $0x778] sm:$0xff]  ;;  %v1439_v59 = vadd.f32 %v371_v40, %v359_v22 }
 0x205   :  { %v2043_v3 = vadd.f32 %v2042_v58, %v825_v33  ;;  %v1733_v11 = vadd.f32 %v1732_v37, %v1731_v56  ;;  %v1579_v17 = vadd.f32 %v1578_v7, %v1577_v62  ;;  %v227_v50 = vld [vmem:[#allocation2 + $0x538] sm:$0xff]  ;;  %v980_v1 = vrot.slane %v979_v41, 2 }
 0x206   :  { %v1888_v12 = vrot.slane %v1887_v2, 4  ;;  %v383_v33 = vld [vmem:[#allocation2 + $0xa18] sm:$0xff]  ;;  %v1130_v37 = vadd.f32 %v1129_v51, %v215_v47 }
 0x207   :  { %v2044_v13 = vrot.slane %v2043_v3, 4  ;;  %v1734_v24 = vrot.slane %v1733_v11, 2  ;;  %v1580_v30 = vrot.slane %v1579_v17, 1  ;;  %v311_v56 = vld [vmem:[#allocation2 + $0x7d8] sm:$0xff]  ;;  %v981_v31 = vadd.f32 %v980_v1, %v979_v41 }
 0x208   :  { %v1889_v25 = vadd.f32 %v1888_v12, %v1887_v2  ;;  %v455_v57 = vld [vmem:[#allocation2 + $0xc58] sm:$0xff]  ;;  %v1285_v2 = vadd.f32 %v1284_v52, %v299_v48  ;;  %v1440_v12 = vadd.f32 %v1439_v59, %v383_v33 }
 0x209   :  { %v2045_v26 = vadd.f32 %v2044_v13, %v2043_v3  ;;  %v1735_v16 = vadd.f32 %v1734_v24, %v1733_v11  ;;  %v1581_v5 = vadd.f32 %v1580_v30, %v1579_v17  ;;  %v467_v58 = vld [vmem:[#allocation2 + $0xcb8] sm:$0xff]  ;;  %v1131_v17 = vadd.f32 %v1130_v37, %v227_v50 }
 0x20a   :  { %v1890_v34 = vrot.slane %v1889_v25, 2  ;;  %v323_v62 = vld [vmem:[#allocation2 + $0x838] sm:$0xff]  ;;  %v1286_v18 = vadd.f32 %v1285_v2, %v311_v56  ;;  %v1595_v20 = vadd.f32 %v467_v58, %v455_v57  ;;  %v1441_v28 = vadd.f32 %v1440_v12, %v395_v63 }
 0x20b   :  { %v2046_v35 = vrot.slane %v2045_v26, 2  ;;  %v1736_v44 = vrot.slane %v1735_v16, 1  ;;  %v2133_v49 = vmul.f32 0.015625, %v1581_v5  ;;  %v251_v7 = vld [vmem:[#allocation2 + $0x5f8] sm:$0xff]  ;;  %v1132_v32 = vadd.f32 %v1131_v17, %v239_v61 }
 0x20c   :  { %v1891_v45 = vadd.f32 %v1890_v34, %v1889_v25  ;;  %v479_v10 = vld [vmem:[#allocation2 + $0xd18] sm:$0xff]  ;;  %v1442_v5 = vadd.f32 %v1441_v28, %v407_v9  ;;  %v982_v2 = vrot.slane %v981_v31, 1 }
 0x20d   :  { %v2047_v46 = vadd.f32 %v2046_v35, %v2045_v26  ;;  %v1737_v53 = vadd.f32 %v1736_v44, %v1735_v16  ;;  %v2537_v60 = vsel %vm2470_vm3, %v2133_v49, %v2536_v19  ;;  %v551_v11 = vld [vmem:[#allocation2 + $0xf58] sm:$0xff]  ;;  %v1287_v16 = vadd.f32 %v1286_v18, %v323_v62 }
 0x20e   :  { %v1892_v54 = vrot.slane %v1891_v45, 1  ;;  %v563_v13 = vld [vmem:[#allocation2 + $0xfb8] sm:$0xff]  ;;  %v1596_v34 = vadd.f32 %v1595_v20, %v479_v10  ;;  %v983_v28 = vadd.f32 %v982_v2, %v981_v31 }
 0x20f   :  { %v2048_v55 = vrot.slane %v2047_v46, 1  ;;  %v2145_v6 = vmul.f32 0.015625, %v1737_v53  ;;  %v647_v14 = vld [vmem:[#allocation2 + $0x1258] sm:$0xff]  ;;  %v1751_v22 = vadd.f32 %v563_v13, %v551_v11  ;;  %v1288_v19 = vadd.f32 %v1287_v16, %v335_v8 }
 0x210   :  { %v1893_v3 = vadd.f32 %v1892_v54, %v1891_v45  ;;  %v659_v15 = vld [vmem:[#allocation2 + $0x12b8] sm:$0xff] }
 0x211   :  { %v2049_v4 = vadd.f32 %v2048_v55, %v2047_v46  ;;  %v2538_v24 = vsel %vm2472_vm4, %v2145_v6, %v2537_v60  ;;  %v419_v25 = vld [vmem:[#allocation2 + $0xb38] sm:$0xff]  ;;  %v1907_v40 = vadd.f32 %v659_v15, %v647_v14  ;;  %v1133_v46 = vadd.f32 %v1132_v32, %v251_v7 }
 0x212   :  { %v2157_v21 = vmul.f32 0.015625, %v1893_v3  ;;  %v491_v26 = vld [vmem:[#allocation2 + $0xd78] sm:$0xff]  ;;  %v1443_v49 = vadd.f32 %v1442_v5, %v419_v25 }
 0x213   :  { %v2169_v23 = vmul.f32 0.015625, %v2049_v4  ;;  %v575_v27 = vld [vmem:[#allocation2 + $0x1018] sm:$0xff]  ;;  %v1597_v47 = vadd.f32 %v1596_v34, %v491_v26  ;;  %v1134_v55 = vrot.slane %v1133_v46, 4 }
 0x214   :  { %v671_v29 = vld [vmem:[#allocation2 + $0x1318] sm:$0xff]  ;;  %v2539_v35 = vsel %vm2474_vm5, %v2157_v21, %v2538_v24  ;;  %v1752_v50 = vadd.f32 %v1751_v22, %v575_v27 }
 0x215   :  { %v743_v30 = vld [vmem:[#allocation2 + $0x1558] sm:$0xff]  ;;  %v2540_v42 = vsel %vm2476_vm6, %v2169_v23, %v2539_v35  ;;  %v1908_v33 = vadd.f32 %v1907_v40, %v671_v29  ;;  %v1135_v3 = vadd.f32 %v1134_v55, %v1133_v46 }
 0x216   :  { %v755_v0 = vld [vmem:[#allocation2 + $0x15b8] sm:$0xff]  ;;  %2763 = vmatmul.f32.vlgmr.msra.gmra.mxu1 %v2540_v42 }
 0x217   :  { %v347_v38 = vld [vmem:[#allocation2 + $0x8f8] sm:$0xff]  ;;  %v2063_v51 = vadd.f32 %v755_v0, %v743_v30  ;;  %v1136_v15 = vrot.slane %v1135_v3, 2 }
 0x218   :  { %v431_v39 = vld [vmem:[#allocation2 + $0xb98] sm:$0xff]  ;;  %v1289_v56 = vadd.f32 %v1288_v19, %v347_v38  ;;  %v2087_v19 = vmul.f32 0.015625, %v983_v28  ;;  %v2604_v28 = vpop.f32.mrf.mxu1 }
 0x219   :  { %v503_v36 = vld [vmem:[#allocation2 + $0xdd8] sm:$0xff]  ;;  %v1444_v59 = vadd.f32 %v1443_v49, %v431_v39  ;;  %v1137_v29 = vadd.f32 %v1136_v15, %v1135_v3 }
 0x21a   :  { %v587_v43 = vld [vmem:[#allocation2 + $0x1078] sm:$0xff]  ;;  %v1598_v57 = vadd.f32 %v1597_v47, %v503_v36  ;;  %v1290_v4 = vrot.slane %v1289_v56, 4 }
 0x21b   :  { %v683_v44 = vld [vmem:[#allocation2 + $0x1378] sm:$0xff]  ;;  %v1753_v60 = vadd.f32 %v1752_v50, %v587_v43  ;;  %v1138_v39 = vrot.slane %v1137_v29, 1 }
 0x21c   :  { %v767_v45 = vld [vmem:[#allocation2 + $0x1618] sm:$0xff]  ;;  %v1909_v61 = vadd.f32 %v1908_v33, %v683_v44  ;;  %v1291_v17 = vadd.f32 %v1290_v4, %v1289_v56 }
 0x21d   :  { %v443_v41 = vld [vmem:[#allocation2 + $0xbf8] sm:$0xff]  ;;  %v2064_v62 = vadd.f32 %v2063_v51, %v767_v45  ;;  %v1139_v44 = vadd.f32 %v1138_v39, %v1137_v29 }
 0x21e   :  { %v515_v48 = vld [vmem:[#allocation2 + $0xe38] sm:$0xff]  ;;  %v1445_v8 = vadd.f32 %v1444_v59, %v443_v41  ;;  %v1292_v30 = vrot.slane %v1291_v17, 2 }
 0x21f   :  { %v599_v52 = vld [vmem:[#allocation2 + $0x10d8] sm:$0xff]  ;;  %v1599_v6 = vadd.f32 %v1598_v57, %v515_v48  ;;  %v2099_v33 = vmul.f32 0.015625, %v1139_v44 }
 0x220   :  { %v695_v53 = vld [vmem:[#allocation2 + $0x13d8] sm:$0xff]  ;;  %v1754_v9 = vadd.f32 %v1753_v60, %v599_v52  ;;  %v1446_v20 = vrot.slane %v1445_v8, 4  ;;  %v1293_v36 = vadd.f32 %v1292_v30, %v1291_v17  ;;  %v2624_v30 = vpop.f32.mrf.mxu2 }
 0x221   :  { %v779_v54 = vld [vmem:[#allocation2 + $0x1678] sm:$0xff]  ;;  %v1910_v10 = vadd.f32 %v1909_v61, %v695_v53  ;;  %v2548_v57 = vsel %vm2464_vm0, %v2099_v33, %v2087_v19 }
 0x222   :  { %v527_v58 = vld [vmem:[#allocation2 + $0xe98] sm:$0xff]  ;;  %v2065_v11 = vadd.f32 %v2064_v62, %v779_v54  ;;  %v1447_v32 = vadd.f32 %v1446_v20, %v1445_v8  ;;  %v1294_v45 = vrot.slane %v1293_v36, 1 }
 0x223   :  { %v611_v63 = vld [vmem:[#allocation2 + $0x1138] sm:$0xff]  ;;  %v1600_v18 = vadd.f32 %v1599_v6, %v527_v58 }
 0x224   :  { %v707_v1 = vld [vmem:[#allocation2 + $0x1438] sm:$0xff]  ;;  %v1755_v21 = vadd.f32 %v1754_v9, %v611_v63  ;;  %v1448_v22 = vrot.slane %v1447_v32, 2  ;;  %v1295_v49 = vadd.f32 %v1294_v45, %v1293_v36 }
 0x225   :  { %v791_v37 = vld [vmem:[#allocation2 + $0x16d8] sm:$0xff]  ;;  %v1911_v23 = vadd.f32 %v1910_v10, %v707_v1 }
 0x226   :  { %v539_v7 = vld [vmem:[#allocation2 + $0xef8] sm:$0xff]  ;;  %v2066_v24 = vadd.f32 %v2065_v11, %v791_v37  ;;  %v1449_v31 = vadd.f32 %v1448_v22, %v1447_v32  ;;  %v2111_v56 = vmul.f32 0.015625, %v1295_v49  ;;  %v2644_v32 = vpop.f32.mrf.mxu3 }
 0x227   :  { %v623_v12 = vld [vmem:[#allocation2 + $0x1198] sm:$0xff]  ;;  %v1601_v0 = vadd.f32 %v1600_v18, %v539_v7 }
 0x228   :  { %v719_v13 = vld [vmem:[#allocation2 + $0x1498] sm:$0xff]  ;;  %v1756_v16 = vadd.f32 %v1755_v21, %v623_v12  ;;  %v1450_v51 = vrot.slane %v1449_v31, 1  ;;  %v2549_v63 = vsel %vm2466_vm1, %v2111_v56, %v2548_v57  ;;  %v2704_v36 = vpop.f32.mrf.mxu2 }
 0x229   :  { %v803_v14 = vld [vmem:[#allocation2 + $0x1738] sm:$0xff]  ;;  %v1912_v34 = vadd.f32 %v1911_v23, %v719_v13  ;;  %v1602_v5 = vrot.slane %v1601_v0, 4 }
 0x22a   :  { %v635_v25 = vld [vmem:[#allocation2 + $0x11f8] sm:$0xff]  ;;  %v2067_v35 = vadd.f32 %v2066_v24, %v803_v14  ;;  %v1451_v58 = vadd.f32 %v1450_v51, %v1449_v31 }
 0x22b   :  { %v731_v26 = vld [vmem:[#allocation2 + $0x14f8] sm:$0xff]  ;;  %v1757_v40 = vadd.f32 %v1756_v16, %v635_v25  ;;  %v1603_v46 = vadd.f32 %v1602_v5, %v1601_v0  ;;  %v2834_v25 = vld [vmem:[#allocation7] ss:$0 sm:$0xff] }
 0x22c   :  { %v815_v27 = vld [vmem:[#allocation2 + $0x1798] sm:$0xff]  ;;  %v1913_v42 = vadd.f32 %v1912_v34, %v731_v26  ;;  %v2123_v3 = vmul.f32 0.015625, %v1451_v58  ;;  %v2584_v26 = vpop.f32.mrf.mxu0 }
 0x22d   :  { %v827_v38 = vld [vmem:[#allocation2 + $0x17f8] sm:$0xff]  ;;  %v2068_v43 = vadd.f32 %v2067_v35, %v815_v27  ;;  %v1758_v47 = vrot.slane %v1757_v40, 4  ;;  %v1604_v50 = vrot.slane %v1603_v46, 2  ;;  %v2585_v27 = vadd.f32 %v2834_v25, %v2584_v26 }
 0x22e   :  { %v1914_v41 = vrot.slane %v1913_v42, 4  ;;  %v2550_v9 = vsel %vm2468_vm2, %v2123_v3, %v2549_v63  ;;  %v2724_v22 = vpop.f32.mrf.mxu3 }
 0x22f   :  { %v2069_v48 = vadd.f32 %v2068_v43, %v827_v38  ;;  %v1759_v52 = vadd.f32 %v1758_v47, %v1757_v40  ;;  %v1605_v55 = vadd.f32 %v1604_v50, %v1603_v46  ;;  %v2605_v29 = vadd.f32 %v2604_v28, %v2585_v27  ;;  %v2684_v38 = vpop.f32.mrf.mxu1 }
 0x230   :  { %v1915_v53 = vadd.f32 %v1914_v41, %v1913_v42 }
 0x231   :  { %v2070_v54 = vrot.slane %v2069_v48, 4  ;;  %v1760_v59 = vrot.slane %v1759_v52, 2  ;;  %v1606_v62 = vrot.slane %v1605_v55, 1  ;;  %v2625_v0 = vadd.f32 %v2624_v30, %v2605_v29 }
 0x232   :  { %v1916_v60 = vrot.slane %v1915_v53, 2 }
 0x233   :  { %v2071_v61 = vadd.f32 %v2070_v54, %v2069_v48  ;;  %v1761_v1 = vadd.f32 %v1760_v59, %v1759_v52  ;;  %v1607_v4 = vadd.f32 %v1606_v62, %v1605_v55  ;;  %v2645_v16 = vadd.f32 %v2644_v32, %v2625_v0 }
 0x234   :  { %v1917_v37 = vadd.f32 %v1916_v60, %v1915_v53  ;;  %v2664_v34 = vpop.f32.mrf.mxu0 }
 0x235   :  { %v2072_v2 = vrot.slane %v2071_v61, 2  ;;  %v1762_v6 = vrot.slane %v1761_v1, 1  ;;  %v2135_v10 = vmul.f32 0.015625, %v1607_v4  ;;  %v2665_v35 = vadd.f32 %v2664_v34, %v2645_v16 }
 0x236   :  { %v1918_v7 = vrot.slane %v1917_v37, 1 }
 0x237   :  { %v2073_v8 = vadd.f32 %v2072_v2, %v2071_v61  ;;  %v1763_v11 = vadd.f32 %v1762_v6, %v1761_v1  ;;  %v2551_v14 = vsel %vm2470_vm3, %v2135_v10, %v2550_v9  ;;  %v2685_v39 = vadd.f32 %v2684_v38, %v2665_v35 }
 0x238   :  { %v1919_v12 = vadd.f32 %v1918_v7, %v1917_v37 }
 0x239   :  { %v2074_v13 = vrot.slane %v2073_v8, 1  ;;  %v2147_v17 = vmul.f32 0.015625, %v1763_v11  ;;  %v2705_v5 = vadd.f32 %v2704_v36, %v2685_v39 }
 0x23a   :  { %v2159_v18 = vmul.f32 0.015625, %v1919_v12 }
 0x23b   :  { %v2075_v15 = vadd.f32 %v2074_v13, %v2073_v8  ;;  %v2552_v21 = vsel %vm2472_vm4, %v2147_v17, %v2551_v14  ;;  %v2725_v42 = vadd.f32 %v2724_v22, %v2705_v5 }
 0x23c   :  { %v2553_v23 = vsel %vm2474_vm5, %v2159_v18, %v2552_v21 }
 0x23d   :  { %v2171_v20 = vmul.f32 0.015625, %v2075_v15 }
 0x23f   :  { %v2554_v24 = vsel %vm2476_vm6, %v2171_v20, %v2553_v23 }
 0x240   :  { %2803 = vmatmul.f32.vlgmr.msra.gmra.mxu3 %v2554_v24 }
 0x249   :  { %v2744_v40 = vpop.f32.mrf.mxu0 }
 0x24a   :  { %v2745_v43 = vadd.f32 %v2744_v40, %v2725_v42 }
 0x275   :  { %v2784_v45 = vpop.f32.mrf.mxu2 }
 0x293   :  { %v2764_v44 = vpop.f32.mrf.mxu1 }
 0x294   :  { %v2765_v46 = vadd.f32 %v2764_v44, %v2745_v43 }
 0x296   :  { %v2785_v19 = vadd.f32 %v2784_v45, %v2765_v46 }
 0x2c3   :  { %v2804_v31 = vpop.f32.mrf.mxu3 }
 0x2c4   :  { %v2805_v47 = vadd.f32 %v2804_v31, %v2785_v19 }
 0x2c6   :  { %2807 = vst [vmem:[#allocation8] sm:$0xff] %v2805_v47 }
 0x2c7   :  { %2818 = dma.vmem_to_hbm [thread:$0]  %s2814_s2, 128, %s2816_s5, [#allocation4]  }
 0x2c8   :  { %2935 = dma.done.wait [#allocation4], 128  }
 0x2c9   :  { %2936 = vsyncadd [#allocation4], 4294967168 }
 0x2ca   :  { %2823 = vsyncpa [#allocation3], 1 }
 0x2cb   :  { %2824 = vsyncpa [#allocation6], 1 }
 0x2cc   :  { %2825 = vsyncpa [#allocation4], 1 }

</bundles_post_ra>
